<compile_context>
chip_gen: v6e
topology: v6e:2x2x1
jax: 0.10.0
libtpu: 0.0.40
codegen_flags: <defaults>
</compile_context>

<pallas_src>
import jax
import jax.numpy as jnp
from jax.experimental import pallas as pl
from jax.experimental.pallas import tpu as pltpu

K = 3          # conv kernel size
LP = 8         # left pad inside the padded VMEM scratch -> interior store is
               # sublane-aligned; the 1-pixel halo lives at columns LP-1 / LP+W
BN_EPS = 1e-5


# ----------------------------- kernels ------------------------------------- #

def _up_kernel(x_ref, w_ref, b_ref, o_ref):
    """ConvTranspose2d(k=2, s=2) as two per-row-parity MXU matmuls.

    x_ref: (H*W, Cin)           w_ref: (2, Cin, 2*Cout)  columns ordered (kw, cout)
    b_ref: (1, 2*Cout)          o_ref: (H, 2, W, 2*Cout) -> (2H, 2W, Cout) by a
                                 free row-major reshape in the wrapper.
    """
    H, _, W, twoC = o_ref.shape
    x = x_ref[...].astype(jnp.float32)
    bias = b_ref[...].astype(jnp.float32)
    for a in range(2):                                   # row parity (kh)
        y = jnp.dot(x, w_ref[a].astype(jnp.float32),
                    preferred_element_type=jnp.float32) + bias
        o_ref[:, a, :, :] = y.reshape(H, W, twoC).astype(o_ref.dtype)


def _make_chain_kernel(n_layers, H2, W2, c_up, c_skip, c_outs):
    """Fused nb_Conv x (Conv3x3 + folded BN + ReLU); activation stays in VMEM."""
    c_ins = [c_up + c_skip] + list(c_outs[:-1])

    def kernel(*refs):
        up_ref, skip_ref = refs[0], refs[1]
        layer_refs = refs[2:2 + 3 * n_layers]
        o_ref = refs[2 + 3 * n_layers]
        hpad_ref = refs[2 + 3 * n_layers + 1]
        lhs_ref = refs[2 + 3 * n_layers + 2]

        Hp, Wp, Cm = hpad_ref.shape

        # Zero ONLY the halo ring each step (interior fully overwritten below;
        # columns [0:LP-1) are never read by any tap).
        zrow = jnp.zeros((1, Wp, Cm), jnp.float32)
        zcol = jnp.zeros((Hp, 1, Cm), jnp.float32)
        hpad_ref[0:1, :, :] = zrow
        hpad_ref[Hp - 1:Hp, :, :] = zrow
        hpad_ref[:, LP - 1:LP, :] = zcol
        hpad_ref[:, LP + W2:LP + W2 + 1, :] = zcol

        # Layer-0 input = cat([up, skip], channel), materialized once in VMEM
        # (matches torch channel order: up first, then skip).
        hpad_ref[1:H2 + 1, LP:LP + W2, 0:c_up] = up_ref[...].astype(jnp.float32)
        hpad_ref[1:H2 + 1, LP:LP + W2, c_up:c_up + c_skip] = (
            skip_ref[...].astype(jnp.float32))

        for li in range(n_layers):
            w_ref = layer_refs[3 * li]
            s_ref = layer_refs[3 * li + 1]
            t_ref = layer_refs[3 * li + 2]
            cin, cout = c_ins[li], c_outs[li]

            # im2col: one (H2*W2, 9*cin) LHS from the 9 shifted taps.
            for kh in range(K):
                for kw in range(K):
                    t = kh * K + kw
                    tap = hpad_ref[kh:kh + H2,
                                   LP - 1 + kw:LP - 1 + kw + W2,
                                   0:cin]                      # (H2, W2, cin)
                    lhs_ref[:, t * cin:(t + 1) * cin] = tap.reshape(H2 * W2, cin)

            # One deep-K MXU matmul per layer; BN (folded) + ReLU epilogue.
            y = jnp.dot(lhs_ref[:, 0:9 * cin], w_ref[...].astype(jnp.float32),
                        preferred_element_type=jnp.float32)
            y = jnp.maximum(y * s_ref[...] + t_ref[...], 0.0)

            if li + 1 < n_layers:
                # keep the activation resident in VMEM for the next layer
                hpad_ref[1:H2 + 1, LP:LP + W2, 0:cout] = y.reshape(H2, W2, cout)
            else:
                o_ref[...] = y.reshape(H2, W2, cout).astype(o_ref.dtype)

    return kernel


# ----------------------------- wrappers ------------------------------------ #

def _compiler_params():
    return pltpu.CompilerParams(
        dimension_semantics=("parallel",),
        # safe on v5e/v6e (128 MiB) and within v7x's 64 MiB physical VMEM
        vmem_limit_bytes=48 * 1024 * 1024,
    )


def conv_transpose_2x2_nhwc(x_nhwc, w_up_k, b_up_k):
    """x_nhwc: (B,H,W,Cin); w_up_k: (2, Cin, 2*Cout); b_up_k: (1, 2*Cout).
    Returns (B, 2H, 2W, Cout).  The depth-to-space interleave is expressed as a
    free row-major reshape of the HBM array (no XLA transpose)."""
    B, H, W, Cin = x_nhwc.shape
    twoC = w_up_k.shape[-1]
    Cout = twoC // 2
    assert W % 8 == 0, "low-res W must be sublane-aligned for in-kernel reshapes"
    x2d = x_nhwc.reshape(B, H * W, Cin)

    y = pl.pallas_call(
        _up_kernel,
        out_shape=jax.ShapeDtypeStruct((B, H, 2, W, twoC), x_nhwc.dtype),
        grid_spec=pltpu.PrefetchScalarGridSpec(
            num_scalar_prefetch=0,
            grid=(B,),
            in_specs=[
                pl.BlockSpec((None, H * W, Cin), lambda b: (b, 0, 0)),
                pl.BlockSpec((2, Cin, twoC), lambda b: (0, 0, 0)),
                pl.BlockSpec((1, twoC), lambda b: (0, 0)),
            ],
            out_specs=pl.BlockSpec((None, H, 2, W, twoC),
                                   lambda b: (b, 0, 0, 0, 0)),
        ),
        compiler_params=_compiler_params(),
    )(x2d, w_up_k, b_up_k)
    # (B, H, 2, W, 2, Cout) -> (B, 2H, 2W, Cout): pure row-major merge (free).
    return y.reshape(B, 2 * H, 2 * W, Cout)


def conv_chain_nhwc(up_nhwc, skip_nhwc, layer_params):
    """Fused nb_Conv x (Conv3x3 'same' + folded BN + ReLU) on cat([up, skip])."""
    B, H2, W2, c_up = up_nhwc.shape
    c_skip = skip_nhwc.shape[-1]
    assert W2 % 8 == 0, "W must be sublane-aligned for in-kernel reshapes"
    c_outs = [w.shape[-1] for (w, _, _) in layer_params]
    n_layers = len(layer_params)
    c_ins = [c_up + c_skip] + c_outs[:-1]
    c_max = max(c_ins)

    in_specs = [
        pl.BlockSpec((None, H2, W2, c_up), lambda b: (b, 0, 0, 0)),
        pl.BlockSpec((None, H2, W2, c_skip), lambda b: (b, 0, 0, 0)),
    ]
    args = [up_nhwc, skip_nhwc]
    for (w, s, t) in layer_params:
        kin, cout = w.shape
        in_specs.append(pl.BlockSpec((kin, cout), lambda b: (0, 0)))
        in_specs.append(pl.BlockSpec((1, cout), lambda b: (0, 0)))
        in_specs.append(pl.BlockSpec((1, cout), lambda b: (0, 0)))
        args += [w, s.reshape(1, cout), t.reshape(1, cout)]

    kernel = _make_chain_kernel(n_layers, H2, W2, c_up, c_skip, tuple(c_outs))

    return pl.pallas_call(
        kernel,
        out_shape=jax.ShapeDtypeStruct((B, H2, W2, c_outs[-1]), up_nhwc.dtype),
        grid_spec=pltpu.PrefetchScalarGridSpec(
            num_scalar_prefetch=0,
            grid=(B,),
            in_specs=in_specs,
            out_specs=pl.BlockSpec((None, H2, W2, c_outs[-1]),
                                   lambda b: (b, 0, 0, 0)),
            scratch_shapes=[
                pltpu.VMEM((H2 + 2, LP + W2 + 1, c_max), jnp.float32),   # padded h
                pltpu.VMEM((H2 * W2, 9 * c_max), jnp.float32),           # im2col LHS
            ],
        ),
        compiler_params=_compiler_params(),
    )(*args)


def _fold_bn(conv_b, gamma, beta, mean, var, eps=BN_EPS):
    scale = gamma / jnp.sqrt(var + eps)
    shift = (conv_b - mean) * scale + beta
    return scale, shift


def prepare_params(raw):
    """PyTorch-layout params -> kernel-ready layouts.  Call ONCE (hoisted)."""
    cin_up, cout_up = raw["up_w"].shape[0], raw["up_w"].shape[1]
    # ConvTranspose2d weight (cin, cout, kh, kw) -> (kh, cin, (kw, cout))
    w_up_k = jnp.transpose(raw["up_w"], (2, 0, 3, 1)).reshape(2, cin_up, 2 * cout_up)
    b_up_k = jnp.tile(raw["up_b"], 2).reshape(1, 2 * cout_up)

    layers = []
    for layer in raw["convs"]:
        cout, cin = layer["w"].shape[0], layer["w"].shape[1]
        # torch (cout, cin, kh, kw) -> im2col (9*cin, cout), rows ordered (kh, kw, cin)
        w_im = jnp.transpose(layer["w"], (2, 3, 1, 0)).reshape(9 * cin, cout)
        scale, shift = _fold_bn(layer["b"], layer["gamma"], layer["beta"],
                                layer["mean"], layer["var"])
        layers.append((w_im, scale, shift))
    return {"up_w_k": w_up_k, "up_b_k": b_up_k, "layers": layers}


def upblock_forward_nhwc(x_nhwc, skip_nhwc, params):
    """UpBlock forward, NHWC activations.  x: (B,H,W,C/2); skip: (B,2H,2W,C/2)."""
    up = conv_transpose_2x2_nhwc(x_nhwc, params["up_w_k"], params["up_b_k"])
    return conv_chain_nhwc(up, skip_nhwc, params["layers"])


def upblock_forward_nchw(x_nchw, skip_nchw, params):
    """PyTorch-convention (NCHW) entry point; boundary transposes only for parity."""
    x = jnp.transpose(x_nchw, (0, 2, 3, 1))
    s = jnp.transpose(skip_nchw, (0, 2, 3, 1))
    out = upblock_forward_nhwc(x, s, params)
    return jnp.transpose(out, (0, 3, 1, 2))


# ----------------------------- reference ----------------------------------- #

def _reference_upblock_nchw(x, skip, raw):
    hp = jax.lax.Precision.HIGHEST
    wt = raw["up_w"]                                   # (cin, cout, kh, kw)
    w_conv = jnp.transpose(jnp.flip(wt, axis=(2, 3)), (1, 0, 2, 3))  # OIHW
    up = jax.lax.conv_general_dilated(
        x, w_conv, window_strides=(1, 1), padding=((1, 1), (1, 1)),
        lhs_dilation=(2, 2), dimension_numbers=("NCHW", "OIHW", "NCHW"),
        precision=hp)
    up = up + raw["up_b"].reshape(1, -1, 1, 1)
    h = jnp.concatenate([up, skip], axis=1)
    for layer in raw["convs"]:
        y = jax.lax.conv_general_dilated(
            h, layer["w"], window_strides=(1, 1), padding=((1, 1), (1, 1)),
            dimension_numbers=("NCHW", "OIHW", "NCHW"), precision=hp)
        y = y + layer["b"].reshape(1, -1, 1, 1)
        y = (y - layer["mean"].reshape(1, -1, 1, 1)) * (
            layer["gamma"].reshape(1, -1, 1, 1)
            / jnp.sqrt(layer["var"].reshape(1, -1, 1, 1) + BN_EPS))
        y = y + layer["beta"].reshape(1, -1, 1, 1)
        h = jnp.maximum(y, 0.0)
    return h


# ------------------------------- main --------------------------------------- #

if __name__ == "__main__":
    B, in_channels, out_channels, nb_Conv = 2, 16, 16, 2
    C2 = in_channels // 2
    H, W = 8, 8                                 # low-res input; output is (2H, 2W)

    key = jax.random.PRNGKey(0)
    ks = list(jax.random.split(key, 4 + 6 * nb_Conv))
    x = jax.random.normal(ks[0], (B, C2, H, W), jnp.float32)
    skip = jax.random.normal(ks[1], (B, C2, 2 * H, 2 * W), jnp.float32)

    raw = {
        "up_w": 0.2 * jax.random.normal(ks[2], (C2, C2, 2, 2), jnp.float32),
        "up_b": 0.1 * jax.random.normal(ks[3], (C2,), jnp.float32),
        "convs": [],
    }
    cin, ki = in_channels, 4
    for _ in range(nb_Conv):
        raw["convs"].append({
            "w": 0.2 * jax.random.normal(ks[ki], (out_channels, cin, 3, 3), jnp.float32),
            "b": 0.1 * jax.random.normal(ks[ki + 1], (out_channels,), jnp.float32),
            "gamma": 1.0 + 0.1 * jax.random.normal(ks[ki + 2], (out_channels,), jnp.float32),
            "beta": 0.1 * jax.random.normal(ks[ki + 3], (out_channels,), jnp.float32),
            "mean": 0.1 * jax.random.normal(ks[ki + 4], (out_channels,), jnp.float32),
            "var": jax.random.uniform(ks[ki + 5], (out_channels,), jnp.float32, 0.5, 1.5),
        })
        cin, ki = out_channels, ki + 6

    params = prepare_params(raw)            # hoisted: kernel-ready layouts, once
    fwd = jax.jit(upblock_forward_nchw)
    out = jax.block_until_ready(fwd(x, skip, params))

    ref = _reference_upblock_nchw(x, skip, raw)
    assert out.shape == (B, out_channels, 2 * H, 2 * W)
    max_err = jnp.max(jnp.abs(out - ref))
    assert jnp.allclose(out, ref, atol=5e-2, rtol=5e-2), (
        f"mismatch vs reference, max abs err = {max_err}")
    print("KERNEL_OK")
</pallas_src>

<mosaic_0001>
module attributes {stable_mosaic.version = 11 : i64} {
  func.func @_up_kernel(%arg0: i32, %arg1: memref<1x64x8xf32, #tpu.memory_space<vmem>>, %arg2: memref<2x8x16xf32, #tpu.memory_space<vmem>>, %arg3: memref<1x16xf32, #tpu.memory_space<vmem>>, %arg4: memref<1x8x2x8x16xf32, #tpu.memory_space<vmem>>) attributes {dimension_semantics = [#tpu.dimension_semantics<parallel>], iteration_bounds = array<i64: 2>, scalar_prefetch = 0 : i64, scratch_operands = 0 : i64, tpu.core_type = #tpu.core_type<tc>, window_params = [{transform_indices = @transform_0, window_bounds = array<i64: 1, 64, 8>}, {pipeline_mode = #tpu.pipeline_mode<synchronous>, transform_indices = @transform_1, window_bounds = array<i64: 2, 8, 16>}, {pipeline_mode = #tpu.pipeline_mode<synchronous>, transform_indices = @transform_2, window_bounds = array<i64: 1, 16>}, {transform_indices = @transform_3, window_bounds = array<i64: 1, 8, 2, 8, 16>}]} {
    %c0 = arith.constant 0 : index
    %c0_0 = arith.constant 0 : index
    %c0_1 = arith.constant 0 : index
    %0 = vector.load %arg1[%c0, %c0_0, %c0_1] : memref<1x64x8xf32, #tpu.memory_space<vmem>>, vector<1x64x8xf32>
    %1 = vector.shape_cast %0 : vector<1x64x8xf32> to vector<64x8xf32>
    %c0_2 = arith.constant 0 : index
    %c0_3 = arith.constant 0 : index
    %2 = vector.load %arg3[%c0_2, %c0_3] : memref<1x16xf32, #tpu.memory_space<vmem>>, vector<1x16xf32>
    %c0_4 = arith.constant 0 : index
    %c0_5 = arith.constant 0 : index
    %c0_6 = arith.constant 0 : index
    %3 = vector.load %arg2[%c0_4, %c0_5, %c0_6] : memref<2x8x16xf32, #tpu.memory_space<vmem>>, vector<1x8x16xf32>
    %4 = vector.shape_cast %3 : vector<1x8x16xf32> to vector<8x16xf32>
    %cst = arith.constant dense<0.000000e+00> : vector<64x16xf32>
    %5 = tpu.matmul %1, %4, %cst {dimension_numbers = #tpu.dot_dimension_numbers<[1], [0], [0], [1], [0, 0, 1, 1], [], []>} : vector<64x8xf32>, vector<8x16xf32>, vector<64x16xf32> -> vector<64x16xf32>
    %6 = vector.broadcast %2 : vector<1x16xf32> to vector<64x16xf32>
    %7 = arith.addf %5, %6 : vector<64x16xf32>
    %8 = vector.shape_cast %7 : vector<64x16xf32> to vector<8x8x16xf32>
    %c0_7 = arith.constant 0 : index
    %c0_8 = arith.constant 0 : index
    %c0_9 = arith.constant 0 : index
    %c0_10 = arith.constant 0 : index
    %c0_11 = arith.constant 0 : index
    %9 = vector.load %arg4[%c0_7, %c0_8, %c0_9, %c0_10, %c0_11] : memref<1x8x2x8x16xf32, #tpu.memory_space<vmem>>, vector<1x8x1x8x16xf32>
    %10 = vector.shape_cast %9 : vector<1x8x1x8x16xf32> to vector<8x8x16xf32>
    %11 = vector.shape_cast %8 : vector<8x8x16xf32> to vector<1x8x1x8x16xf32>
    tpu.vector_store %arg4[%c0_7, %c0_8, %c0_9, %c0_10, %c0_11], %11 {strides = array<i32>} : memref<1x8x2x8x16xf32, #tpu.memory_space<vmem>>, vector<1x8x1x8x16xf32>,
    %c1 = arith.constant 1 : index
    %c0_12 = arith.constant 0 : index
    %c0_13 = arith.constant 0 : index
    %12 = vector.load %arg2[%c1, %c0_12, %c0_13] : memref<2x8x16xf32, #tpu.memory_space<vmem>>, vector<1x8x16xf32>
    %13 = vector.shape_cast %12 : vector<1x8x16xf32> to vector<8x16xf32>
    %cst_14 = arith.constant dense<0.000000e+00> : vector<64x16xf32>
    %14 = tpu.matmul %1, %13, %cst_14 {dimension_numbers = #tpu.dot_dimension_numbers<[1], [0], [0], [1], [0, 0, 1, 1], [], []>} : vector<64x8xf32>, vector<8x16xf32>, vector<64x16xf32> -> vector<64x16xf32>
    %15 = vector.broadcast %2 : vector<1x16xf32> to vector<64x16xf32>
    %16 = arith.addf %14, %15 : vector<64x16xf32>
    %17 = vector.shape_cast %16 : vector<64x16xf32> to vector<8x8x16xf32>
    %c0_15 = arith.constant 0 : index
    %c0_16 = arith.constant 0 : index
    %c1_17 = arith.constant 1 : index
    %c0_18 = arith.constant 0 : index
    %c0_19 = arith.constant 0 : index
    %18 = vector.load %arg4[%c0_15, %c0_16, %c1_17, %c0_18, %c0_19] : memref<1x8x2x8x16xf32, #tpu.memory_space<vmem>>, vector<1x8x1x8x16xf32>
    %19 = vector.shape_cast %18 : vector<1x8x1x8x16xf32> to vector<8x8x16xf32>
    %20 = vector.shape_cast %17 : vector<8x8x16xf32> to vector<1x8x1x8x16xf32>
    tpu.vector_store %arg4[%c0_15, %c0_16, %c1_17, %c0_18, %c0_19], %20 {strides = array<i32>} : memref<1x8x2x8x16xf32, #tpu.memory_space<vmem>>, vector<1x8x1x8x16xf32>,
    return
  }
  func.func @transform_0(%arg0: i32) -> (i32, i32, i32) {
    %c0_i32 = arith.constant 0 : i32
    %c0_i32_0 = arith.constant 0 : i32
    %c0_i32_1 = arith.constant 0 : i32
    return %arg0, %c0_i32, %c0_i32_0 : i32, i32, i32
  }
  func.func @transform_1(%arg0: i32) -> (i32, i32, i32) {
    %c0_i32 = arith.constant 0 : i32
    %c0_i32_0 = arith.constant 0 : i32
    %c0_i32_1 = arith.constant 0 : i32
    %c0_i32_2 = arith.constant 0 : i32
    return %c0_i32, %c0_i32_0, %c0_i32_1 : i32, i32, i32
  }
  func.func @transform_2(%arg0: i32) -> (i32, i32) {
    %c0_i32 = arith.constant 0 : i32
    %c0_i32_0 = arith.constant 0 : i32
    %c0_i32_1 = arith.constant 0 : i32
    return %c0_i32, %c0_i32_0 : i32, i32
  }
  func.func @transform_3(%arg0: i32) -> (i32, i32, i32, i32, i32) {
    %c0_i32 = arith.constant 0 : i32
    %c0_i32_0 = arith.constant 0 : i32
    %c0_i32_1 = arith.constant 0 : i32
    %c0_i32_2 = arith.constant 0 : i32
    %c0_i32_3 = arith.constant 0 : i32
    return %arg0, %c0_i32, %c0_i32_0, %c0_i32_1, %c0_i32_2 : i32, i32, i32, i32, i32
  }
}

module attributes {stable_mosaic.version = 11 : i64} {
  func.func @kernel(%arg0: i32, %arg1: memref<1x16x16x8xf32, #tpu.memory_space<vmem>>, %arg2: memref<1x16x16x8xf32, #tpu.memory_space<vmem>>, %arg3: memref<144x16xf32, #tpu.memory_space<vmem>>, %arg4: memref<1x16xf32, #tpu.memory_space<vmem>>, %arg5: memref<1x16xf32, #tpu.memory_space<vmem>>, %arg6: memref<144x16xf32, #tpu.memory_space<vmem>>, %arg7: memref<1x16xf32, #tpu.memory_space<vmem>>, %arg8: memref<1x16xf32, #tpu.memory_space<vmem>>, %arg9: memref<1x16x16x16xf32, #tpu.memory_space<vmem>>, %arg10: memref<18x25x16xf32, #tpu.memory_space<vmem>>, %arg11: memref<256x144xf32, #tpu.memory_space<vmem>>) attributes {dimension_semantics = [#tpu.dimension_semantics<parallel>], iteration_bounds = array<i64: 2>, scalar_prefetch = 0 : i64, scratch_operands = 2 : i64, tpu.core_type = #tpu.core_type<tc>, window_params = [{transform_indices = @transform_0, window_bounds = array<i64: 1, 16, 16, 8>}, {transform_indices = @transform_1, window_bounds = array<i64: 1, 16, 16, 8>}, {pipeline_mode = #tpu.pipeline_mode<synchronous>, transform_indices = @transform_2, window_bounds = array<i64: 144, 16>}, {pipeline_mode = #tpu.pipeline_mode<synchronous>, transform_indices = @transform_3, window_bounds = array<i64: 1, 16>}, {pipeline_mode = #tpu.pipeline_mode<synchronous>, transform_indices = @transform_4, window_bounds = array<i64: 1, 16>}, {pipeline_mode = #tpu.pipeline_mode<synchronous>, transform_indices = @transform_5, window_bounds = array<i64: 144, 16>}, {pipeline_mode = #tpu.pipeline_mode<synchronous>, transform_indices = @transform_6, window_bounds = array<i64: 1, 16>}, {pipeline_mode = #tpu.pipeline_mode<synchronous>, transform_indices = @transform_7, window_bounds = array<i64: 1, 16>}, {transform_indices = @transform_8, window_bounds = array<i64: 1, 16, 16, 16>}]} {
    %cst = arith.constant 0.000000e+00 : f32
    %0 = vector.broadcast %cst : f32 to vector<1x25x16xf32>
    %cst_0 = arith.constant 0.000000e+00 : f32
    %1 = vector.broadcast %cst_0 : f32 to vector<18x1x16xf32>
    %c0 = arith.constant 0 : index
    %c0_1 = arith.constant 0 : index
    %c0_2 = arith.constant 0 : index
    %2 = vector.load %arg10[%c0, %c0_1, %c0_2] : memref<18x25x16xf32, #tpu.memory_space<vmem>>, vector<1x25x16xf32>
    tpu.vector_store %arg10[%c0, %c0_1, %c0_2], %0 {strides = array<i32>} : memref<18x25x16xf32, #tpu.memory_space<vmem>>, vector<1x25x16xf32>,
    %c17 = arith.constant 17 : index
    %c0_3 = arith.constant 0 : index
    %c0_4 = arith.constant 0 : index
    %3 = vector.load %arg10[%c17, %c0_3, %c0_4] : memref<18x25x16xf32, #tpu.memory_space<vmem>>, vector<1x25x16xf32>
    tpu.vector_store %arg10[%c17, %c0_3, %c0_4], %0 {strides = array<i32>} : memref<18x25x16xf32, #tpu.memory_space<vmem>>, vector<1x25x16xf32>,
    %c0_5 = arith.constant 0 : index
    %c7 = arith.constant 7 : index
    %c0_6 = arith.constant 0 : index
    %4 = vector.load %arg10[%c0_5, %c7, %c0_6] : memref<18x25x16xf32, #tpu.memory_space<vmem>>, vector<18x1x16xf32>
    tpu.vector_store %arg10[%c0_5, %c7, %c0_6], %1 {strides = array<i32>} : memref<18x25x16xf32, #tpu.memory_space<vmem>>, vector<18x1x16xf32>,
    %c0_7 = arith.constant 0 : index
    %c24 = arith.constant 24 : index
    %c0_8 = arith.constant 0 : index
    %5 = vector.load %arg10[%c0_7, %c24, %c0_8] : memref<18x25x16xf32, #tpu.memory_space<vmem>>, vector<18x1x16xf32>
    tpu.vector_store %arg10[%c0_7, %c24, %c0_8], %1 {strides = array<i32>} : memref<18x25x16xf32, #tpu.memory_space<vmem>>, vector<18x1x16xf32>,
    %c0_9 = arith.constant 0 : index
    %c0_10 = arith.constant 0 : index
    %c0_11 = arith.constant 0 : index
    %c0_12 = arith.constant 0 : index
    %6 = vector.load %arg1[%c0_9, %c0_10, %c0_11, %c0_12] : memref<1x16x16x8xf32, #tpu.memory_space<vmem>>, vector<1x16x16x8xf32>
    %7 = vector.shape_cast %6 : vector<1x16x16x8xf32> to vector<16x16x8xf32>
    %c1 = arith.constant 1 : index
    %c8 = arith.constant 8 : index
    %c0_13 = arith.constant 0 : index
    %8 = vector.load %arg10[%c1, %c8, %c0_13] : memref<18x25x16xf32, #tpu.memory_space<vmem>>, vector<16x16x8xf32>
    tpu.vector_store %arg10[%c1, %c8, %c0_13], %7 {strides = array<i32>} : memref<18x25x16xf32, #tpu.memory_space<vmem>>, vector<16x16x8xf32>,
    %c0_14 = arith.constant 0 : index
    %c0_15 = arith.constant 0 : index
    %c0_16 = arith.constant 0 : index
    %c0_17 = arith.constant 0 : index
    %9 = vector.load %arg2[%c0_14, %c0_15, %c0_16, %c0_17] : memref<1x16x16x8xf32, #tpu.memory_space<vmem>>, vector<1x16x16x8xf32>
    %10 = vector.shape_cast %9 : vector<1x16x16x8xf32> to vector<16x16x8xf32>
    %c1_18 = arith.constant 1 : index
    %c8_19 = arith.constant 8 : index
    %c8_20 = arith.constant 8 : index
    %11 = vector.load %arg10[%c1_18, %c8_19, %c8_20] : memref<18x25x16xf32, #tpu.memory_space<vmem>>, vector<16x16x8xf32>
    tpu.vector_store %arg10[%c1_18, %c8_19, %c8_20], %10 {strides = array<i32>} : memref<18x25x16xf32, #tpu.memory_space<vmem>>, vector<16x16x8xf32>,
    %c0_21 = arith.constant 0 : index
    %c7_22 = arith.constant 7 : index
    %c0_23 = arith.constant 0 : index
    %12 = vector.load %arg10[%c0_21, %c7_22, %c0_23] : memref<18x25x16xf32, #tpu.memory_space<vmem>>, vector<16x16x16xf32>
    %13 = vector.shape_cast %12 : vector<16x16x16xf32> to vector<256x16xf32>
    %c0_24 = arith.constant 0 : index
    %c0_25 = arith.constant 0 : index
    %14 = vector.load %arg11[%c0_24, %c0_25] : memref<256x144xf32, #tpu.memory_space<vmem>>, vector<256x16xf32>
    tpu.vector_store %arg11[%c0_24, %c0_25], %13 {strides = array<i32>} : memref<256x144xf32, #tpu.memory_space<vmem>>, vector<256x16xf32>,
    %c0_26 = arith.constant 0 : index
    %c8_27 = arith.constant 8 : index
    %c0_28 = arith.constant 0 : index
    %15 = vector.load %arg10[%c0_26, %c8_27, %c0_28] : memref<18x25x16xf32, #tpu.memory_space<vmem>>, vector<16x16x16xf32>
    %16 = vector.shape_cast %15 : vector<16x16x16xf32> to vector<256x16xf32>
    %c0_29 = arith.constant 0 : index
    %c16 = arith.constant 16 : index
    %17 = vector.load %arg11[%c0_29, %c16] : memref<256x144xf32, #tpu.memory_space<vmem>>, vector<256x16xf32>
    tpu.vector_store %arg11[%c0_29, %c16], %16 {strides = array<i32>} : memref<256x144xf32, #tpu.memory_space<vmem>>, vector<256x16xf32>,
    %c0_30 = arith.constant 0 : index
    %c9 = arith.constant 9 : index
    %c0_31 = arith.constant 0 : index
    %18 = vector.load %arg10[%c0_30, %c9, %c0_31] : memref<18x25x16xf32, #tpu.memory_space<vmem>>, vector<16x16x16xf32>
    %19 = vector.shape_cast %18 : vector<16x16x16xf32> to vector<256x16xf32>
    %c0_32 = arith.constant 0 : index
    %c32 = arith.constant 32 : index
    %20 = vector.load %arg11[%c0_32, %c32] : memref<256x144xf32, #tpu.memory_space<vmem>>, vector<256x16xf32>
    tpu.vector_store %arg11[%c0_32, %c32], %19 {strides = array<i32>} : memref<256x144xf32, #tpu.memory_space<vmem>>, vector<256x16xf32>,
    %c1_33 = arith.constant 1 : index
    %c7_34 = arith.constant 7 : index
    %c0_35 = arith.constant 0 : index
    %21 = vector.load %arg10[%c1_33, %c7_34, %c0_35] : memref<18x25x16xf32, #tpu.memory_space<vmem>>, vector<16x16x16xf32>
    %22 = vector.shape_cast %21 : vector<16x16x16xf32> to vector<256x16xf32>
    %c0_36 = arith.constant 0 : index
    %c48 = arith.constant 48 : index
    %23 = vector.load %arg11[%c0_36, %c48] : memref<256x144xf32, #tpu.memory_space<vmem>>, vector<256x16xf32>
    tpu.vector_store %arg11[%c0_36, %c48], %22 {strides = array<i32>} : memref<256x144xf32, #tpu.memory_space<vmem>>, vector<256x16xf32>,
    %c1_37 = arith.constant 1 : index
    %c8_38 = arith.constant 8 : index
    %c0_39 = arith.constant 0 : index
    %24 = vector.load %arg10[%c1_37, %c8_38, %c0_39] : memref<18x25x16xf32, #tpu.memory_space<vmem>>, vector<16x16x16xf32>
    %25 = vector.shape_cast %24 : vector<16x16x16xf32> to vector<256x16xf32>
    %c0_40 = arith.constant 0 : index
    %c64 = arith.constant 64 : index
    %26 = vector.load %arg11[%c0_40, %c64] : memref<256x144xf32, #tpu.memory_space<vmem>>, vector<256x16xf32>
    tpu.vector_store %arg11[%c0_40, %c64], %25 {strides = array<i32>} : memref<256x144xf32, #tpu.memory_space<vmem>>, vector<256x16xf32>,
    %c1_41 = arith.constant 1 : index
    %c9_42 = arith.constant 9 : index
    %c0_43 = arith.constant 0 : index
    %27 = vector.load %arg10[%c1_41, %c9_42, %c0_43] : memref<18x25x16xf32, #tpu.memory_space<vmem>>, vector<16x16x16xf32>
    %28 = vector.shape_cast %27 : vector<16x16x16xf32> to vector<256x16xf32>
    %c0_44 = arith.constant 0 : index
    %c80 = arith.constant 80 : index
    %29 = vector.load %arg11[%c0_44, %c80] : memref<256x144xf32, #tpu.memory_space<vmem>>, vector<256x16xf32>
    tpu.vector_store %arg11[%c0_44, %c80], %28 {strides = array<i32>} : memref<256x144xf32, #tpu.memory_space<vmem>>, vector<256x16xf32>,
    %c2 = arith.constant 2 : index
    %c7_45 = arith.constant 7 : index
    %c0_46 = arith.constant 0 : index
    %30 = vector.load %arg10[%c2, %c7_45, %c0_46] : memref<18x25x16xf32, #tpu.memory_space<vmem>>, vector<16x16x16xf32>
    %31 = vector.shape_cast %30 : vector<16x16x16xf32> to vector<256x16xf32>
    %c0_47 = arith.constant 0 : index
    %c96 = arith.constant 96 : index
    %32 = vector.load %arg11[%c0_47, %c96] : memref<256x144xf32, #tpu.memory_space<vmem>>, vector<256x16xf32>
    tpu.vector_store %arg11[%c0_47, %c96], %31 {strides = array<i32>} : memref<256x144xf32, #tpu.memory_space<vmem>>, vector<256x16xf32>,
    %c2_48 = arith.constant 2 : index
    %c8_49 = arith.constant 8 : index
    %c0_50 = arith.constant 0 : index
    %33 = vector.load %arg10[%c2_48, %c8_49, %c0_50] : memref<18x25x16xf32, #tpu.memory_space<vmem>>, vector<16x16x16xf32>
    %34 = vector.shape_cast %33 : vector<16x16x16xf32> to vector<256x16xf32>
    %c0_51 = arith.constant 0 : index
    %c112 = arith.constant 112 : index
    %35 = vector.load %arg11[%c0_51, %c112] : memref<256x144xf32, #tpu.memory_space<vmem>>, vector<256x16xf32>
    tpu.vector_store %arg11[%c0_51, %c112], %34 {strides = array<i32>} : memref<256x144xf32, #tpu.memory_space<vmem>>, vector<256x16xf32>,
    %c2_52 = arith.constant 2 : index
    %c9_53 = arith.constant 9 : index
    %c0_54 = arith.constant 0 : index
    %36 = vector.load %arg10[%c2_52, %c9_53, %c0_54] : memref<18x25x16xf32, #tpu.memory_space<vmem>>, vector<16x16x16xf32>
    %37 = vector.shape_cast %36 : vector<16x16x16xf32> to vector<256x16xf32>
    %c0_55 = arith.constant 0 : index
    %c128 = arith.constant 128 : index
    %38 = vector.load %arg11[%c0_55, %c128] : memref<256x144xf32, #tpu.memory_space<vmem>>, vector<256x16xf32>
    tpu.vector_store %arg11[%c0_55, %c128], %37 {strides = array<i32>} : memref<256x144xf32, #tpu.memory_space<vmem>>, vector<256x16xf32>,
    %c0_56 = arith.constant 0 : index
    %c0_57 = arith.constant 0 : index
    %39 = vector.load %arg11[%c0_56, %c0_57] : memref<256x144xf32, #tpu.memory_space<vmem>>, vector<256x144xf32>
    %c0_58 = arith.constant 0 : index
    %c0_59 = arith.constant 0 : index
    %40 = vector.load %arg3[%c0_58, %c0_59] : memref<144x16xf32, #tpu.memory_space<vmem>>, vector<144x16xf32>
    %cst_60 = arith.constant dense<0.000000e+00> : vector<256x16xf32>
    %41 = tpu.matmul %39, %40, %cst_60 {dimension_numbers = #tpu.dot_dimension_numbers<[1], [0], [0], [1], [0, 0, 1, 1], [], []>} : vector<256x144xf32>, vector<144x16xf32>, vector<256x16xf32> -> vector<256x16xf32>
    %c0_61 = arith.constant 0 : index
    %c0_62 = arith.constant 0 : index
    %42 = vector.load %arg4[%c0_61, %c0_62] : memref<1x16xf32, #tpu.memory_space<vmem>>, vector<1x16xf32>
    %43 = vector.broadcast %42 : vector<1x16xf32> to vector<256x16xf32>
    %44 = arith.mulf %41, %43 : vector<256x16xf32>
    %c0_63 = arith.constant 0 : index
    %c0_64 = arith.constant 0 : index
    %45 = vector.load %arg5[%c0_63, %c0_64] : memref<1x16xf32, #tpu.memory_space<vmem>>, vector<1x16xf32>
    %46 = vector.broadcast %45 : vector<1x16xf32> to vector<256x16xf32>
    %47 = arith.addf %44, %46 : vector<256x16xf32>
    %cst_65 = arith.constant 0.000000e+00 : f32
    %48 = vector.broadcast %cst_65 : f32 to vector<256x16xf32>
    %49 = arith.maximumf %47, %48 : vector<256x16xf32>
    %50 = vector.shape_cast %49 : vector<256x16xf32> to vector<16x16x16xf32>
    %c1_66 = arith.constant 1 : index
    %c8_67 = arith.constant 8 : index
    %c0_68 = arith.constant 0 : index
    %51 = vector.load %arg10[%c1_66, %c8_67, %c0_68] : memref<18x25x16xf32, #tpu.memory_space<vmem>>, vector<16x16x16xf32>
    tpu.vector_store %arg10[%c1_66, %c8_67, %c0_68], %50 {strides = array<i32>} : memref<18x25x16xf32, #tpu.memory_space<vmem>>, vector<16x16x16xf32>,
    %c0_69 = arith.constant 0 : index
    %c7_70 = arith.constant 7 : index
    %c0_71 = arith.constant 0 : index
    %52 = vector.load %arg10[%c0_69, %c7_70, %c0_71] : memref<18x25x16xf32, #tpu.memory_space<vmem>>, vector<16x16x16xf32>
    %53 = vector.shape_cast %52 : vector<16x16x16xf32> to vector<256x16xf32>
    %c0_72 = arith.constant 0 : index
    %c0_73 = arith.constant 0 : index
    %54 = vector.load %arg11[%c0_72, %c0_73] : memref<256x144xf32, #tpu.memory_space<vmem>>, vector<256x16xf32>
    tpu.vector_store %arg11[%c0_72, %c0_73], %53 {strides = array<i32>} : memref<256x144xf32, #tpu.memory_space<vmem>>, vector<256x16xf32>,
    %c0_74 = arith.constant 0 : index
    %c8_75 = arith.constant 8 : index
    %c0_76 = arith.constant 0 : index
    %55 = vector.load %arg10[%c0_74, %c8_75, %c0_76] : memref<18x25x16xf32, #tpu.memory_space<vmem>>, vector<16x16x16xf32>
    %56 = vector.shape_cast %55 : vector<16x16x16xf32> to vector<256x16xf32>
    %c0_77 = arith.constant 0 : index
    %c16_78 = arith.constant 16 : index
    %57 = vector.load %arg11[%c0_77, %c16_78] : memref<256x144xf32, #tpu.memory_space<vmem>>, vector<256x16xf32>
    tpu.vector_store %arg11[%c0_77, %c16_78], %56 {strides = array<i32>} : memref<256x144xf32, #tpu.memory_space<vmem>>, vector<256x16xf32>,
    %c0_79 = arith.constant 0 : index
    %c9_80 = arith.constant 9 : index
    %c0_81 = arith.constant 0 : index
    %58 = vector.load %arg10[%c0_79, %c9_80, %c0_81] : memref<18x25x16xf32, #tpu.memory_space<vmem>>, vector<16x16x16xf32>
    %59 = vector.shape_cast %58 : vector<16x16x16xf32> to vector<256x16xf32>
    %c0_82 = arith.constant 0 : index
    %c32_83 = arith.constant 32 : index
    %60 = vector.load %arg11[%c0_82, %c32_83] : memref<256x144xf32, #tpu.memory_space<vmem>>, vector<256x16xf32>
    tpu.vector_store %arg11[%c0_82, %c32_83], %59 {strides = array<i32>} : memref<256x144xf32, #tpu.memory_space<vmem>>, vector<256x16xf32>,
    %c1_84 = arith.constant 1 : index
    %c7_85 = arith.constant 7 : index
    %c0_86 = arith.constant 0 : index
    %61 = vector.load %arg10[%c1_84, %c7_85, %c0_86] : memref<18x25x16xf32, #tpu.memory_space<vmem>>, vector<16x16x16xf32>
    %62 = vector.shape_cast %61 : vector<16x16x16xf32> to vector<256x16xf32>
    %c0_87 = arith.constant 0 : index
    %c48_88 = arith.constant 48 : index
    %63 = vector.load %arg11[%c0_87, %c48_88] : memref<256x144xf32, #tpu.memory_space<vmem>>, vector<256x16xf32>
    tpu.vector_store %arg11[%c0_87, %c48_88], %62 {strides = array<i32>} : memref<256x144xf32, #tpu.memory_space<vmem>>, vector<256x16xf32>,
    %c1_89 = arith.constant 1 : index
    %c8_90 = arith.constant 8 : index
    %c0_91 = arith.constant 0 : index
    %64 = vector.load %arg10[%c1_89, %c8_90, %c0_91] : memref<18x25x16xf32, #tpu.memory_space<vmem>>, vector<16x16x16xf32>
    %65 = vector.shape_cast %64 : vector<16x16x16xf32> to vector<256x16xf32>
    %c0_92 = arith.constant 0 : index
    %c64_93 = arith.constant 64 : index
    %66 = vector.load %arg11[%c0_92, %c64_93] : memref<256x144xf32, #tpu.memory_space<vmem>>, vector<256x16xf32>
    tpu.vector_store %arg11[%c0_92, %c64_93], %65 {strides = array<i32>} : memref<256x144xf32, #tpu.memory_space<vmem>>, vector<256x16xf32>,
    %c1_94 = arith.constant 1 : index
    %c9_95 = arith.constant 9 : index
    %c0_96 = arith.constant 0 : index
    %67 = vector.load %arg10[%c1_94, %c9_95, %c0_96] : memref<18x25x16xf32, #tpu.memory_space<vmem>>, vector<16x16x16xf32>
    %68 = vector.shape_cast %67 : vector<16x16x16xf32> to vector<256x16xf32>
    %c0_97 = arith.constant 0 : index
    %c80_98 = arith.constant 80 : index
    %69 = vector.load %arg11[%c0_97, %c80_98] : memref<256x144xf32, #tpu.memory_space<vmem>>, vector<256x16xf32>
    tpu.vector_store %arg11[%c0_97, %c80_98], %68 {strides = array<i32>} : memref<256x144xf32, #tpu.memory_space<vmem>>, vector<256x16xf32>,
    %c2_99 = arith.constant 2 : index
    %c7_100 = arith.constant 7 : index
    %c0_101 = arith.constant 0 : index
    %70 = vector.load %arg10[%c2_99, %c7_100, %c0_101] : memref<18x25x16xf32, #tpu.memory_space<vmem>>, vector<16x16x16xf32>
    %71 = vector.shape_cast %70 : vector<16x16x16xf32> to vector<256x16xf32>
    %c0_102 = arith.constant 0 : index
    %c96_103 = arith.constant 96 : index
    %72 = vector.load %arg11[%c0_102, %c96_103] : memref<256x144xf32, #tpu.memory_space<vmem>>, vector<256x16xf32>
    tpu.vector_store %arg11[%c0_102, %c96_103], %71 {strides = array<i32>} : memref<256x144xf32, #tpu.memory_space<vmem>>, vector<256x16xf32>,
    %c2_104 = arith.constant 2 : index
    %c8_105 = arith.constant 8 : index
    %c0_106 = arith.constant 0 : index
    %73 = vector.load %arg10[%c2_104, %c8_105, %c0_106] : memref<18x25x16xf32, #tpu.memory_space<vmem>>, vector<16x16x16xf32>
    %74 = vector.shape_cast %73 : vector<16x16x16xf32> to vector<256x16xf32>
    %c0_107 = arith.constant 0 : index
    %c112_108 = arith.constant 112 : index
    %75 = vector.load %arg11[%c0_107, %c112_108] : memref<256x144xf32, #tpu.memory_space<vmem>>, vector<256x16xf32>
    tpu.vector_store %arg11[%c0_107, %c112_108], %74 {strides = array<i32>} : memref<256x144xf32, #tpu.memory_space<vmem>>, vector<256x16xf32>,
    %c2_109 = arith.constant 2 : index
    %c9_110 = arith.constant 9 : index
    %c0_111 = arith.constant 0 : index
    %76 = vector.load %arg10[%c2_109, %c9_110, %c0_111] : memref<18x25x16xf32, #tpu.memory_space<vmem>>, vector<16x16x16xf32>
    %77 = vector.shape_cast %76 : vector<16x16x16xf32> to vector<256x16xf32>
    %c0_112 = arith.constant 0 : index
    %c128_113 = arith.constant 128 : index
    %78 = vector.load %arg11[%c0_112, %c128_113] : memref<256x144xf32, #tpu.memory_space<vmem>>, vector<256x16xf32>
    tpu.vector_store %arg11[%c0_112, %c128_113], %77 {strides = array<i32>} : memref<256x144xf32, #tpu.memory_space<vmem>>, vector<256x16xf32>,
    %c0_114 = arith.constant 0 : index
    %c0_115 = arith.constant 0 : index
    %79 = vector.load %arg11[%c0_114, %c0_115] : memref<256x144xf32, #tpu.memory_space<vmem>>, vector<256x144xf32>
    %c0_116 = arith.constant 0 : index
    %c0_117 = arith.constant 0 : index
    %80 = vector.load %arg6[%c0_116, %c0_117] : memref<144x16xf32, #tpu.memory_space<vmem>>, vector<144x16xf32>
    %cst_118 = arith.constant dense<0.000000e+00> : vector<256x16xf32>
    %81 = tpu.matmul %79, %80, %cst_118 {dimension_numbers = #tpu.dot_dimension_numbers<[1], [0], [0], [1], [0, 0, 1, 1], [], []>} : vector<256x144xf32>, vector<144x16xf32>, vector<256x16xf32> -> vector<256x16xf32>
    %c0_119 = arith.constant 0 : index
    %c0_120 = arith.constant 0 : index
    %82 = vector.load %arg7[%c0_119, %c0_120] : memref<1x16xf32, #tpu.memory_space<vmem>>, vector<1x16xf32>
    %83 = vector.broadcast %82 : vector<1x16xf32> to vector<256x16xf32>
    %84 = arith.mulf %81, %83 : vector<256x16xf32>
    %c0_121 = arith.constant 0 : index
    %c0_122 = arith.constant 0 : index
    %85 = vector.load %arg8[%c0_121, %c0_122] : memref<1x16xf32, #tpu.memory_space<vmem>>, vector<1x16xf32>
    %86 = vector.broadcast %85 : vector<1x16xf32> to vector<256x16xf32>
    %87 = arith.addf %84, %86 : vector<256x16xf32>
    %cst_123 = arith.constant 0.000000e+00 : f32
    %88 = vector.broadcast %cst_123 : f32 to vector<256x16xf32>
    %89 = arith.maximumf %87, %88 : vector<256x16xf32>
    %90 = vector.shape_cast %89 : vector<256x16xf32> to vector<16x16x16xf32>
    %c0_124 = arith.constant 0 : index
    %c0_125 = arith.constant 0 : index
    %c0_126 = arith.constant 0 : index
    %c0_127 = arith.constant 0 : index
    %91 = vector.load %arg9[%c0_124, %c0_125, %c0_126, %c0_127] : memref<1x16x16x16xf32, #tpu.memory_space<vmem>>, vector<1x16x16x16xf32>
    %92 = vector.shape_cast %91 : vector<1x16x16x16xf32> to vector<16x16x16xf32>
    %93 = vector.shape_cast %90 : vector<16x16x16xf32> to vector<1x16x16x16xf32>
    tpu.vector_store %arg9[%c0_124, %c0_125, %c0_126, %c0_127], %93 {strides = array<i32>} : memref<1x16x16x16xf32, #tpu.memory_space<vmem>>, vector<1x16x16x16xf32>,
    return
  }
  func.func @transform_0(%arg0: i32) -> (i32, i32, i32, i32) {
    %c0_i32 = arith.constant 0 : i32
    %c0_i32_0 = arith.constant 0 : i32
    %c0_i32_1 = arith.constant 0 : i32
    %c0_i32_2 = arith.constant 0 : i32
    return %arg0, %c0_i32, %c0_i32_0, %c0_i32_1 : i32, i32, i32, i32
  }
  func.func @transform_1(%arg0: i32) -> (i32, i32, i32, i32) {
    %c0_i32 = arith.constant 0 : i32
    %c0_i32_0 = arith.constant 0 : i32
    %c0_i32_1 = arith.constant 0 : i32
    %c0_i32_2 = arith.constant 0 : i32
    return %arg0, %c0_i32, %c0_i32_0, %c0_i32_1 : i32, i32, i32, i32
  }
  func.func @transform_2(%arg0: i32) -> (i32, i32) {
    %c0_i32 = arith.constant 0 : i32
    %c0_i32_0 = arith.constant 0 : i32
    %c0_i32_1 = arith.constant 0 : i32
    return %c0_i32, %c0_i32_0 : i32, i32
  }
  func.func @transform_3(%arg0: i32) -> (i32, i32) {
    %c0_i32 = arith.constant 0 : i32
    %c0_i32_0 = arith.constant 0 : i32
    %c0_i32_1 = arith.constant 0 : i32
    return %c0_i32, %c0_i32_0 : i32, i32
  }
  func.func @transform_4(%arg0: i32) -> (i32, i32) {
    %c0_i32 = arith.constant 0 : i32
    %c0_i32_0 = arith.constant 0 : i32
    %c0_i32_1 = arith.constant 0 : i32
    return %c0_i32, %c0_i32_0 : i32, i32
  }
  func.func @transform_5(%arg0: i32) -> (i32, i32) {
    %c0_i32 = arith.constant 0 : i32
    %c0_i32_0 = arith.constant 0 : i32
    %c0_i32_1 = arith.constant 0 : i32
    return %c0_i32, %c0_i32_0 : i32, i32
  }
  func.func @transform_6(%arg0: i32) -> (i32, i32) {
    %c0_i32 = arith.constant 0 : i32
    %c0_i32_0 = arith.constant 0 : i32
    %c0_i32_1 = arith.constant 0 : i32
    return %c0_i32, %c0_i32_0 : i32, i32
  }
  func.func @transform_7(%arg0: i32) -> (i32, i32) {
    %c0_i32 = arith.constant 0 : i32
    %c0_i32_0 = arith.constant 0 : i32
    %c0_i32_1 = arith.constant 0 : i32
    return %c0_i32, %c0_i32_0 : i32, i32
  }
  func.func @transform_8(%arg0: i32) -> (i32, i32, i32, i32) {
    %c0_i32 = arith.constant 0 : i32
    %c0_i32_0 = arith.constant 0 : i32
    %c0_i32_1 = arith.constant 0 : i32
    %c0_i32_2 = arith.constant 0 : i32
    return %arg0, %c0_i32, %c0_i32_0, %c0_i32_1 : i32, i32, i32, i32
  }
}

</mosaic_0001>

<bundles_post_ra>
// kernel: upblock_forward_nchw.2
= control target key start
LH: loop header
LB: loop body
LE: loop exit
PB: predicated region body
PF: predicated region fallthrough
CT: control target
= control target key end

     0   :  { %s618_s12 = smov 0   ;;  %s698_s0 = inlined_call_operand.vmem [shape: f32[2,64,8], index: 0, kind: input, shape index: {}]   ;;  %s699_s1 = inlined_call_operand.vmem [shape: f32[2,8,16], index: 1, kind: input, shape index: {}]   ;;  %s700_s2 = inlined_call_operand.vmem [shape: f32[1,16], index: 2, kind: input, shape index: {}]   ;;  %s701_s3 = inlined_call_operand.vmem [shape: f32[2,8,2,8,16], index: 3, kind: output, shape index: {}]  }
   0x1 LB: > { %s497_s13 = sadd.s32 4294967295, %s596_s12   ;;  %p501_p0 = scmp.ge.s32.totalorder %s596_s12, 1  ;;  %s596_s12 = sphi %s618_s12, %s13_s12  }
   0x2   : > { %p137_p1 = scmp.lt.s32.totalorder %s596_s12, 3 }
   0x4   : > { %p138_p2 = pnand %p501_p0, %p137_p1 }
   0x5   : > { %p161_p3 = scmp.lt.s32.totalorder (!%p138_p2), %s497_s13, 1 }
   0x6   : > { %141 = sbr.rel (%p138_p2) target bundleno = 226 (0xe2), region = 32 }
   0xb   : > { %v180_v0 = vld [vmem:[%s699_s1] sm:$0xff]  ;;  %v515_v1 = vld [vmem:[%s699_s1 + $0x8] sm:$0xff]  ;;  %s703_s13 = smov (!%p161_p3, %s497_s13), 1  ;;  %vm187_vm0 = vcmask 64512   ;;  %vm317_vm1 = vcmask 130048  }
   0xc   : > { %554 = vmatprep.subr.mxu0 %v180_v0  ;;  %568 = vmatprep.subr.mxu1 %v515_v1  ;;  %s534_s18 = sshll.u32 %s703_s13, 6  ;;  %s535_s22 = sshll.u32 %s703_s13, 7  ;;  %v506_v10 = vld [vmem:[%s700_s2] ss:$0 sm:$0xff] }
   0xd   : > { %555 = vmatpush3.msra.mxu0 %v180_v0  ;;  %569 = vmatpush3.msra.mxu1 %v515_v1  ;;  %s165_s21 = scalar_lea.vmem %s698_s0, %s534_s18  ;;  %s661_s27 = scalar_lea.vmem %s701_s3, %s535_s22 }
   0xe   : > { %v171_v2 = vld [vmem:[%s165_s21] sm:$0xff]  ;;  %v172_v3 = vld [vmem:[%s165_s21 + $0x8] sm:$0xff]  ;;  %v173_v4 = vld [vmem:[%s165_s21 + $0x10] sm:$0xff] }
   0xf   : > { %556 = vmatprep.mubr.msk.f32.mxu0 %vm187_vm0, %v171_v2  ;;  %570 = vmatprep.mubr.msk.f32.mxu1 %vm187_vm0, %v171_v2  ;;  %v174_v5 = vld [vmem:[%s165_s21 + $0x18] sm:$0xff]  ;;  %v175_v6 = vld [vmem:[%s165_s21 + $0x20] sm:$0xff]  ;;  %v176_v7 = vld [vmem:[%s165_s21 + $0x28] sm:$0xff] }
  0x10   : > { %557 = vmatmul.mubr.msk.f32.vlgmr.msra.gmra.mxu0 %vm187_vm0, %v172_v3  ;;  %571 = vmatmul.mubr.msk.f32.vlgmr.msra.gmra.mxu1 %vm187_vm0, %v172_v3  ;;  %v177_v8 = vld [vmem:[%s165_s21 + $0x30] sm:$0xff]  ;;  %v178_v9 = vld [vmem:[%s165_s21 + $0x38] sm:$0xff] }
  0x11   : > { %559 = vmatprep.mubr.msk.f32.mxu0 %vm187_vm0, %v173_v4  ;;  %573 = vmatprep.mubr.msk.f32.mxu1 %vm187_vm0, %v173_v4 }
  0x14   : > { %560 = vmatmul.mubr.msk.f32.gmra.mxu0 %vm187_vm0, %v174_v5  ;;  %574 = vmatmul.mubr.msk.f32.gmra.mxu1 %vm187_vm0, %v174_v5 }
  0x15   : > { %562 = vmatprep.mubr.msk.f32.mxu0 %vm187_vm0, %v175_v6  ;;  %576 = vmatprep.mubr.msk.f32.mxu1 %vm187_vm0, %v175_v6 }
  0x18   : > { %563 = vmatmul.mubr.msk.f32.gmra.mxu0 %vm187_vm0, %v176_v7  ;;  %577 = vmatmul.mubr.msk.f32.gmra.mxu1 %vm187_vm0, %v176_v7 }
  0x19   : > { %565 = vmatprep.mubr.msk.f32.mxu0 %vm187_vm0, %v177_v8  ;;  %579 = vmatprep.mubr.msk.f32.mxu1 %vm187_vm0, %v177_v8 }
  0x1c   : > { %566 = vmatmul.mubr.msk.f32.gmra.mxu0 %vm187_vm0, %v178_v9  ;;  %580 = vmatmul.mubr.msk.f32.gmra.mxu1 %vm187_vm0, %v178_v9 }
  0xd0   : > { %v558_v11 = vpop.f32.mrf.mxu0  ;;  %v572_v12 = vpop.f32.mrf.mxu1 }
  0xd1   : > { %v284_v13 = vadd.f32 %v558_v11, %v506_v10  ;;  %v400_v14 = vadd.f32 %v572_v12, %v506_v10 }
  0xd2   : > { %v278_v15 = vpop.f32.mrf.mxu0  ;;  %v394_v16 = vpop.f32.mrf.mxu1 }
  0xd3   : > { %319 = vst.msk [vmem:[%s661_s27 + $0x10] sm:$0xff] %vm317_vm1, %v284_v13  ;;  %525 = vst.msk [vmem:[%s661_s27 + $0x18] sm:$0xff] %vm317_vm1, %v400_v14  ;;  %v279_v17 = vadd.f32 %v506_v10, %v278_v15  ;;  %v395_v18 = vadd.f32 %v506_v10, %v394_v16 }
  0xd4   : > { %v561_v19 = vpop.f32.mrf.mxu0  ;;  %v575_v20 = vpop.f32.mrf.mxu1 }
  0xd5   : > { %318 = vst.msk [vmem:[%s661_s27] sm:$0xff] %vm317_vm1, %v279_v17  ;;  %524 = vst.msk [vmem:[%s661_s27 + $0x8] sm:$0xff] %vm317_vm1, %v395_v18  ;;  %v294_v21 = vadd.f32 %v561_v19, %v506_v10  ;;  %v410_v22 = vadd.f32 %v575_v20, %v506_v10 }
  0xd6   : > { %v288_v23 = vpop.f32.mrf.mxu0  ;;  %v404_v24 = vpop.f32.mrf.mxu1 }
  0xd7   : > { %321 = vst.msk [vmem:[%s661_s27 + $0x30] sm:$0xff] %vm317_vm1, %v294_v21  ;;  %527 = vst.msk [vmem:[%s661_s27 + $0x38] sm:$0xff] %vm317_vm1, %v410_v22  ;;  %v289_v25 = vadd.f32 %v506_v10, %v288_v23  ;;  %v405_v26 = vadd.f32 %v506_v10, %v404_v24 }
  0xd8   : > { %v564_v27 = vpop.f32.mrf.mxu0  ;;  %v578_v28 = vpop.f32.mrf.mxu1 }
  0xd9   : > { %320 = vst.msk [vmem:[%s661_s27 + $0x20] sm:$0xff] %vm317_vm1, %v289_v25  ;;  %526 = vst.msk [vmem:[%s661_s27 + $0x28] sm:$0xff] %vm317_vm1, %v405_v26  ;;  %v304_v29 = vadd.f32 %v564_v27, %v506_v10  ;;  %v420_v30 = vadd.f32 %v578_v28, %v506_v10 }
  0xda   : > { %v298_v31 = vpop.f32.mrf.mxu0  ;;  %v414_v32 = vpop.f32.mrf.mxu1 }
  0xdb   : > { %323 = vst.msk [vmem:[%s661_s27 + $0x50] sm:$0xff] %vm317_vm1, %v304_v29  ;;  %529 = vst.msk [vmem:[%s661_s27 + $0x58] sm:$0xff] %vm317_vm1, %v420_v30  ;;  %v299_v33 = vadd.f32 %v506_v10, %v298_v31  ;;  %v415_v34 = vadd.f32 %v506_v10, %v414_v32 }
  0xdc   : > { %v567_v35 = vpop.f32.mrf.mxu0  ;;  %v581_v36 = vpop.f32.mrf.mxu1 }
  0xdd   : > { %322 = vst.msk [vmem:[%s661_s27 + $0x40] sm:$0xff] %vm317_vm1, %v299_v33  ;;  %528 = vst.msk [vmem:[%s661_s27 + $0x48] sm:$0xff] %vm317_vm1, %v415_v34  ;;  %v314_v37 = vadd.f32 %v567_v35, %v506_v10  ;;  %v430_v38 = vadd.f32 %v581_v36, %v506_v10 }
  0xde   : > { %v308_v39 = vpop.f32.mrf.mxu0  ;;  %v424_v40 = vpop.f32.mrf.mxu1 }
  0xdf   : > { %325 = vst.msk [vmem:[%s661_s27 + $0x70] sm:$0xff] %vm317_vm1, %v314_v37  ;;  %531 = vst.msk [vmem:[%s661_s27 + $0x78] sm:$0xff] %vm317_vm1, %v430_v38  ;;  %v309_v41 = vadd.f32 %v506_v10, %v308_v39  ;;  %v425_v42 = vadd.f32 %v506_v10, %v424_v40 }
  0xe1   : > { %324 = vst.msk [vmem:[%s661_s27 + $0x60] sm:$0xff] %vm317_vm1, %v309_v41  ;;  %530 = vst.msk [vmem:[%s661_s27 + $0x68] sm:$0xff] %vm317_vm1, %v425_v42 }
  0xe2 PF: > { %s13_s12 = sadd.s32 1, %s596_s12  }
  0xe3   : > { %p10_p4 = scmp.ge.s32.totalorder %s13_s12, 4  }
  0xe5   :  { %12 = sbr.rel (!%p10_p4) target bundleno = 1 (0x1), region = 64 }

// kernel: upblock_forward_nchw.3
= control target key start
LH: loop header
LB: loop body
LE: loop exit
PB: predicated region body
PF: predicated region fallthrough
CT: control target
= control target key end

     0   :  { %s4906_s27 = smov 0   ;;  %s7369_s0 = inlined_call_operand.vmem [shape: f32[2,16,16,8], index: 0, kind: input, shape index: {}]   ;;  %s7370_s1 = inlined_call_operand.vmem [shape: f32[2,16,16,8], index: 1, kind: input, shape index: {}]   ;;  %s7371_s2 = inlined_call_operand.vmem [shape: f32[144,16], index: 2, kind: input, shape index: {}]   ;;  %s7372_s3 = inlined_call_operand.vmem [shape: f32[1,16], index: 3, kind: input, shape index: {}]   ;;  %s7373_s4 = inlined_call_operand.vmem [shape: f32[1,16], index: 4, kind: input, shape index: {}]   ;;  %s7374_s5 = inlined_call_operand.vmem [shape: f32[144,16], index: 5, kind: input, shape index: {}]   ;;  %s7375_s6 = inlined_call_operand.vmem [shape: f32[1,16], index: 6, kind: input, shape index: {}]   ;;  %s7376_s7 = inlined_call_operand.vmem [shape: f32[1,16], index: 7, kind: input, shape index: {}]   ;;  %s7377_s8 = inlined_call_operand.vmem [shape: f32[2,16,16,16], index: 8, kind: output, shape index: {}]  }
   0x1 LB: > { %s4741_s28 = sadd.s32 4294967295, %s4850_s27   ;;  %p4745_p0 = scmp.ge.s32.totalorder %s4850_s27, 1  ;;  %s4850_s27 = sphi %s4906_s27, %s18_s27  }
   0x2   : > { %p272_p1 = scmp.lt.s32.totalorder %s4850_s27, 3 }
   0x4   : > { %p273_p2 = pnand %p4745_p0, %p272_p1 }
   0x6   : > { %276 = sbr.rel (%p273_p2) target bundleno = 1573 (0x625), region = 52 }
   0xb   : > { %p311_p3 = scmp.lt.s32.totalorder %s4741_s28, 1  ;;  %vm326_vm0 = vcmask 130048   ;;  %v7378_v0 = vmov 0.0   ;;  %vm330_vm1 = vcmask 122880   ;;  %s4853_s11 = smov 8   ;;  %vm406_vm2 = vcmask 64512  }
   0xc   : > { %328 = vst.msk [vmem:[#allocation2 + $0x8] sm:$0xff] %vm326_vm0, %v7378_v0  ;;  %327 = vst.msk [vmem:[#allocation2] sm:$0xff] %vm326_vm0, %v7378_v0  ;;  %2290 = vmatprep.subr.mxu0 %v7378_v0  ;;  %4307 = vmatprep.subr.mxu1 %v7378_v0  ;;  %s4854_s15 = smov 16   ;;  %s4855_s16 = smov 32   ;;  %vm599_vm3 = vcmask 130112   ;;  %vm856_vm4 = vcmask 261248  }
   0xd   : > { %329 = vst.msk [vmem:[#allocation2 + $0x10] sm:$0xff] %vm326_vm0, %v7378_v0  ;;  %333 = vst.msk [vmem:[#allocation2 + $0x220] sm:$0xff] %vm326_vm0, %v7378_v0  ;;  %s7473_s28 = smov (!%p311_p3, %s4741_s28), 1  ;;  %vm1049_vm5 = vcmask 392448   ;;  %s4856_s17 = smov 48   ;;  %vm1242_vm6 = vcmask 523648  }
   0xe   : > { %334 = vst.msk [vmem:[#allocation2 + $0x228] sm:$0xff] %vm326_vm0, %v7378_v0  ;;  %335 = vst.msk [vmem:[#allocation2 + $0x230] sm:$0xff] %vm326_vm0, %v7378_v0  ;;  %s5007_s29 = sshll.u32 %s7473_s28, 8  ;;  %s4857_s22 = smov 64   ;;  %vm1435_vm7 = vcmask 654848   ;;  %vm1628_vm8 = vcmask 786048  }
   0xf   : > { %357 = vst.msk [vmem:[#allocation2 + $0x58] sm:$0x1] %vm330_vm1, %v7378_v0  ;;  %331 = vst.msk [vmem:[#allocation2 + $0x18] sm:$0x1] %vm330_vm1, %v7378_v0  ;;  %s5013_s10 = scalar_lea.vmem %s7370_s1, %s5007_s29  ;;  %s5031_s14 = scalar_lea.vmem %s7369_s0, %s5007_s29  ;;  %vm1822_vm9 = vcmask 917248   ;;  %vm2015_vm10 = vcmask 1048448  }
  0x10   : > { %336 = vst.msk [vmem:[#allocation2 + $0x238] sm:$0x1] %vm330_vm1, %v7378_v0  ;;  %337 = vst.msk [vmem:[#allocation2 + $0x7] sm:$0x1] %vm330_vm1, %v7378_v0  ;;  %v441_v1 = vld [vmem:[%s5013_s10 + $0x10] sm:$0xff]  ;;  %v439_v2 = vld [vmem:[%s5013_s10] sm:$0xff]  ;;  %s7089_s20 = scalar_lea.vmem %s7377_s8, %s5007_s29 }
  0x11   : > { %338 = vst.msk [vmem:[#allocation2 + $0x27] sm:$0x1] %vm330_vm1, %v7378_v0  ;;  %339 = vst.msk [vmem:[#allocation2 + $0x47] sm:$0x1] %vm330_vm1, %v7378_v0  ;;  %507 = vrot.lane.b32.xlu1 %v441_v1, %s4853_s11  ;;  %503 = vrot.lane.b32.xlu0 %v439_v2, %s4853_s11  ;;  %v442_v3 = vld [vmem:[%s5013_s10 + $0x18] sm:$0xff]  ;;  %v440_v4 = vld [vmem:[%s5013_s10 + $0x8] sm:$0xff] }
  0x12   : > { %340 = vst.msk [vmem:[#allocation2 + $0x67] sm:$0x1] %vm330_vm1, %v7378_v0  ;;  %341 = vst.msk [vmem:[#allocation2 + $0x87] sm:$0x1] %vm330_vm1, %v7378_v0  ;;  %v443_v5 = vld [vmem:[%s5013_s10 + $0x20] sm:$0xff]  ;;  %v444_v6 = vld [vmem:[%s5013_s10 + $0x28] sm:$0xff] }
  0x13   : > { %342 = vst.msk [vmem:[#allocation2 + $0xa7] sm:$0x1] %vm330_vm1, %v7378_v0  ;;  %343 = vst.msk [vmem:[#allocation2 + $0xc7] sm:$0x1] %vm330_vm1, %v7378_v0  ;;  %v445_v7 = vld [vmem:[%s5013_s10 + $0x30] sm:$0xff]  ;;  %v446_v8 = vld [vmem:[%s5013_s10 + $0x38] sm:$0xff] }
  0x14   : > { %344 = vst.msk [vmem:[#allocation2 + $0xe7] sm:$0x1] %vm330_vm1, %v7378_v0  ;;  %345 = vst.msk [vmem:[#allocation2 + $0x107] sm:$0x1] %vm330_vm1, %v7378_v0  ;;  %v375_v9 = vld [vmem:[%s5031_s14 + $0x10] sm:$0xff]  ;;  %v447_v10 = vld [vmem:[%s5013_s10 + $0x40] sm:$0xff] }
  0x15   : > { %346 = vst.msk [vmem:[#allocation2 + $0x127] sm:$0x1] %vm330_vm1, %v7378_v0  ;;  %347 = vst.msk [vmem:[#allocation2 + $0x147] sm:$0x1] %vm330_vm1, %v7378_v0  ;;  %509 = vrot.lane.b32.xlu1 %v442_v3, %s4853_s11  ;;  %505 = vrot.lane.b32.xlu0 %v440_v4, %s4853_s11  ;;  %v373_v11 = vld [vmem:[%s5031_s14] sm:$0xff]  ;;  %v376_v12 = vld [vmem:[%s5031_s14 + $0x18] sm:$0xff] }
  0x16   : > { %348 = vst.msk [vmem:[#allocation2 + $0x167] sm:$0x1] %vm330_vm1, %v7378_v0  ;;  %349 = vst.msk [vmem:[#allocation2 + $0x187] sm:$0x1] %vm330_vm1, %v7378_v0  ;;  %v374_v13 = vld [vmem:[%s5031_s14 + $0x8] sm:$0xff]  ;;  %v377_v15 = vld [vmem:[%s5031_s14 + $0x20] sm:$0xff] }
  0x17   : > { %350 = vst.msk [vmem:[#allocation2 + $0x1a7] sm:$0x1] %vm330_vm1, %v7378_v0  ;;  %351 = vst.msk [vmem:[#allocation2 + $0x1c7] sm:$0x1] %vm330_vm1, %v7378_v0  ;;  %v448_v14 = vld [vmem:[%s5013_s10 + $0x48] sm:$0xff]  ;;  %v379_v17 = vld [vmem:[%s5031_s14 + $0x30] sm:$0xff] }
  0x18   : > { %352 = vst.msk [vmem:[#allocation2 + $0x1e7] sm:$0x1] %vm330_vm1, %v7378_v0  ;;  %353 = vst.msk [vmem:[#allocation2 + $0x207] sm:$0x1] %vm330_vm1, %v7378_v0  ;;  %v378_v16 = vld [vmem:[%s5031_s14 + $0x28] sm:$0xff]  ;;  %v380_v18 = vld [vmem:[%s5031_s14 + $0x38] sm:$0xff] }
  0x19   : > { %354 = vst.msk [vmem:[#allocation2 + $0x227] sm:$0x1] %vm330_vm1, %v7378_v0  ;;  %356 = vst.msk [vmem:[#allocation2 + $0x38] sm:$0x1] %vm330_vm1, %v7378_v0  ;;  %511 = vrot.lane.b32.xlu0 %v443_v5, %s4853_s11  ;;  %513 = vrot.lane.b32.xlu1 %v444_v6, %s4853_s11  ;;  %v381_v19 = vld [vmem:[%s5031_s14 + $0x40] sm:$0xff]  ;;  %v382_v20 = vld [vmem:[%s5031_s14 + $0x48] sm:$0xff] }
  0x1a   : > { %358 = vst.msk [vmem:[#allocation2 + $0x78] sm:$0x1] %vm330_vm1, %v7378_v0  ;;  %359 = vst.msk [vmem:[#allocation2 + $0x98] sm:$0x1] %vm330_vm1, %v7378_v0  ;;  %v383_v21 = vld [vmem:[%s5031_s14 + $0x50] sm:$0xff]  ;;  %v384_v22 = vld [vmem:[%s5031_s14 + $0x58] sm:$0xff] }
  0x1b   : > { %360 = vst.msk [vmem:[#allocation2 + $0xb8] sm:$0x1] %vm330_vm1, %v7378_v0  ;;  %361 = vst.msk [vmem:[#allocation2 + $0xd8] sm:$0x1] %vm330_vm1, %v7378_v0  ;;  %v385_v23 = vld [vmem:[%s5031_s14 + $0x60] sm:$0xff]  ;;  %v386_v24 = vld [vmem:[%s5031_s14 + $0x68] sm:$0xff] }
  0x1c   : > { %362 = vst.msk [vmem:[#allocation2 + $0xf8] sm:$0x1] %vm330_vm1, %v7378_v0  ;;  %363 = vst.msk [vmem:[#allocation2 + $0x118] sm:$0x1] %vm330_vm1, %v7378_v0  ;;  %v387_v25 = vld [vmem:[%s5031_s14 + $0x70] sm:$0xff]  ;;  %v450_v27 = vld [vmem:[%s5013_s10 + $0x58] sm:$0xff] }
  0x1d   : > { %364 = vst.msk [vmem:[#allocation2 + $0x138] sm:$0x1] %vm330_vm1, %v7378_v0  ;;  %365 = vst.msk [vmem:[#allocation2 + $0x158] sm:$0x1] %vm330_vm1, %v7378_v0  ;;  %515 = vrot.lane.b32.xlu0 %v445_v7, %s4853_s11  ;;  %517 = vrot.lane.b32.xlu1 %v446_v8, %s4853_s11  ;;  %v449_v26 = vld [vmem:[%s5013_s10 + $0x50] sm:$0xff]  ;;  %v388_v28 = vld [vmem:[%s5031_s14 + $0x78] sm:$0xff] }
  0x1e   : > { %366 = vst.msk [vmem:[#allocation2 + $0x178] sm:$0x1] %vm330_vm1, %v7378_v0  ;;  %367 = vst.msk [vmem:[#allocation2 + $0x198] sm:$0x1] %vm330_vm1, %v7378_v0  ;;  %v389_v29 = vld [vmem:[%s5031_s14 + $0x80] sm:$0xff]  ;;  %v452_v31 = vld [vmem:[%s5013_s10 + $0x68] sm:$0xff] }
  0x1f   : > { %368 = vst.msk [vmem:[#allocation2 + $0x1b8] sm:$0x1] %vm330_vm1, %v7378_v0  ;;  %369 = vst.msk [vmem:[#allocation2 + $0x1d8] sm:$0x1] %vm330_vm1, %v7378_v0  ;;  %v451_v30 = vld [vmem:[%s5013_s10 + $0x60] sm:$0xff]  ;;  %v390_v32 = vld [vmem:[%s5031_s14 + $0x88] sm:$0xff] }
  0x20   : > { %370 = vst.msk [vmem:[#allocation2 + $0x1f8] sm:$0x1] %vm330_vm1, %v7378_v0  ;;  %371 = vst.msk [vmem:[#allocation2 + $0x218] sm:$0x1] %vm330_vm1, %v7378_v0  ;;  %v391_v33 = vld [vmem:[%s5031_s14 + $0x90] sm:$0xff]  ;;  %v454_v35 = vld [vmem:[%s5013_s10 + $0x78] sm:$0xff] }
  0x21   : > { %355 = vst.msk [vmem:[#allocation2 + $0x18] sm:$0x1] %vm330_vm1, %v7378_v0  ;;  %372 = vst.msk [vmem:[#allocation2 + $0x238] sm:$0x1] %vm330_vm1, %v7378_v0  ;;  %519 = vrot.lane.b32.xlu0 %v447_v10, %s4853_s11  ;;  %521 = vrot.lane.b32.xlu1 %v448_v14, %s4853_s11  ;;  %v453_v34 = vld [vmem:[%s5013_s10 + $0x70] sm:$0xff]  ;;  %v392_v36 = vld [vmem:[%s5031_s14 + $0x98] sm:$0xff] }
  0x22   : > { %409 = vst.msk [vmem:[#allocation2 + $0x48] sm:$0xff] %vm406_vm2, %v375_v9  ;;  %407 = vst.msk [vmem:[#allocation2 + $0x28] sm:$0xff] %vm406_vm2, %v373_v11  ;;  %v393_v37 = vld [vmem:[%s5031_s14 + $0xa0] sm:$0xff]  ;;  %v456_v39 = vld [vmem:[%s5013_s10 + $0x88] sm:$0xff]  ;;  %s4858_s23 = smov 80   ;;  %s4859_s24 = smov 96  }
  0x23   : > { %410 = vst.msk [vmem:[#allocation2 + $0x50] sm:$0xff] %vm406_vm2, %v376_v12  ;;  %408 = vst.msk [vmem:[#allocation2 + $0x30] sm:$0xff] %vm406_vm2, %v374_v13  ;;  %v455_v38 = vld [vmem:[%s5013_s10 + $0x80] sm:$0xff]  ;;  %v394_v40 = vld [vmem:[%s5031_s14 + $0xa8] sm:$0xff]  ;;  %s4860_s25 = smov 112  }
  0x24   : > { %411 = vst.msk [vmem:[#allocation2 + $0x68] sm:$0xff] %vm406_vm2, %v377_v15  ;;  %412 = vst.msk [vmem:[#allocation2 + $0x70] sm:$0xff] %vm406_vm2, %v378_v16  ;;  %v395_v41 = vld [vmem:[%s5031_s14 + $0xb0] sm:$0xff]  ;;  %v458_v43 = vld [vmem:[%s5013_s10 + $0x98] sm:$0xff] }
  0x25   : > { %413 = vst.msk [vmem:[#allocation2 + $0x88] sm:$0xff] %vm406_vm2, %v379_v17  ;;  %414 = vst.msk [vmem:[#allocation2 + $0x90] sm:$0xff] %vm406_vm2, %v380_v18  ;;  %523 = vrot.lane.b32.xlu0 %v449_v26, %s4853_s11  ;;  %525 = vrot.lane.b32.xlu1 %v450_v27, %s4853_s11  ;;  %v457_v42 = vld [vmem:[%s5013_s10 + $0x90] sm:$0xff]  ;;  %v396_v44 = vld [vmem:[%s5031_s14 + $0xb8] sm:$0xff] }
  0x26   : > { %415 = vst.msk [vmem:[#allocation2 + $0xa8] sm:$0xff] %vm406_vm2, %v381_v19  ;;  %416 = vst.msk [vmem:[#allocation2 + $0xb0] sm:$0xff] %vm406_vm2, %v382_v20  ;;  %v397_v45 = vld [vmem:[%s5031_s14 + $0xc0] sm:$0xff]  ;;  %v460_v47 = vld [vmem:[%s5013_s10 + $0xa8] sm:$0xff] }
  0x27   : > { %417 = vst.msk [vmem:[#allocation2 + $0xc8] sm:$0xff] %vm406_vm2, %v383_v21  ;;  %418 = vst.msk [vmem:[#allocation2 + $0xd0] sm:$0xff] %vm406_vm2, %v384_v22  ;;  %v459_v46 = vld [vmem:[%s5013_s10 + $0xa0] sm:$0xff]  ;;  %v398_v48 = vld [vmem:[%s5031_s14 + $0xc8] sm:$0xff] }
  0x28   : > { %419 = vst.msk [vmem:[#allocation2 + $0xe8] sm:$0xff] %vm406_vm2, %v385_v23  ;;  %420 = vst.msk [vmem:[#allocation2 + $0xf0] sm:$0xff] %vm406_vm2, %v386_v24  ;;  %v399_v49 = vld [vmem:[%s5031_s14 + $0xd0] sm:$0xff]  ;;  %v462_v51 = vld [vmem:[%s5013_s10 + $0xb8] sm:$0xff] }
  0x29   : > { %421 = vst.msk [vmem:[#allocation2 + $0x108] sm:$0xff] %vm406_vm2, %v387_v25  ;;  %422 = vst.msk [vmem:[#allocation2 + $0x110] sm:$0xff] %vm406_vm2, %v388_v28  ;;  %527 = vrot.lane.b32.xlu0 %v451_v30, %s4853_s11  ;;  %529 = vrot.lane.b32.xlu1 %v452_v31, %s4853_s11  ;;  %v461_v50 = vld [vmem:[%s5013_s10 + $0xb0] sm:$0xff]  ;;  %v400_v52 = vld [vmem:[%s5031_s14 + $0xd8] sm:$0xff] }
  0x2a   : > { %423 = vst.msk [vmem:[#allocation2 + $0x128] sm:$0xff] %vm406_vm2, %v389_v29  ;;  %424 = vst.msk [vmem:[#allocation2 + $0x130] sm:$0xff] %vm406_vm2, %v390_v32  ;;  %v401_v53 = vld [vmem:[%s5031_s14 + $0xe0] sm:$0xff]  ;;  %v464_v55 = vld [vmem:[%s5013_s10 + $0xc8] sm:$0xff] }
  0x2b   : > { %425 = vst.msk [vmem:[#allocation2 + $0x148] sm:$0xff] %vm406_vm2, %v391_v33  ;;  %426 = vst.msk [vmem:[#allocation2 + $0x150] sm:$0xff] %vm406_vm2, %v392_v36  ;;  %v463_v54 = vld [vmem:[%s5013_s10 + $0xc0] sm:$0xff]  ;;  %v402_v56 = vld [vmem:[%s5031_s14 + $0xe8] sm:$0xff] }
  0x2c   : > { %427 = vst.msk [vmem:[#allocation2 + $0x168] sm:$0xff] %vm406_vm2, %v393_v37  ;;  %428 = vst.msk [vmem:[#allocation2 + $0x170] sm:$0xff] %vm406_vm2, %v394_v40  ;;  %v465_v57 = vld [vmem:[%s5013_s10 + $0xd0] sm:$0xff]  ;;  %v466_v58 = vld [vmem:[%s5013_s10 + $0xd8] sm:$0xff] }
  0x2d   : > { %531 = vrot.lane.b32.xlu0 %v453_v34, %s4853_s11  ;;  %533 = vrot.lane.b32.xlu1 %v454_v35, %s4853_s11  ;;  %429 = vst.msk [vmem:[#allocation2 + $0x188] sm:$0xff] %vm406_vm2, %v395_v41  ;;  %430 = vst.msk [vmem:[#allocation2 + $0x190] sm:$0xff] %vm406_vm2, %v396_v44  ;;  %v467_v59 = vld [vmem:[%s5013_s10 + $0xe0] sm:$0xff]  ;;  %v468_v60 = vld [vmem:[%s5013_s10 + $0xe8] sm:$0xff] }
  0x2e   : > { %431 = vst.msk [vmem:[#allocation2 + $0x1a8] sm:$0xff] %vm406_vm2, %v397_v45  ;;  %432 = vst.msk [vmem:[#allocation2 + $0x1b0] sm:$0xff] %vm406_vm2, %v398_v48  ;;  %v469_v61 = vld [vmem:[%s5013_s10 + $0xf0] sm:$0xff]  ;;  %v470_v62 = vld [vmem:[%s5013_s10 + $0xf8] sm:$0xff] }
  0x2f   : > { %433 = vst.msk [vmem:[#allocation2 + $0x1c8] sm:$0xff] %vm406_vm2, %v399_v49  ;;  %434 = vst.msk [vmem:[#allocation2 + $0x1d0] sm:$0xff] %vm406_vm2, %v400_v52  ;;  %v696_v63 = vld [vmem:[#allocation2 + $0x8] sm:$0xff]  ;;  %v697_v1 = vld [vmem:[#allocation2 + $0x10] sm:$0xff] }
  0x30   : > { %435 = vst.msk [vmem:[#allocation2 + $0x1e8] sm:$0xff] %vm406_vm2, %v401_v53  ;;  %436 = vst.msk [vmem:[#allocation2 + $0x1f0] sm:$0xff] %vm406_vm2, %v402_v56  ;;  %v889_v2 = vld [vmem:[#allocation2 + $0x9] sm:$0xff]  ;;  %v890_v3 = vld [vmem:[#allocation2 + $0x11] sm:$0xff] }
  0x31   : > { %535 = vrot.lane.b32.xlu0 %v455_v38, %s4853_s11  ;;  %537 = vrot.lane.b32.xlu1 %v456_v39, %s4853_s11  ;;  %v403_v4 = vld [vmem:[%s5031_s14 + $0xf0] sm:$0xff]  ;;  %v404_v5 = vld [vmem:[%s5031_s14 + $0xf8] sm:$0xff]  ;;  %v632_v6 = vld [vmem:[#allocation2 + $0x7] sm:$0xff] }
  0x32   : > { %437 = vst.msk [vmem:[#allocation2 + $0x208] sm:$0xff] %vm406_vm2, %v403_v4  ;;  %438 = vst.msk [vmem:[#allocation2 + $0x210] sm:$0xff] %vm406_vm2, %v404_v5  ;;  %v633_v7 = vld [vmem:[#allocation2 + $0xf] sm:$0xff] }
  0x33   : > { %664 = vst.msk [vmem:[#allocation3] sm:$0xff] %vm326_vm0, %v632_v6  ;;  %665 = vst.msk [vmem:[#allocation3 + $0x10] sm:$0xff] %vm326_vm0, %v633_v7 }
  0x35   : > { %539 = vrot.lane.b32.xlu0 %v457_v42, %s4853_s11  ;;  %541 = vrot.lane.b32.xlu1 %v458_v43, %s4853_s11 }
  0x39   : > { %543 = vrot.lane.b32.xlu0 %v459_v46, %s4853_s11  ;;  %545 = vrot.lane.b32.xlu1 %v460_v47, %s4853_s11 }
  0x3d   : > { %547 = vrot.lane.b32.xlu0 %v461_v50, %s4853_s11  ;;  %549 = vrot.lane.b32.xlu1 %v462_v51, %s4853_s11 }
  0x41   : > { %551 = vrot.lane.b32.xlu0 %v463_v54, %s4853_s11  ;;  %553 = vrot.lane.b32.xlu1 %v464_v55, %s4853_s11 }
  0x45   : > { %555 = vrot.lane.b32.xlu0 %v465_v57, %s4853_s11  ;;  %557 = vrot.lane.b32.xlu1 %v466_v58, %s4853_s11 }
  0x49   : > { %559 = vrot.lane.b32.xlu0 %v467_v59, %s4853_s11  ;;  %561 = vrot.lane.b32.xlu1 %v468_v60, %s4853_s11 }
  0x4d   : > { %563 = vrot.lane.b32.xlu0 %v469_v61, %s4853_s11  ;;  %565 = vrot.lane.b32.xlu1 %v470_v62, %s4853_s11 }
  0x51   : > { %760 = vrot.lane.b32.xlu0 %v696_v63, %s4854_s15  ;;  %762 = vrot.lane.b32.xlu1 %v697_v1, %s4854_s15 }
  0x55   : > { %953 = vrot.lane.b32.xlu0 %v889_v2, %s4855_s16  ;;  %955 = vrot.lane.b32.xlu1 %v890_v3, %s4855_s16 }
  0x83   : > { %v508_v8 = vpop.permute.xlu1 %507  ;;  %v504_v9 = vpop.permute.xlu0 %503 }
  0x84   : > { %602 = vst.msk [vmem:[#allocation2 + $0x48] sm:$0xff] %vm599_vm3, %v508_v8  ;;  %600 = vst.msk [vmem:[#allocation2 + $0x28] sm:$0xff] %vm599_vm3, %v504_v9 }
  0x87   : > { %v510_v10 = vpop.permute.xlu1 %509  ;;  %v506_v11 = vpop.permute.xlu0 %505 }
  0x88   : > { %603 = vst.msk [vmem:[#allocation2 + $0x50] sm:$0xff] %vm599_vm3, %v510_v10  ;;  %601 = vst.msk [vmem:[#allocation2 + $0x30] sm:$0xff] %vm599_vm3, %v506_v11 }
  0x8b   : > { %v512_v12 = vpop.permute.xlu0 %511  ;;  %v5159_v13 = vld [vmem:[#allocation2 + $0x28] sm:$0xff]  ;;  %v514_v14 = vpop.permute.xlu1 %513 }
  0x8c   : > { %7417 = vst [vmem:[#allocation4_spill] sm:$0xff] %v5159_v13  ;;  %v5161_v15 = vld [vmem:[#allocation2 + $0x27] sm:$0xff]  ;;  %604 = vst.msk [vmem:[#allocation2 + $0x68] sm:$0xff] %vm599_vm3, %v512_v12  ;;  %764 = vrot.lane.b32.xlu0 %v5159_v13, %s4854_s15 }
  0x8d   : > { %605 = vst.msk [vmem:[#allocation2 + $0x70] sm:$0xff] %vm599_vm3, %v514_v14  ;;  %v5169_v16 = vld [vmem:[#allocation2 + $0x47] sm:$0xff] }
  0x8e   : > { %666 = vst.msk [vmem:[#allocation3 + $0x20] sm:$0xff] %vm326_vm0, %v5161_v15  ;;  %v5171_v17 = vld [vmem:[#allocation2 + $0x48] sm:$0xff]  ;;  %668 = vst.msk [vmem:[#allocation3 + $0x40] sm:$0xff] %vm326_vm0, %v5169_v16 }
  0x8f   : > { %7418 = vst [vmem:[#allocation5_spill] sm:$0xff] %v5171_v17  ;;  %v5175_v18 = vld [vmem:[#allocation2 + $0x49] sm:$0xff]  ;;  %v5177_v19 = vld [vmem:[#allocation2 + $0x51] sm:$0xff]  ;;  %v516_v20 = vpop.permute.xlu0 %515  ;;  %v518_v22 = vpop.permute.xlu1 %517 }
  0x90   : > { %v5179_v21 = vld [vmem:[#allocation2 + $0x30] sm:$0xff]  ;;  %2081 = vst.msk [vmem:[#allocation3 + $0x18] sm:$0xff] %vm326_vm0, %v5177_v19  ;;  %2080 = vst.msk [vmem:[#allocation3 + $0x8] sm:$0xff] %vm326_vm0, %v5175_v18  ;;  %768 = vrot.lane.b32.xlu0 %v5171_v17, %s4854_s15 }
  0x91   : > { %7419 = vst [vmem:[#allocation6_spill] sm:$0xff] %v5179_v21  ;;  %606 = vst.msk [vmem:[#allocation2 + $0x88] sm:$0xff] %vm599_vm3, %v516_v20  ;;  %766 = vrot.lane.b32.xlu1 %v5179_v21, %s4854_s15  ;;  %v5191_v23 = vld [vmem:[#allocation2 + $0x50] sm:$0xff] }
  0x92   : > { %607 = vst.msk [vmem:[#allocation2 + $0x90] sm:$0xff] %vm599_vm3, %v518_v22  ;;  %7420 = vst [vmem:[#allocation7_spill] sm:$0xff] %v5191_v23  ;;  %v5193_v24 = vld [vmem:[#allocation2 + $0x2f] sm:$0xff] }
  0x93   : > { %v5195_v25 = vld [vmem:[#allocation2 + $0x4f] sm:$0xff]  ;;  %667 = vst.msk [vmem:[#allocation3 + $0x30] sm:$0xff] %vm326_vm0, %v5193_v24  ;;  %v520_v28 = vpop.permute.xlu0 %519  ;;  %v522_v30 = vpop.permute.xlu1 %521  ;;  %v5217_v31 = vld [vmem:[#allocation2 + $0x67] sm:$0xff] }
  0x94   : > { %669 = vst.msk [vmem:[#allocation3 + $0x50] sm:$0xff] %vm326_vm0, %v5195_v25  ;;  %v5201_v26 = vld [vmem:[#allocation2 + $0x69] sm:$0xff]  ;;  %v5203_v27 = vld [vmem:[#allocation2 + $0x71] sm:$0xff]  ;;  %670 = vst.msk [vmem:[#allocation3 + $0x60] sm:$0xff] %vm326_vm0, %v5217_v31 }
  0x95   : > { %v5205_v29 = vld [vmem:[#allocation2 + $0x68] sm:$0xff]  ;;  %2083 = vst.msk [vmem:[#allocation3 + $0x38] sm:$0xff] %vm326_vm0, %v5203_v27  ;;  %2082 = vst.msk [vmem:[#allocation3 + $0x28] sm:$0xff] %vm326_vm0, %v5201_v26  ;;  %770 = vrot.lane.b32.xlu1 %v5191_v23, %s4854_s15  ;;  %v5221_v33 = vld [vmem:[#allocation2 + $0x70] sm:$0xff] }
  0x96   : > { %7421 = vst [vmem:[#allocation8_spill] sm:$0xff] %v5205_v29  ;;  %608 = vst.msk [vmem:[#allocation2 + $0xa8] sm:$0xff] %vm599_vm3, %v520_v28  ;;  %772 = vrot.lane.b32.xlu0 %v5205_v29, %s4854_s15  ;;  %v5219_v32 = vld [vmem:[#allocation2 + $0x6f] sm:$0xff] }
  0x97   : > { %609 = vst.msk [vmem:[#allocation2 + $0xb0] sm:$0xff] %vm599_vm3, %v522_v30  ;;  %7422 = vst [vmem:[#allocation9_spill] sm:$0xff] %v5221_v33  ;;  %v524_v36 = vpop.permute.xlu0 %523  ;;  %v2113_v37 = vld [vmem:[#allocation3 + $0x8] sm:$0xff]  ;;  %v526_v38 = vpop.permute.xlu1 %525 }
  0x98   : > { %671 = vst.msk [vmem:[#allocation3 + $0x70] sm:$0xff] %vm326_vm0, %v5219_v32  ;;  %4752 = vmatprep.mubr.msk.f32.mxu0 %vm326_vm0, %v2113_v37  ;;  %v5239_v39 = vld [vmem:[#allocation2 + $0x88] sm:$0xff] }
  0x99   : > { %v5227_v34 = vld [vmem:[#allocation2 + $0x89] sm:$0xff]  ;;  %v5229_v35 = vld [vmem:[#allocation2 + $0x91] sm:$0xff]  ;;  %610 = vst.msk [vmem:[#allocation2 + $0xc8] sm:$0xff] %vm599_vm3, %v524_v36  ;;  %774 = vrot.lane.b32.xlu1 %v5221_v33, %s4854_s15  ;;  %7423 = vst [vmem:[#allocation10_spill] sm:$0xff] %v5239_v39 }
  0x9a   : > { %2085 = vst.msk [vmem:[#allocation3 + $0x58] sm:$0xff] %vm326_vm0, %v5229_v35  ;;  %2084 = vst.msk [vmem:[#allocation3 + $0x48] sm:$0xff] %vm326_vm0, %v5227_v34  ;;  %v5242_v40 = vld [vmem:[#allocation2 + $0x87] sm:$0xff]  ;;  %776 = vrot.lane.b32.xlu0 %v5239_v39, %s4854_s15  ;;  %v5246_v41 = vld [vmem:[#allocation2 + $0x90] sm:$0xff] }
  0x9b   : > { %611 = vst.msk [vmem:[#allocation2 + $0xd0] sm:$0xff] %vm599_vm3, %v526_v38  ;;  %7424 = vst [vmem:[#allocation11_spill] sm:$0xff] %v5246_v41  ;;  %v5250_v42 = vld [vmem:[#allocation2 + $0x8f] sm:$0xff]  ;;  %v528_v45 = vpop.permute.xlu0 %527  ;;  %v530_v47 = vpop.permute.xlu1 %529 }
  0x9c   : > { %672 = vst.msk [vmem:[#allocation3 + $0x80] sm:$0xff] %vm326_vm0, %v5242_v40  ;;  %673 = vst.msk [vmem:[#allocation3 + $0x90] sm:$0xff] %vm326_vm0, %v5250_v42 }
  0x9d   : > { %v5258_v46 = vld [vmem:[#allocation2 + $0xa8] sm:$0xff]  ;;  %612 = vst.msk [vmem:[#allocation2 + $0xe8] sm:$0xff] %vm599_vm3, %v528_v45  ;;  %778 = vrot.lane.b32.xlu1 %v5246_v41, %s4854_s15  ;;  %613 = vst.msk [vmem:[#allocation2 + $0xf0] sm:$0xff] %vm599_vm3, %v530_v47 }
  0x9e   : > { %v5254_v43 = vld [vmem:[#allocation2 + $0xa9] sm:$0xff]  ;;  %v5256_v44 = vld [vmem:[#allocation2 + $0xb1] sm:$0xff]  ;;  %7425 = vst [vmem:[#allocation12_spill] sm:$0xff] %v5258_v46  ;;  %780 = vrot.lane.b32.xlu0 %v5258_v46, %s4854_s15 }
  0x9f   : > { %2087 = vst.msk [vmem:[#allocation3 + $0x78] sm:$0xff] %vm326_vm0, %v5256_v44  ;;  %2086 = vst.msk [vmem:[#allocation3 + $0x68] sm:$0xff] %vm326_vm0, %v5254_v43  ;;  %v5268_v48 = vld [vmem:[#allocation2 + $0xa7] sm:$0xff]  ;;  %v5270_v49 = vld [vmem:[#allocation2 + $0xaf] sm:$0xff]  ;;  %v532_v53 = vpop.permute.xlu0 %531  ;;  %v534_v55 = vpop.permute.xlu1 %533 }
  0xa0   : > { %v5274_v50 = vld [vmem:[#allocation2 + $0xb0] sm:$0xff]  ;;  %674 = vst.msk [vmem:[#allocation3 + $0xa0] sm:$0xff] %vm326_vm0, %v5268_v48  ;;  %675 = vst.msk [vmem:[#allocation3 + $0xb0] sm:$0xff] %vm326_vm0, %v5270_v49  ;;  %v5284_v54 = vld [vmem:[#allocation2 + $0xc8] sm:$0xff] }
  0xa1   : > { %7426 = vst [vmem:[#allocation13_spill] sm:$0xff] %v5274_v50  ;;  %7427 = vst [vmem:[#allocation14_spill] sm:$0xff] %v5284_v54  ;;  %782 = vrot.lane.b32.xlu1 %v5274_v50, %s4854_s15  ;;  %v5294_v56 = vld [vmem:[#allocation2 + $0xc7] sm:$0xff] }
  0xa2   : > { %v5280_v51 = vld [vmem:[#allocation2 + $0xc9] sm:$0xff]  ;;  %v5282_v52 = vld [vmem:[#allocation2 + $0xd1] sm:$0xff]  ;;  %614 = vst.msk [vmem:[#allocation2 + $0x108] sm:$0xff] %vm599_vm3, %v532_v53  ;;  %615 = vst.msk [vmem:[#allocation2 + $0x110] sm:$0xff] %vm599_vm3, %v534_v55  ;;  %784 = vrot.lane.b32.xlu0 %v5284_v54, %s4854_s15 }
  0xa3   : > { %2089 = vst.msk [vmem:[#allocation3 + $0x98] sm:$0xff] %vm326_vm0, %v5282_v52  ;;  %2088 = vst.msk [vmem:[#allocation3 + $0x88] sm:$0xff] %vm326_vm0, %v5280_v51  ;;  %v5296_v57 = vld [vmem:[#allocation2 + $0xcf] sm:$0xff]  ;;  %v536_v61 = vpop.permute.xlu0 %535  ;;  %v538_v63 = vpop.permute.xlu1 %537 }
  0xa4   : > { %v5300_v58 = vld [vmem:[#allocation2 + $0xd0] sm:$0xff]  ;;  %676 = vst.msk [vmem:[#allocation3 + $0xc0] sm:$0xff] %vm326_vm0, %v5294_v56  ;;  %677 = vst.msk [vmem:[#allocation3 + $0xd0] sm:$0xff] %vm326_vm0, %v5296_v57  ;;  %v5310_v62 = vld [vmem:[#allocation2 + $0xe8] sm:$0xff] }
  0xa5   : > { %7428 = vst [vmem:[#allocation15_spill] sm:$0xff] %v5300_v58  ;;  %v5306_v59 = vld [vmem:[#allocation2 + $0xe9] sm:$0xff]  ;;  %v5308_v60 = vld [vmem:[#allocation2 + $0xf1] sm:$0xff]  ;;  %7429 = vst [vmem:[#allocation16_spill] sm:$0xff] %v5310_v62  ;;  %786 = vrot.lane.b32.xlu1 %v5300_v58, %s4854_s15 }
  0xa6   : > { %2091 = vst.msk [vmem:[#allocation3 + $0xb8] sm:$0xff] %vm326_vm0, %v5308_v60  ;;  %2090 = vst.msk [vmem:[#allocation3 + $0xa8] sm:$0xff] %vm326_vm0, %v5306_v59  ;;  %v5320_v1 = vld [vmem:[#allocation2 + $0xe7] sm:$0xff]  ;;  %v5322_v2 = vld [vmem:[#allocation2 + $0xef] sm:$0xff]  ;;  %788 = vrot.lane.b32.xlu0 %v5310_v62, %s4854_s15 }
  0xa7   : > { %616 = vst.msk [vmem:[#allocation2 + $0x128] sm:$0xff] %vm599_vm3, %v536_v61  ;;  %617 = vst.msk [vmem:[#allocation2 + $0x130] sm:$0xff] %vm599_vm3, %v538_v63  ;;  %v5326_v3 = vld [vmem:[#allocation2 + $0xf0] sm:$0xff]  ;;  %v540_v6 = vpop.permute.xlu0 %539  ;;  %v542_v8 = vpop.permute.xlu1 %541 }
  0xa8   : > { %7430 = vst [vmem:[#allocation17_spill] sm:$0xff] %v5326_v3  ;;  %678 = vst.msk [vmem:[#allocation3 + $0xe0] sm:$0xff] %vm326_vm0, %v5320_v1 }
  0xa9   : > { %679 = vst.msk [vmem:[#allocation3 + $0xf0] sm:$0xff] %vm326_vm0, %v5322_v2  ;;  %v5332_v4 = vld [vmem:[#allocation2 + $0x109] sm:$0xff]  ;;  %v5334_v5 = vld [vmem:[#allocation2 + $0x111] sm:$0xff]  ;;  %790 = vrot.lane.b32.xlu1 %v5326_v3, %s4854_s15 }
  0xaa   : > { %v5336_v7 = vld [vmem:[#allocation2 + $0x108] sm:$0xff]  ;;  %2093 = vst.msk [vmem:[#allocation3 + $0xd8] sm:$0xff] %vm326_vm0, %v5334_v5  ;;  %2092 = vst.msk [vmem:[#allocation3 + $0xc8] sm:$0xff] %vm326_vm0, %v5332_v4  ;;  %v5352_v11 = vld [vmem:[#allocation2 + $0x110] sm:$0xff] }
  0xab   : > { %7431 = vst [vmem:[#allocation18_spill] sm:$0xff] %v5336_v7  ;;  %618 = vst.msk [vmem:[#allocation2 + $0x148] sm:$0xff] %vm599_vm3, %v540_v6  ;;  %v5346_v9 = vld [vmem:[#allocation2 + $0x107] sm:$0xff]  ;;  %v5348_v10 = vld [vmem:[#allocation2 + $0x10f] sm:$0xff]  ;;  %792 = vrot.lane.b32.xlu0 %v5336_v7, %s4854_s15  ;;  %v544_v20 = vpop.permute.xlu0 %543  ;;  %v546_v28 = vpop.permute.xlu1 %545 }
  0xac   : > { %619 = vst.msk [vmem:[#allocation2 + $0x150] sm:$0xff] %vm599_vm3, %v542_v8  ;;  %7432 = vst [vmem:[#allocation19_spill] sm:$0xff] %v5352_v11 }
  0xad   : > { %680 = vst.msk [vmem:[#allocation3 + $0x100] sm:$0xff] %vm326_vm0, %v5346_v9  ;;  %681 = vst.msk [vmem:[#allocation3 + $0x110] sm:$0xff] %vm326_vm0, %v5348_v10  ;;  %794 = vrot.lane.b32.xlu1 %v5352_v11, %s4854_s15 }
  0xae   : > { %v5358_v12 = vld [vmem:[#allocation2 + $0x129] sm:$0xff]  ;;  %v5360_v14 = vld [vmem:[#allocation2 + $0x131] sm:$0xff]  ;;  %620 = vst.msk [vmem:[#allocation2 + $0x168] sm:$0xff] %vm599_vm3, %v544_v20  ;;  %621 = vst.msk [vmem:[#allocation2 + $0x170] sm:$0xff] %vm599_vm3, %v546_v28 }
  0xaf   : > { %v714_v22 = vld [vmem:[#allocation2 + $0x128] sm:$0xff]  ;;  %2095 = vst.msk [vmem:[#allocation3 + $0xf8] sm:$0xff] %vm326_vm0, %v5360_v14  ;;  %2094 = vst.msk [vmem:[#allocation3 + $0xe8] sm:$0xff] %vm326_vm0, %v5358_v12  ;;  %v715_v37 = vld [vmem:[#allocation2 + $0x130] sm:$0xff]  ;;  %v548_v47 = vpop.permute.xlu0 %547  ;;  %v550_v55 = vpop.permute.xlu1 %549 }
  0xb0   : > { %v5370_v30 = vld [vmem:[#allocation2 + $0x127] sm:$0xff]  ;;  %v5372_v36 = vld [vmem:[#allocation2 + $0x12f] sm:$0xff]  ;;  %796 = vrot.lane.b32.xlu0 %v714_v22, %s4854_s15  ;;  %622 = vst.msk [vmem:[#allocation2 + $0x188] sm:$0xff] %vm599_vm3, %v548_v47  ;;  %623 = vst.msk [vmem:[#allocation2 + $0x190] sm:$0xff] %vm599_vm3, %v550_v55 }
  0xb1   : > { %682 = vst.msk [vmem:[#allocation3 + $0x120] sm:$0xff] %vm326_vm0, %v5370_v30  ;;  %683 = vst.msk [vmem:[#allocation3 + $0x130] sm:$0xff] %vm326_vm0, %v5372_v36  ;;  %798 = vrot.lane.b32.xlu1 %v715_v37, %s4854_s15 }
  0xb2   : > { %v716_v53 = vld [vmem:[#allocation2 + $0x148] sm:$0xff] }
  0xb3   : > { %v5379_v38 = vld [vmem:[#allocation2 + $0x149] sm:$0xff]  ;;  %v5381_v45 = vld [vmem:[#allocation2 + $0x151] sm:$0xff]  ;;  %v552_v22 = vpop.permute.xlu0 %551  ;;  %v554_v37 = vpop.permute.xlu1 %553 }
  0xb4   : > { %2097 = vst.msk [vmem:[#allocation3 + $0x118] sm:$0xff] %vm326_vm0, %v5381_v45  ;;  %2096 = vst.msk [vmem:[#allocation3 + $0x108] sm:$0xff] %vm326_vm0, %v5379_v38  ;;  %v5390_v61 = vld [vmem:[#allocation2 + $0x147] sm:$0xff]  ;;  %v5392_v63 = vld [vmem:[#allocation2 + $0x14f] sm:$0xff]  ;;  %800 = vrot.lane.b32.xlu0 %v716_v53, %s4854_s15 }
  0xb5   : > { %v717_v6 = vld [vmem:[#allocation2 + $0x150] sm:$0xff]  ;;  %684 = vst.msk [vmem:[#allocation3 + $0x140] sm:$0xff] %vm326_vm0, %v5390_v61  ;;  %685 = vst.msk [vmem:[#allocation3 + $0x150] sm:$0xff] %vm326_vm0, %v5392_v63  ;;  %v718_v28 = vld [vmem:[#allocation2 + $0x168] sm:$0xff] }
  0xb6   : > { %v5399_v8 = vld [vmem:[#allocation2 + $0x169] sm:$0xff]  ;;  %v5401_v20 = vld [vmem:[#allocation2 + $0x171] sm:$0xff]  ;;  %624 = vst.msk [vmem:[#allocation2 + $0x1a8] sm:$0xff] %vm599_vm3, %v552_v22  ;;  %802 = vrot.lane.b32.xlu1 %v717_v6, %s4854_s15  ;;  %625 = vst.msk [vmem:[#allocation2 + $0x1b0] sm:$0xff] %vm599_vm3, %v554_v37 }
  0xb7   : > { %2099 = vst.msk [vmem:[#allocation3 + $0x138] sm:$0xff] %vm326_vm0, %v5401_v20  ;;  %2098 = vst.msk [vmem:[#allocation3 + $0x128] sm:$0xff] %vm326_vm0, %v5399_v8  ;;  %v5410_v47 = vld [vmem:[#allocation2 + $0x167] sm:$0xff]  ;;  %v5412_v53 = vld [vmem:[#allocation2 + $0x16f] sm:$0xff]  ;;  %v556_v6 = vpop.permute.xlu0 %555  ;;  %v558_v37 = vpop.permute.xlu1 %557 }
  0xb8   : > { %804 = vrot.lane.b32.xlu0 %v718_v28, %s4854_s15  ;;  %v719_v55 = vld [vmem:[#allocation2 + $0x170] sm:$0xff]  ;;  %686 = vst.msk [vmem:[#allocation3 + $0x160] sm:$0xff] %vm326_vm0, %v5410_v47  ;;  %687 = vst.msk [vmem:[#allocation3 + $0x170] sm:$0xff] %vm326_vm0, %v5412_v53  ;;  %v720_v11 = vld [vmem:[#allocation2 + $0x188] sm:$0xff] }
  0xb9   : > { %v5419_v0 = vld [vmem:[#allocation2 + $0x189] sm:$0xff]  ;;  %v5421_v22 = vld [vmem:[#allocation2 + $0x191] sm:$0xff]  ;;  %626 = vst.msk [vmem:[#allocation2 + $0x1c8] sm:$0xff] %vm599_vm3, %v556_v6  ;;  %627 = vst.msk [vmem:[#allocation2 + $0x1d0] sm:$0xff] %vm599_vm3, %v558_v37 }
  0xba   : > { %2101 = vst.msk [vmem:[#allocation3 + $0x158] sm:$0xff] %vm326_vm0, %v5421_v22  ;;  %2100 = vst.msk [vmem:[#allocation3 + $0x148] sm:$0xff] %vm326_vm0, %v5419_v0  ;;  %806 = vrot.lane.b32.xlu1 %v719_v55, %s4854_s15  ;;  %v5430_v28 = vld [vmem:[#allocation2 + $0x187] sm:$0xff]  ;;  %v5432_v7 = vld [vmem:[#allocation2 + $0x18f] sm:$0xff] }
  0xbb   : > { %v721_v3 = vld [vmem:[#allocation2 + $0x190] sm:$0xff]  ;;  %688 = vst.msk [vmem:[#allocation3 + $0x180] sm:$0xff] %vm326_vm0, %v5430_v28  ;;  %689 = vst.msk [vmem:[#allocation3 + $0x190] sm:$0xff] %vm326_vm0, %v5432_v7  ;;  %v560_v55 = vpop.permute.xlu0 %559  ;;  %v562_v37 = vpop.permute.xlu1 %561 }
  0xbc   : > { %808 = vrot.lane.b32.xlu0 %v720_v11, %s4854_s15  ;;  %628 = vst.msk [vmem:[#allocation2 + $0x1e8] sm:$0xff] %vm599_vm3, %v560_v55  ;;  %629 = vst.msk [vmem:[#allocation2 + $0x1f0] sm:$0xff] %vm599_vm3, %v562_v37 }
  0xbd   : > { %v5439_v62 = vld [vmem:[#allocation2 + $0x1a9] sm:$0xff]  ;;  %v5441_v6 = vld [vmem:[#allocation2 + $0x1b1] sm:$0xff] }
  0xbe   : > { %v722_v58 = vld [vmem:[#allocation2 + $0x1a8] sm:$0xff]  ;;  %2103 = vst.msk [vmem:[#allocation3 + $0x178] sm:$0xff] %vm326_vm0, %v5441_v6  ;;  %2102 = vst.msk [vmem:[#allocation3 + $0x168] sm:$0xff] %vm326_vm0, %v5439_v62  ;;  %810 = vrot.lane.b32.xlu1 %v721_v3, %s4854_s15  ;;  %v723_v50 = vld [vmem:[#allocation2 + $0x1b0] sm:$0xff] }
  0xbf   : > { %v5450_v11 = vld [vmem:[#allocation2 + $0x1a7] sm:$0xff]  ;;  %v5452_v54 = vld [vmem:[#allocation2 + $0x1af] sm:$0xff]  ;;  %v564_v41 = vpop.permute.xlu0 %563  ;;  %v566_v37 = vpop.permute.xlu1 %565 }
  0xc0   : > { %812 = vrot.lane.b32.xlu0 %v722_v58, %s4854_s15  ;;  %690 = vst.msk [vmem:[#allocation3 + $0x1a0] sm:$0xff] %vm326_vm0, %v5450_v11  ;;  %691 = vst.msk [vmem:[#allocation3 + $0x1b0] sm:$0xff] %vm326_vm0, %v5452_v54  ;;  %v5459_v46 = vld [vmem:[#allocation2 + $0x1c9] sm:$0xff]  ;;  %v5461_v55 = vld [vmem:[#allocation2 + $0x1d1] sm:$0xff] }
  0xc1   : > { %v724_v3 = vld [vmem:[#allocation2 + $0x1c8] sm:$0xff]  ;;  %2105 = vst.msk [vmem:[#allocation3 + $0x198] sm:$0xff] %vm326_vm0, %v5461_v55  ;;  %2104 = vst.msk [vmem:[#allocation3 + $0x188] sm:$0xff] %vm326_vm0, %v5459_v46  ;;  %v725_v33 = vld [vmem:[#allocation2 + $0x1d0] sm:$0xff] }
  0xc2   : > { %814 = vrot.lane.b32.xlu1 %v723_v50, %s4854_s15  ;;  %630 = vst.msk [vmem:[#allocation2 + $0x208] sm:$0xff] %vm599_vm3, %v564_v41  ;;  %631 = vst.msk [vmem:[#allocation2 + $0x210] sm:$0xff] %vm599_vm3, %v566_v37  ;;  %v5470_v58 = vld [vmem:[#allocation2 + $0x1c7] sm:$0xff]  ;;  %v5472_v39 = vld [vmem:[#allocation2 + $0x1cf] sm:$0xff] }
  0xc3   : > { %7433 = vst [vmem:[#allocation20_spill] sm:$0xff] %v5472_v39  ;;  %692 = vst.msk [vmem:[#allocation3 + $0x1c0] sm:$0xff] %vm326_vm0, %v5470_v58  ;;  %v2074_v29 = vld [vmem:[#allocation2 + $0x1e9] sm:$0xff]  ;;  %v2075_v50 = vld [vmem:[#allocation2 + $0x1f1] sm:$0xff]  ;;  %v761_v41 = vpop.permute.xlu0 %760  ;;  %v763_v17 = vpop.permute.xlu1 %762 }
  0xc4   : > { %816 = vrot.lane.b32.xlu0 %v724_v3, %s4854_s15  ;;  %693 = vst.msk [vmem:[#allocation3 + $0x1d0] sm:$0xff] %vm326_vm0, %v5472_v39  ;;  %v726_v23 = vld [vmem:[#allocation2 + $0x1e8] sm:$0xff]  ;;  %2107 = vst.msk [vmem:[#allocation3 + $0x1b8] sm:$0xff] %vm326_vm0, %v2075_v50  ;;  %v727_v21 = vld [vmem:[#allocation2 + $0x1f0] sm:$0xff] }
  0xc5   : > { %2106 = vst.msk [vmem:[#allocation3 + $0x1a8] sm:$0xff] %vm326_vm0, %v2074_v29  ;;  %v5484_v3 = vld [vmem:[#allocation2 + $0x1e7] sm:$0xff]  ;;  %v5486_v37 = vld [vmem:[#allocation2 + $0x1ef] sm:$0xff] }
  0xc6   : > { %818 = vrot.lane.b32.xlu1 %v725_v33, %s4854_s15  ;;  %857 = vst.msk [vmem:[#allocation3] sm:$0xff] %vm856_vm4, %v761_v41  ;;  %858 = vst.msk [vmem:[#allocation3 + $0x10] sm:$0xff] %vm856_vm4, %v763_v17  ;;  %v5494_v17 = vld [vmem:[#allocation2 + $0x29] sm:$0xff] }
  0xc7   : > { %694 = vst.msk [vmem:[#allocation3 + $0x1e0] sm:$0xff] %vm326_vm0, %v5484_v3  ;;  %695 = vst.msk [vmem:[#allocation3 + $0x1f0] sm:$0xff] %vm326_vm0, %v5486_v37  ;;  %v954_v39 = vpop.permute.xlu0 %953  ;;  %v956_v41 = vpop.permute.xlu1 %955 }
  0xc8   : > { %820 = vrot.lane.b32.xlu0 %v726_v23, %s4854_s15  ;;  %1050 = vst.msk [vmem:[#allocation3] sm:$0xff] %vm1049_vm5, %v954_v39  ;;  %1051 = vst.msk [vmem:[#allocation3 + $0x10] sm:$0xff] %vm1049_vm5, %v956_v41  ;;  %v5502_v23 = vld [vmem:[#allocation2 + $0x31] sm:$0xff] }
  0xc9   : > { %v2076_v13 = vld [vmem:[#allocation2 + $0x209] sm:$0xff]  ;;  %v2077_v33 = vld [vmem:[#allocation2 + $0x211] sm:$0xff] }
  0xca   : > { %822 = vrot.lane.b32.xlu1 %v727_v21, %s4854_s15  ;;  %2109 = vst.msk [vmem:[#allocation3 + $0x1d8] sm:$0xff] %vm326_vm0, %v2077_v33  ;;  %2108 = vst.msk [vmem:[#allocation3 + $0x1c8] sm:$0xff] %vm326_vm0, %v2076_v13  ;;  %v2191_v41 = vld [vmem:[%s7371_s2 + $0x78] sm:$0xff] }
  0xcb   : > { %2291 = vmatpush1.msra.mxu0 %v2191_v41 }
  0xcc   : > { %957 = vrot.lane.b32.xlu0 %v5494_v17, %s4855_s16 }
  0xce   : > { %959 = vrot.lane.b32.xlu1 %v5502_v23, %s4855_s16 }
  0xd0   : > { %961 = vrot.lane.b32.xlu0 %v5175_v18, %s4855_s16 }
  0xd2   : > { %963 = vrot.lane.b32.xlu1 %v5177_v19, %s4855_s16 }
  0xd4   : > { %965 = vrot.lane.b32.xlu0 %v5201_v26, %s4855_s16 }
  0xd6   : > { %967 = vrot.lane.b32.xlu1 %v5203_v27, %s4855_s16 }
  0xd8   : > { %969 = vrot.lane.b32.xlu0 %v5227_v34, %s4855_s16 }
  0xda   : > { %971 = vrot.lane.b32.xlu1 %v5229_v35, %s4855_s16 }
  0xdc   : > { %973 = vrot.lane.b32.xlu0 %v5254_v43, %s4855_s16 }
  0xde   : > { %975 = vrot.lane.b32.xlu1 %v5256_v44, %s4855_s16 }
  0xe0   : > { %977 = vrot.lane.b32.xlu0 %v5280_v51, %s4855_s16 }
  0xe2   : > { %979 = vrot.lane.b32.xlu1 %v5282_v52, %s4855_s16 }
  0xe4   : > { %981 = vrot.lane.b32.xlu0 %v5306_v59, %s4855_s16 }
  0xe6   : > { %983 = vrot.lane.b32.xlu1 %v5308_v60, %s4855_s16 }
  0xe8   : > { %985 = vrot.lane.b32.xlu0 %v5332_v4, %s4855_s16 }
  0xea   : > { %987 = vrot.lane.b32.xlu1 %v5334_v5, %s4855_s16 }
  0xec   : > { %989 = vrot.lane.b32.xlu0 %v5358_v12, %s4855_s16 }
  0xee   : > { %991 = vrot.lane.b32.xlu1 %v5360_v14, %s4855_s16 }
  0xf0   : > { %993 = vrot.lane.b32.xlu0 %v5379_v38, %s4855_s16 }
  0xf2   : > { %995 = vrot.lane.b32.xlu1 %v5381_v45, %s4855_s16 }
  0xf4   : > { %997 = vrot.lane.b32.xlu0 %v5399_v8, %s4855_s16 }
  0xf6   : > { %999 = vrot.lane.b32.xlu1 %v5401_v20, %s4855_s16 }
  0xf8   : > { %1001 = vrot.lane.b32.xlu0 %v5419_v0, %s4855_s16 }
  0xfa   : > { %1003 = vrot.lane.b32.xlu1 %v5421_v22, %s4855_s16 }
  0xfc   : > { %1005 = vrot.lane.b32.xlu0 %v5439_v62, %s4855_s16 }
  0xfe   : > { %1007 = vrot.lane.b32.xlu1 %v5441_v6, %s4855_s16  ;;  %v765_v13 = vpop.permute.xlu0 %764 }
  0xff   : > { %859 = vst.msk [vmem:[#allocation3 + $0x20] sm:$0xff] %vm856_vm4, %v765_v13 }
 0x100   : > { %1009 = vrot.lane.b32.xlu0 %v5459_v46, %s4855_s16 }
 0x102   : > { %1011 = vrot.lane.b32.xlu1 %v5461_v55, %s4855_s16  ;;  %v769_v18 = vpop.permute.xlu0 %768  ;;  %v7434_v55 = vld [vmem:[#allocation20_spill] sm:$0xff] }
 0x103   : > { %v767_v0 = vpop.permute.xlu1 %766  ;;  %861 = vst.msk [vmem:[#allocation3 + $0x40] sm:$0xff] %vm856_vm4, %v769_v18  ;;  %v7435_v18 = vmov 0.0  }
 0x104   : > { %1013 = vrot.lane.b32.xlu0 %v2074_v29, %s4855_s16  ;;  %860 = vst.msk [vmem:[#allocation3 + $0x30] sm:$0xff] %vm856_vm4, %v767_v0  ;;  %v1113_v0 = vld [vmem:[#allocation2 + $0x20f] sm:$0xff]  ;;  %2292 = vmatprep.subr.mxu0 %v7435_v18 }
 0x106   : > { %1015 = vrot.lane.b32.xlu1 %v2075_v50, %s4855_s16 }
 0x107   : > { %v771_v19 = vpop.permute.xlu1 %770 }
 0x108   : > { %1146 = vrot.lane.b32.xlu0 %v5161_v15, %s4856_s17  ;;  %v773_v21 = vpop.permute.xlu0 %772  ;;  %862 = vst.msk [vmem:[#allocation3 + $0x50] sm:$0xff] %vm856_vm4, %v771_v19  ;;  %v7436_v19 = vld [vmem:[#allocation4_spill] sm:$0xff] }
 0x109   : > { %863 = vst.msk [vmem:[#allocation3 + $0x60] sm:$0xff] %vm856_vm4, %v773_v21  ;;  %v2189_v21 = vld [vmem:[%s7371_s2 + $0x68] sm:$0xff] }
 0x10a   : > { %1148 = vrot.lane.b32.xlu1 %v5193_v24, %s4856_s17 }
 0x10b   : > { %v775_v26 = vpop.permute.xlu1 %774 }
 0x10c   : > { %1150 = vrot.lane.b32.xlu0 %v5169_v16, %s4856_s17  ;;  %864 = vst.msk [vmem:[#allocation3 + $0x70] sm:$0xff] %vm856_vm4, %v775_v26  ;;  %v777_v27 = vpop.permute.xlu0 %776 }
 0x10d   : > { %865 = vst.msk [vmem:[#allocation3 + $0x80] sm:$0xff] %vm856_vm4, %v777_v27 }
 0x10e   : > { %1152 = vrot.lane.b32.xlu1 %v5195_v25, %s4856_s17 }
 0x10f   : > { %v779_v15 = vpop.permute.xlu1 %778 }
 0x110   : > { %1154 = vrot.lane.b32.xlu0 %v5217_v31, %s4856_s17  ;;  %866 = vst.msk [vmem:[#allocation3 + $0x90] sm:$0xff] %vm856_vm4, %v779_v15  ;;  %v781_v29 = vpop.permute.xlu0 %780  ;;  %v7437_v15 = vld [vmem:[#allocation6_spill] sm:$0xff] }
 0x111   : > { %867 = vst.msk [vmem:[#allocation3 + $0xa0] sm:$0xff] %vm856_vm4, %v781_v29  ;;  %v2188_v29 = vld [vmem:[%s7371_s2 + $0x60] sm:$0xff] }
 0x112   : > { %1156 = vrot.lane.b32.xlu1 %v5219_v32, %s4856_s17 }
 0x113   : > { %v783_v24 = vpop.permute.xlu1 %782 }
 0x114   : > { %1158 = vrot.lane.b32.xlu0 %v5242_v40, %s4856_s17  ;;  %868 = vst.msk [vmem:[#allocation3 + $0xb0] sm:$0xff] %vm856_vm4, %v783_v24  ;;  %v785_v34 = vpop.permute.xlu0 %784  ;;  %v7438_v24 = vld [vmem:[#allocation5_spill] sm:$0xff] }
 0x115   : > { %869 = vst.msk [vmem:[#allocation3 + $0xc0] sm:$0xff] %vm856_vm4, %v785_v34  ;;  %v2187_v34 = vld [vmem:[%s7371_s2 + $0x58] sm:$0xff] }
 0x116   : > { %1160 = vrot.lane.b32.xlu1 %v5250_v42, %s4856_s17 }
 0x117   : > { %v787_v35 = vpop.permute.xlu1 %786 }
 0x118   : > { %1162 = vrot.lane.b32.xlu0 %v5268_v48, %s4856_s17  ;;  %870 = vst.msk [vmem:[#allocation3 + $0xd0] sm:$0xff] %vm856_vm4, %v787_v35  ;;  %v789_v39 = vpop.permute.xlu0 %788 }
 0x119   : > { %871 = vst.msk [vmem:[#allocation3 + $0xe0] sm:$0xff] %vm856_vm4, %v789_v39 }
 0x11a   : > { %1164 = vrot.lane.b32.xlu1 %v5270_v49, %s4856_s17 }
 0x11b   : > { %v791_v43 = vpop.permute.xlu1 %790 }
 0x11c   : > { %1166 = vrot.lane.b32.xlu0 %v5294_v56, %s4856_s17  ;;  %872 = vst.msk [vmem:[#allocation3 + $0xf0] sm:$0xff] %vm856_vm4, %v791_v43  ;;  %v7439_v43 = vld [vmem:[#allocation7_spill] sm:$0xff] }
 0x11d   : > { %v793_v44 = vpop.permute.xlu0 %792 }
 0x11e   : > { %873 = vst.msk [vmem:[#allocation3 + $0x100] sm:$0xff] %vm856_vm4, %v793_v44  ;;  %1168 = vrot.lane.b32.xlu1 %v5296_v57, %s4856_s17  ;;  %v2186_v44 = vld [vmem:[%s7371_s2 + $0x50] sm:$0xff] }
 0x11f   : > { %v795_v46 = vpop.permute.xlu1 %794 }
 0x120   : > { %1170 = vrot.lane.b32.xlu0 %v5320_v1, %s4856_s17  ;;  %874 = vst.msk [vmem:[#allocation3 + $0x110] sm:$0xff] %vm856_vm4, %v795_v46  ;;  %v7440_v46 = vld [vmem:[#allocation8_spill] sm:$0xff] }
 0x122   : > { %v797_v51 = vpop.permute.xlu0 %796  ;;  %1172 = vrot.lane.b32.xlu1 %v5322_v2, %s4856_s17 }
 0x123   : > { %875 = vst.msk [vmem:[#allocation3 + $0x120] sm:$0xff] %vm856_vm4, %v797_v51  ;;  %v799_v52 = vpop.permute.xlu1 %798  ;;  %v2185_v51 = vld [vmem:[%s7371_s2 + $0x48] sm:$0xff] }
 0x124   : > { %1174 = vrot.lane.b32.xlu0 %v5346_v9, %s4856_s17  ;;  %876 = vst.msk [vmem:[#allocation3 + $0x130] sm:$0xff] %vm856_vm4, %v799_v52 }
 0x126   : > { %v801_v59 = vpop.permute.xlu0 %800  ;;  %1176 = vrot.lane.b32.xlu1 %v5348_v10, %s4856_s17 }
 0x127   : > { %877 = vst.msk [vmem:[#allocation3 + $0x140] sm:$0xff] %vm856_vm4, %v801_v59 }
 0x128   : > { %1178 = vrot.lane.b32.xlu0 %v5370_v30, %s4856_s17  ;;  %v803_v60 = vpop.permute.xlu1 %802 }
 0x129   : > { %878 = vst.msk [vmem:[#allocation3 + $0x150] sm:$0xff] %vm856_vm4, %v803_v60  ;;  %v7441_v60 = vld [vmem:[#allocation9_spill] sm:$0xff] }
 0x12a   : > { %v805_v62 = vpop.permute.xlu0 %804  ;;  %1180 = vrot.lane.b32.xlu1 %v5372_v36, %s4856_s17 }
 0x12b   : > { %879 = vst.msk [vmem:[#allocation3 + $0x160] sm:$0xff] %vm856_vm4, %v805_v62  ;;  %v2184_v62 = vld [vmem:[%s7371_s2 + $0x40] sm:$0xff] }
 0x12c   : > { %1182 = vrot.lane.b32.xlu0 %v5390_v61, %s4856_s17  ;;  %v807_v4 = vpop.permute.xlu1 %806 }
 0x12d   : > { %880 = vst.msk [vmem:[#allocation3 + $0x170] sm:$0xff] %vm856_vm4, %v807_v4  ;;  %v7442_v4 = vld [vmem:[#allocation10_spill] sm:$0xff] }
 0x12e   : > { %v809_v5 = vpop.permute.xlu0 %808  ;;  %1184 = vrot.lane.b32.xlu1 %v5392_v63, %s4856_s17 }
 0x12f   : > { %881 = vst.msk [vmem:[#allocation3 + $0x180] sm:$0xff] %vm856_vm4, %v809_v5  ;;  %v2183_v5 = vld [vmem:[%s7371_s2 + $0x38] sm:$0xff] }
 0x130   : > { %1186 = vrot.lane.b32.xlu0 %v5410_v47, %s4856_s17  ;;  %v811_v12 = vpop.permute.xlu1 %810 }
 0x131   : > { %882 = vst.msk [vmem:[#allocation3 + $0x190] sm:$0xff] %vm856_vm4, %v811_v12 }
 0x132   : > { %v813_v14 = vpop.permute.xlu0 %812  ;;  %1188 = vrot.lane.b32.xlu1 %v5412_v53, %s4856_s17 }
 0x133   : > { %883 = vst.msk [vmem:[#allocation3 + $0x1a0] sm:$0xff] %vm856_vm4, %v813_v14 }
 0x134   : > { %1190 = vrot.lane.b32.xlu0 %v5430_v28, %s4856_s17  ;;  %v815_v38 = vpop.permute.xlu1 %814 }
 0x135   : > { %884 = vst.msk [vmem:[#allocation3 + $0x1b0] sm:$0xff] %vm856_vm4, %v815_v38  ;;  %v7443_v38 = vld [vmem:[#allocation11_spill] sm:$0xff] }
 0x136   : > { %v817_v45 = vpop.permute.xlu0 %816  ;;  %1192 = vrot.lane.b32.xlu1 %v5432_v7, %s4856_s17 }
 0x137   : > { %885 = vst.msk [vmem:[#allocation3 + $0x1c0] sm:$0xff] %vm856_vm4, %v817_v45  ;;  %v2182_v45 = vld [vmem:[%s7371_s2 + $0x30] sm:$0xff] }
 0x138   : > { %1194 = vrot.lane.b32.xlu0 %v5450_v11, %s4856_s17  ;;  %v819_v8 = vpop.permute.xlu1 %818 }
 0x139   : > { %886 = vst.msk [vmem:[#allocation3 + $0x1d0] sm:$0xff] %vm856_vm4, %v819_v8  ;;  %v7444_v8 = vld [vmem:[#allocation12_spill] sm:$0xff] }
 0x13a   : > { %v821_v20 = vpop.permute.xlu0 %820  ;;  %1196 = vrot.lane.b32.xlu1 %v5452_v54, %s4856_s17 }
 0x13b   : > { %887 = vst.msk [vmem:[#allocation3 + $0x1e0] sm:$0xff] %vm856_vm4, %v821_v20  ;;  %v2181_v20 = vld [vmem:[%s7371_s2 + $0x28] sm:$0xff] }
 0x13c   : > { %1198 = vrot.lane.b32.xlu0 %v5470_v58, %s4856_s17  ;;  %v823_v22 = vpop.permute.xlu1 %822  ;;  %v1112_v58 = vld [vmem:[#allocation2 + $0x207] sm:$0xff] }
 0x13d   : > { %888 = vst.msk [vmem:[#allocation3 + $0x1f0] sm:$0xff] %vm856_vm4, %v823_v22 }
 0x13e   : > { %v958_v6 = vpop.permute.xlu0 %957  ;;  %1200 = vrot.lane.b32.xlu1 %v7434_v55, %s4856_s17  ;;  %v7445_v55 = vld [vmem:[#allocation13_spill] sm:$0xff] }
 0x13f   : > { %1052 = vst.msk [vmem:[#allocation3 + $0x20] sm:$0xff] %vm1049_vm5, %v958_v6 }
 0x140   : > { %1202 = vrot.lane.b32.xlu0 %v5484_v3, %s4856_s17  ;;  %v960_v50 = vpop.permute.xlu1 %959 }
 0x141   : > { %1053 = vst.msk [vmem:[#allocation3 + $0x30] sm:$0xff] %vm1049_vm5, %v960_v50  ;;  %v2180_v50 = vld [vmem:[%s7371_s2 + $0x20] sm:$0xff] }
 0x142   : > { %v962_v33 = vpop.permute.xlu0 %961  ;;  %1204 = vrot.lane.b32.xlu1 %v5486_v37, %s4856_s17  ;;  %v2190_v37 = vld [vmem:[%s7371_s2 + $0x70] sm:$0xff] }
 0x143   : > { %1054 = vst.msk [vmem:[#allocation3 + $0x40] sm:$0xff] %vm1049_vm5, %v962_v33  ;;  %2293 = vmatpush1.msra.mxu0 %v2190_v37  ;;  %v7446_v33 = vld [vmem:[#allocation14_spill] sm:$0xff]  ;;  %v7448_v37 = vld [vmem:[#allocation16_spill] sm:$0xff] }
 0x144   : > { %1206 = vrot.lane.b32.xlu0 %v1112_v58, %s4856_s17  ;;  %v964_v13 = vpop.permute.xlu1 %963  ;;  %2294 = vmatprep.subr.mxu0 %v7435_v18  ;;  %v2179_v58 = vld [vmem:[%s7371_s2 + $0x18] sm:$0xff] }
 0x145   : > { %1055 = vst.msk [vmem:[#allocation3 + $0x50] sm:$0xff] %vm1049_vm5, %v964_v13  ;;  %2295 = vmatpush1.msra.mxu0 %v2189_v21 }
 0x146   : > { %v966_v3 = vpop.permute.xlu0 %965  ;;  %1208 = vrot.lane.b32.xlu1 %v1113_v0, %s4856_s17  ;;  %2296 = vmatprep.subr.mxu0 %v7435_v18  ;;  %v2178_v0 = vld [vmem:[%s7371_s2 + $0x10] sm:$0xff] }
 0x147   : > { %1056 = vst.msk [vmem:[#allocation3 + $0x60] sm:$0xff] %vm1049_vm5, %v966_v3  ;;  %2297 = vmatpush1.msra.mxu0 %v2188_v29  ;;  %v7447_v3 = vld [vmem:[#allocation15_spill] sm:$0xff]  ;;  %v7450_v29 = vld [vmem:[#allocation18_spill] sm:$0xff] }
 0x148   : > { %1339 = vrot.lane.b32.xlu0 %v7436_v19, %s4857_s22  ;;  %v968_v26 = vpop.permute.xlu1 %967  ;;  %2298 = vmatprep.subr.mxu0 %v7435_v18  ;;  %v2177_v19 = vld [vmem:[%s7371_s2 + $0x8] sm:$0xff] }
 0x149   : > { %1057 = vst.msk [vmem:[#allocation3 + $0x70] sm:$0xff] %vm1049_vm5, %v968_v26  ;;  %2299 = vmatpush1.msra.mxu0 %v2187_v34 }
 0x14a   : > { %v970_v27 = vpop.permute.xlu0 %969  ;;  %1341 = vrot.lane.b32.xlu1 %v7437_v15, %s4857_s22  ;;  %2300 = vmatprep.subr.mxu0 %v7435_v18  ;;  %v2176_v15 = vld [vmem:[%s7371_s2] sm:$0xff] }
 0x14b   : > { %1058 = vst.msk [vmem:[#allocation3 + $0x80] sm:$0xff] %vm1049_vm5, %v970_v27  ;;  %2301 = vmatpush1.msra.mxu0 %v2186_v44  ;;  %v7449_v27 = vld [vmem:[#allocation17_spill] sm:$0xff] }
 0x14c   : > { %1343 = vrot.lane.b32.xlu0 %v7438_v24, %s4857_s22  ;;  %v972_v35 = vpop.permute.xlu1 %971  ;;  %2302 = vmatprep.subr.mxu0 %v7435_v18  ;;  %v2193_v24 = vld [vmem:[%s7371_s2 + $0x88] sm:$0xff] }
 0x14d   : > { %1059 = vst.msk [vmem:[#allocation3 + $0x90] sm:$0xff] %vm1049_vm5, %v972_v35  ;;  %2303 = vmatpush1.msra.mxu0 %v2185_v51  ;;  %v1855_v51 = vld [vmem:[#allocation2 + $0x48] sm:$0xff] }
 0x14e   : > { %v974_v39 = vpop.permute.xlu0 %973  ;;  %1345 = vrot.lane.b32.xlu1 %v7439_v43, %s4857_s22  ;;  %2304 = vmatprep.subr.mxu0 %v7435_v18  ;;  %v2192_v43 = vld [vmem:[%s7371_s2 + $0x80] sm:$0xff] }
 0x14f   : > { %1060 = vst.msk [vmem:[#allocation3 + $0xa0] sm:$0xff] %vm1049_vm5, %v974_v39  ;;  %2305 = vmatpush1.msra.mxu0 %v2184_v62  ;;  %v7451_v39 = vld [vmem:[#allocation19_spill] sm:$0xff]  ;;  %v1470_v62 = vld [vmem:[#allocation2 + $0x49] sm:$0xff] }
 0x150   : > { %1347 = vrot.lane.b32.xlu0 %v7440_v46, %s4857_s22  ;;  %v976_v52 = vpop.permute.xlu1 %975  ;;  %2306 = vmatprep.subr.mxu0 %v7435_v18 }
 0x151   : > { %1061 = vst.msk [vmem:[#allocation3 + $0xb0] sm:$0xff] %vm1049_vm5, %v976_v52  ;;  %2307 = vmatpush1.msra.mxu0 %v2183_v5 }
 0x152   : > { %v978_v59 = vpop.permute.xlu0 %977  ;;  %1349 = vrot.lane.b32.xlu1 %v7441_v60, %s4857_s22  ;;  %2308 = vmatprep.subr.mxu0 %v7435_v18  ;;  %v1856_v60 = vld [vmem:[#allocation2 + $0x50] sm:$0xff] }
 0x153   : > { %1062 = vst.msk [vmem:[#allocation3 + $0xc0] sm:$0xff] %vm1049_vm5, %v978_v59  ;;  %2309 = vmatpush1.msra.mxu0 %v2182_v45  ;;  %v1858_v45 = vld [vmem:[#allocation2 + $0x70] sm:$0xff] }
 0x154   : > { %1351 = vrot.lane.b32.xlu0 %v7442_v4, %s4857_s22  ;;  %v980_v12 = vpop.permute.xlu1 %979  ;;  %2310 = vmatprep.subr.mxu0 %v7435_v18 }
 0x155   : > { %1063 = vst.msk [vmem:[#allocation3 + $0xd0] sm:$0xff] %vm1049_vm5, %v980_v12  ;;  %2311 = vmatpush1.msra.mxu0 %v2181_v20 }
 0x156   : > { %v982_v14 = vpop.permute.xlu0 %981  ;;  %1353 = vrot.lane.b32.xlu1 %v7443_v38, %s4857_s22  ;;  %2312 = vmatprep.subr.mxu0 %v7435_v18 }
 0x157   : > { %1064 = vst.msk [vmem:[#allocation3 + $0xe0] sm:$0xff] %vm1049_vm5, %v982_v14  ;;  %2313 = vmatpush1.msra.mxu0 %v2180_v50  ;;  %v1471_v14 = vld [vmem:[#allocation2 + $0x51] sm:$0xff] }
 0x158   : > { %1355 = vrot.lane.b32.xlu0 %v7444_v8, %s4857_s22  ;;  %v984_v22 = vpop.permute.xlu1 %983  ;;  %2314 = vmatprep.subr.mxu0 %v7435_v18  ;;  %v1472_v8 = vld [vmem:[#allocation2 + $0x69] sm:$0xff]  ;;  %v1473_v50 = vld [vmem:[#allocation2 + $0x71] sm:$0xff] }
 0x159   : > { %1065 = vst.msk [vmem:[#allocation3 + $0xf0] sm:$0xff] %vm1049_vm5, %v984_v22  ;;  %2315 = vmatpush1.msra.mxu0 %v2179_v58 }
 0x15a   : > { %v986_v6 = vpop.permute.xlu0 %985  ;;  %1357 = vrot.lane.b32.xlu1 %v7445_v55, %s4857_s22  ;;  %2316 = vmatprep.subr.mxu0 %v7435_v18 }
 0x15b   : > { %1066 = vst.msk [vmem:[#allocation3 + $0x100] sm:$0xff] %vm1049_vm5, %v986_v6  ;;  %2317 = vmatpush1.msra.mxu0 %v2178_v0 }
 0x15c   : > { %1359 = vrot.lane.b32.xlu0 %v7446_v33, %s4857_s22  ;;  %v988_v41 = vpop.permute.xlu1 %987  ;;  %2318 = vmatprep.subr.mxu0 %v7435_v18 }
 0x15d   : > { %1067 = vst.msk [vmem:[#allocation3 + $0x110] sm:$0xff] %vm1049_vm5, %v988_v41  ;;  %2319 = vmatpush1.msra.mxu0 %v2177_v19  ;;  %v1474_v41 = vld [vmem:[#allocation2 + $0x89] sm:$0xff]  ;;  %v1475_v19 = vld [vmem:[#allocation2 + $0x91] sm:$0xff] }
 0x15e   : > { %v990_v13 = vpop.permute.xlu0 %989  ;;  %1361 = vrot.lane.b32.xlu1 %v7447_v3, %s4857_s22  ;;  %2320 = vmatprep.subr.mxu0 %v7435_v18 }
 0x15f   : > { %1068 = vst.msk [vmem:[#allocation3 + $0x120] sm:$0xff] %vm1049_vm5, %v990_v13  ;;  %2321 = vmatpush1.msra.mxu0 %v2176_v15 }
 0x160   : > { %1363 = vrot.lane.b32.xlu0 %v7448_v37, %s4857_s22  ;;  %v992_v21 = vpop.permute.xlu1 %991  ;;  %2350 = vmatprep.subr.mxu0 %v7435_v18 }
 0x161   : > { %1069 = vst.msk [vmem:[#allocation3 + $0x130] sm:$0xff] %vm1049_vm5, %v992_v21  ;;  %2351 = vmatpush2.msra.mxu0 %v2193_v24 }
 0x162   : > { %v994_v26 = vpop.permute.xlu0 %993  ;;  %1365 = vrot.lane.b32.xlu1 %v7449_v27, %s4857_s22  ;;  %2352 = vmatprep.subr.mxu0 %v7435_v18  ;;  %v1476_v27 = vld [vmem:[#allocation2 + $0xa9] sm:$0xff] }
 0x163   : > { %1070 = vst.msk [vmem:[#allocation3 + $0x140] sm:$0xff] %vm1049_vm5, %v994_v26  ;;  %2353 = vmatpush2.msra.mxu0 %v2192_v43 }
 0x164   : > { %1367 = vrot.lane.b32.xlu0 %v7450_v29, %s4857_s22  ;;  %v996_v34 = vpop.permute.xlu1 %995 }
 0x165   : > { %1071 = vst.msk [vmem:[#allocation3 + $0x150] sm:$0xff] %vm1049_vm5, %v996_v34 }
 0x166   : > { %v998_v35 = vpop.permute.xlu0 %997  ;;  %1369 = vrot.lane.b32.xlu1 %v7451_v39, %s4857_s22 }
 0x167   : > { %1072 = vst.msk [vmem:[#allocation3 + $0x160] sm:$0xff] %vm1049_vm5, %v998_v35  ;;  %v1477_v35 = vld [vmem:[#allocation2 + $0xb1] sm:$0xff] }
 0x168   : > { %1532 = vrot.lane.b32.xlu0 %v5494_v17, %s4858_s23  ;;  %v1000_v44 = vpop.permute.xlu1 %999 }
 0x169   : > { %1073 = vst.msk [vmem:[#allocation3 + $0x170] sm:$0xff] %vm1049_vm5, %v1000_v44  ;;  %v1478_v44 = vld [vmem:[#allocation2 + $0xc9] sm:$0xff] }
 0x16a   : > { %v1002_v46 = vpop.permute.xlu0 %1001  ;;  %1726 = vrot.lane.b32.xlu1 %v5169_v16, %s4859_s24 }
 0x16b   : > { %1074 = vst.msk [vmem:[#allocation3 + $0x180] sm:$0xff] %vm1049_vm5, %v1002_v46 }
 0x16c   : > { %1919 = vrot.lane.b32.xlu0 %v1855_v51, %s4860_s25  ;;  %v1004_v52 = vpop.permute.xlu1 %1003 }
 0x16d   : > { %1075 = vst.msk [vmem:[#allocation3 + $0x190] sm:$0xff] %vm1049_vm5, %v1004_v52 }
 0x16e   : > { %v1006_v59 = vpop.permute.xlu0 %1005  ;;  %1534 = vrot.lane.b32.xlu1 %v5502_v23, %s4858_s23 }
 0x16f   : > { %1076 = vst.msk [vmem:[#allocation3 + $0x1a0] sm:$0xff] %vm1049_vm5, %v1006_v59 }
 0x170   : > { %1728 = vrot.lane.b32.xlu0 %v5195_v25, %s4859_s24  ;;  %v1008_v17 = vpop.permute.xlu1 %1007  ;;  %v1857_v25 = vld [vmem:[#allocation2 + $0x68] sm:$0xff] }
 0x171   : > { %1077 = vst.msk [vmem:[#allocation3 + $0x1b0] sm:$0xff] %vm1049_vm5, %v1008_v17  ;;  %v1479_v17 = vld [vmem:[#allocation2 + $0xd1] sm:$0xff] }
 0x172   : > { %v1010_v16 = vpop.permute.xlu0 %1009  ;;  %1921 = vrot.lane.b32.xlu1 %v1856_v60, %s4860_s25 }
 0x173   : > { %1078 = vst.msk [vmem:[#allocation3 + $0x1c0] sm:$0xff] %vm1049_vm5, %v1010_v16 }
 0x174   : > { %1536 = vrot.lane.b32.xlu0 %v1470_v62, %s4858_s23  ;;  %v1012_v4 = vpop.permute.xlu1 %1011  ;;  %v1480_v62 = vld [vmem:[#allocation2 + $0xe9] sm:$0xff] }
 0x175   : > { %1079 = vst.msk [vmem:[#allocation3 + $0x1d0] sm:$0xff] %vm1049_vm5, %v1012_v4 }
 0x176   : > { %v1014_v5 = vpop.permute.xlu0 %1013  ;;  %1730 = vrot.lane.b32.xlu1 %v5217_v31, %s4859_s24 }
 0x177   : > { %1080 = vst.msk [vmem:[#allocation3 + $0x1e0] sm:$0xff] %vm1049_vm5, %v1014_v5 }
 0x178   : > { %1923 = vrot.lane.b32.xlu0 %v1857_v25, %s4860_s25  ;;  %v1016_v23 = vpop.permute.xlu1 %1015 }
 0x179   : > { %1081 = vst.msk [vmem:[#allocation3 + $0x1f0] sm:$0xff] %vm1049_vm5, %v1016_v23 }
 0x17a   : > { %v1147_v12 = vpop.permute.xlu0 %1146  ;;  %1538 = vrot.lane.b32.xlu1 %v1471_v14, %s4858_s23 }
 0x17b   : > { %1243 = vst.msk [vmem:[#allocation3] sm:$0xff] %vm1242_vm6, %v1147_v12  ;;  %v1481_v12 = vld [vmem:[#allocation2 + $0xf1] sm:$0xff] }
 0x17c   : > { %1732 = vrot.lane.b32.xlu0 %v5219_v32, %s4859_s24  ;;  %v1149_v38 = vpop.permute.xlu1 %1148  ;;  %v1859_v32 = vld [vmem:[#allocation2 + $0x88] sm:$0xff] }
 0x17d   : > { %1244 = vst.msk [vmem:[#allocation3 + $0x10] sm:$0xff] %vm1242_vm6, %v1149_v38  ;;  %v1868_v38 = vld [vmem:[#allocation2 + $0x110] sm:$0xff] }
 0x17e   : > { %v1151_v31 = vpop.permute.xlu0 %1150  ;;  %1925 = vrot.lane.b32.xlu1 %v1858_v45, %s4860_s25 }
 0x17f   : > { %1245 = vst.msk [vmem:[#allocation3 + $0x20] sm:$0xff] %vm1242_vm6, %v1151_v31  ;;  %v1482_v31 = vld [vmem:[#allocation2 + $0x109] sm:$0xff] }
 0x180   : > { %1540 = vrot.lane.b32.xlu0 %v1472_v8, %s4858_s23  ;;  %v1153_v20 = vpop.permute.xlu1 %1152 }
 0x181   : > { %1246 = vst.msk [vmem:[#allocation3 + $0x30] sm:$0xff] %vm1242_vm6, %v1153_v20 }
 0x182   : > { %v1155_v22 = vpop.permute.xlu0 %1154  ;;  %1734 = vrot.lane.b32.xlu1 %v5242_v40, %s4859_s24  ;;  %v1860_v40 = vld [vmem:[#allocation2 + $0x90] sm:$0xff] }
 0x183   : > { %1247 = vst.msk [vmem:[#allocation3 + $0x40] sm:$0xff] %vm1242_vm6, %v1155_v22 }
 0x184   : > { %1927 = vrot.lane.b32.xlu0 %v1859_v32, %s4860_s25  ;;  %v1157_v6 = vpop.permute.xlu1 %1156  ;;  %v1483_v32 = vld [vmem:[#allocation2 + $0x111] sm:$0xff] }
 0x185   : > { %1248 = vst.msk [vmem:[#allocation3 + $0x50] sm:$0xff] %vm1242_vm6, %v1157_v6 }
 0x186   : > { %v1159_v55 = vpop.permute.xlu0 %1158  ;;  %1542 = vrot.lane.b32.xlu1 %v1473_v50, %s4858_s23 }
 0x187   : > { %1249 = vst.msk [vmem:[#allocation3 + $0x60] sm:$0xff] %vm1242_vm6, %v1159_v55 }
 0x188   : > { %1736 = vrot.lane.b32.xlu0 %v5250_v42, %s4859_s24  ;;  %v1161_v33 = vpop.permute.xlu1 %1160  ;;  %v1861_v42 = vld [vmem:[#allocation2 + $0xa8] sm:$0xff] }
 0x189   : > { %1250 = vst.msk [vmem:[#allocation3 + $0x70] sm:$0xff] %vm1242_vm6, %v1161_v33 }
 0x18a   : > { %v1163_v58 = vpop.permute.xlu0 %1162  ;;  %1929 = vrot.lane.b32.xlu1 %v1860_v40, %s4860_s25 }
 0x18b   : > { %1251 = vst.msk [vmem:[#allocation3 + $0x80] sm:$0xff] %vm1242_vm6, %v1163_v58  ;;  %v1484_v58 = vld [vmem:[#allocation2 + $0x129] sm:$0xff] }
 0x18c   : > { %1544 = vrot.lane.b32.xlu0 %v1474_v41, %s4858_s23  ;;  %v1165_v13 = vpop.permute.xlu1 %1164  ;;  %v1871_v41 = vld [vmem:[#allocation2 + $0x148] sm:$0xff] }
 0x18d   : > { %1252 = vst.msk [vmem:[#allocation3 + $0x90] sm:$0xff] %vm1242_vm6, %v1165_v13 }
 0x18e   : > { %v1167_v3 = vpop.permute.xlu0 %1166  ;;  %1738 = vrot.lane.b32.xlu1 %v5268_v48, %s4859_s24  ;;  %v1862_v48 = vld [vmem:[#allocation2 + $0xb0] sm:$0xff] }
 0x18f   : > { %1253 = vst.msk [vmem:[#allocation3 + $0xa0] sm:$0xff] %vm1242_vm6, %v1167_v3 }
 0x190   : > { %1931 = vrot.lane.b32.xlu0 %v1861_v42, %s4860_s25  ;;  %v1169_v0 = vpop.permute.xlu1 %1168  ;;  %v1485_v42 = vld [vmem:[#allocation2 + $0x131] sm:$0xff] }
 0x191   : > { %1254 = vst.msk [vmem:[#allocation3 + $0xb0] sm:$0xff] %vm1242_vm6, %v1169_v0 }
 0x192   : > { %v1171_v37 = vpop.permute.xlu0 %1170  ;;  %1546 = vrot.lane.b32.xlu1 %v1475_v19, %s4858_s23 }
 0x193   : > { %1255 = vst.msk [vmem:[#allocation3 + $0xc0] sm:$0xff] %vm1242_vm6, %v1171_v37  ;;  %v1872_v37 = vld [vmem:[#allocation2 + $0x150] sm:$0xff] }
 0x194   : > { %1740 = vrot.lane.b32.xlu0 %v5270_v49, %s4859_s24  ;;  %v1173_v21 = vpop.permute.xlu1 %1172  ;;  %v1863_v49 = vld [vmem:[#allocation2 + $0xc8] sm:$0xff] }
 0x195   : > { %1256 = vst.msk [vmem:[#allocation3 + $0xd0] sm:$0xff] %vm1242_vm6, %v1173_v21 }
 0x196   : > { %v1175_v26 = vpop.permute.xlu0 %1174  ;;  %1933 = vrot.lane.b32.xlu1 %v1862_v48, %s4860_s25 }
 0x197   : > { %1257 = vst.msk [vmem:[#allocation3 + $0xe0] sm:$0xff] %vm1242_vm6, %v1175_v26  ;;  %v1486_v26 = vld [vmem:[#allocation2 + $0x149] sm:$0xff] }
 0x198   : > { %1548 = vrot.lane.b32.xlu0 %v1476_v27, %s4858_s23  ;;  %v1177_v15 = vpop.permute.xlu1 %1176  ;;  %v1873_v27 = vld [vmem:[#allocation2 + $0x168] sm:$0xff] }
 0x199   : > { %1258 = vst.msk [vmem:[#allocation3 + $0xf0] sm:$0xff] %vm1242_vm6, %v1177_v15 }
 0x19a   : > { %v1179_v29 = vpop.permute.xlu0 %1178  ;;  %1742 = vrot.lane.b32.xlu1 %v5294_v56, %s4859_s24  ;;  %v1864_v56 = vld [vmem:[#allocation2 + $0xd0] sm:$0xff] }
 0x19b   : > { %1259 = vst.msk [vmem:[#allocation3 + $0x100] sm:$0xff] %vm1242_vm6, %v1179_v29 }
 0x19c   : > { %1935 = vrot.lane.b32.xlu0 %v1863_v49, %s4860_s25  ;;  %v1181_v24 = vpop.permute.xlu1 %1180  ;;  %v1487_v49 = vld [vmem:[#allocation2 + $0x151] sm:$0xff] }
 0x19d   : > { %1260 = vst.msk [vmem:[#allocation3 + $0x110] sm:$0xff] %vm1242_vm6, %v1181_v24 }
 0x19e   : > { %v1183_v34 = vpop.permute.xlu0 %1182  ;;  %1550 = vrot.lane.b32.xlu1 %v1477_v35, %s4858_s23 }
 0x19f   : > { %1261 = vst.msk [vmem:[#allocation3 + $0x120] sm:$0xff] %vm1242_vm6, %v1183_v34  ;;  %v1874_v34 = vld [vmem:[#allocation2 + $0x170] sm:$0xff] }
 0x1a0   : > { %1744 = vrot.lane.b32.xlu0 %v5296_v57, %s4859_s24  ;;  %v1185_v39 = vpop.permute.xlu1 %1184  ;;  %v1865_v57 = vld [vmem:[#allocation2 + $0xe8] sm:$0xff] }
 0x1a1   : > { %1262 = vst.msk [vmem:[#allocation3 + $0x130] sm:$0xff] %vm1242_vm6, %v1185_v39  ;;  %v2115_v39 = vld [vmem:[#allocation3 + $0x18] sm:$0xff] }
 0x1a2   : > { %v1187_v43 = vpop.permute.xlu0 %1186  ;;  %1937 = vrot.lane.b32.xlu1 %v1864_v56, %s4860_s25  ;;  %v1488_v56 = vld [vmem:[#allocation2 + $0x169] sm:$0xff] }
 0x1a3   : > { %1263 = vst.msk [vmem:[#allocation3 + $0x140] sm:$0xff] %vm1242_vm6, %v1187_v43 }
 0x1a4   : > { %1552 = vrot.lane.b32.xlu0 %v1478_v44, %s4858_s23  ;;  %v1189_v46 = vpop.permute.xlu1 %1188 }
 0x1a5   : > { %1264 = vst.msk [vmem:[#allocation3 + $0x150] sm:$0xff] %vm1242_vm6, %v1189_v46 }
 0x1a6   : > { %v1191_v51 = vpop.permute.xlu0 %1190  ;;  %1746 = vrot.lane.b32.xlu1 %v5320_v1, %s4859_s24  ;;  %v1866_v1 = vld [vmem:[#allocation2 + $0xf0] sm:$0xff] }
 0x1a7   : > { %1265 = vst.msk [vmem:[#allocation3 + $0x160] sm:$0xff] %vm1242_vm6, %v1191_v51 }
 0x1a8   : > { %1939 = vrot.lane.b32.xlu0 %v1865_v57, %s4860_s25  ;;  %v1193_v52 = vpop.permute.xlu1 %1192  ;;  %v1875_v57 = vld [vmem:[#allocation2 + $0x188] sm:$0xff] }
 0x1a9   : > { %1266 = vst.msk [vmem:[#allocation3 + $0x170] sm:$0xff] %vm1242_vm6, %v1193_v52  ;;  %v2117_v52 = vld [vmem:[#allocation3 + $0x28] sm:$0xff] }
 0x1aa   : > { %v1195_v59 = vpop.permute.xlu0 %1194  ;;  %1554 = vrot.lane.b32.xlu1 %v1479_v17, %s4858_s23  ;;  %v1489_v17 = vld [vmem:[#allocation2 + $0x171] sm:$0xff] }
 0x1ab   : > { %1267 = vst.msk [vmem:[#allocation3 + $0x180] sm:$0xff] %vm1242_vm6, %v1195_v59 }
 0x1ac   : > { %1748 = vrot.lane.b32.xlu0 %v5322_v2, %s4859_s24  ;;  %v1197_v16 = vpop.permute.xlu1 %1196  ;;  %v1867_v2 = vld [vmem:[#allocation2 + $0x108] sm:$0xff] }
 0x1ad   : > { %1268 = vst.msk [vmem:[#allocation3 + $0x190] sm:$0xff] %vm1242_vm6, %v1197_v16 }
 0x1ae   : > { %v1199_v60 = vpop.permute.xlu0 %1198  ;;  %1941 = vrot.lane.b32.xlu1 %v1866_v1, %s4860_s25 }
 0x1af   : > { %1269 = vst.msk [vmem:[#allocation3 + $0x1a0] sm:$0xff] %vm1242_vm6, %v1199_v60  ;;  %v2119_v60 = vld [vmem:[#allocation3 + $0x38] sm:$0xff] }
 0x1b0   : > { %1556 = vrot.lane.b32.xlu0 %v1480_v62, %s4858_s23  ;;  %v1201_v4 = vpop.permute.xlu1 %1200 }
 0x1b1   : > { %1270 = vst.msk [vmem:[#allocation3 + $0x1b0] sm:$0xff] %vm1242_vm6, %v1201_v4  ;;  %v1876_v4 = vld [vmem:[#allocation2 + $0x190] sm:$0xff] }
 0x1b2   : > { %v1203_v5 = vpop.permute.xlu0 %1202  ;;  %1750 = vrot.lane.b32.xlu1 %v5346_v9, %s4859_s24 }
 0x1b3   : > { %1271 = vst.msk [vmem:[#allocation3 + $0x1c0] sm:$0xff] %vm1242_vm6, %v1203_v5 }
 0x1b4   : > { %1943 = vrot.lane.b32.xlu0 %v1867_v2, %s4860_s25  ;;  %v1205_v25 = vpop.permute.xlu1 %1204 }
 0x1b5   : > { %1272 = vst.msk [vmem:[#allocation3 + $0x1d0] sm:$0xff] %vm1242_vm6, %v1205_v25 }
 0x1b6   : > { %v1207_v23 = vpop.permute.xlu0 %1206  ;;  %1558 = vrot.lane.b32.xlu1 %v1481_v12, %s4858_s23 }
 0x1b7   : > { %1273 = vst.msk [vmem:[#allocation3 + $0x1e0] sm:$0xff] %vm1242_vm6, %v1207_v23  ;;  %v2121_v23 = vld [vmem:[#allocation3 + $0x48] sm:$0xff] }
 0x1b8   : > { %1752 = vrot.lane.b32.xlu0 %v5348_v10, %s4859_s24  ;;  %v1209_v14 = vpop.permute.xlu1 %1208  ;;  %v1869_v10 = vld [vmem:[#allocation2 + $0x128] sm:$0xff] }
 0x1b9   : > { %1274 = vst.msk [vmem:[#allocation3 + $0x1f0] sm:$0xff] %vm1242_vm6, %v1209_v14 }
 0x1ba   : > { %v1340_v9 = vpop.permute.xlu0 %1339  ;;  %1945 = vrot.lane.b32.xlu1 %v1868_v38, %s4860_s25 }
 0x1bb   : > { %1436 = vst.msk [vmem:[#allocation3] sm:$0xff] %vm1435_vm7, %v1340_v9  ;;  %v1877_v9 = vld [vmem:[#allocation2 + $0x1a8] sm:$0xff] }
 0x1bc   : > { %1560 = vrot.lane.b32.xlu0 %v1482_v31, %s4858_s23  ;;  %v1342_v45 = vpop.permute.xlu1 %1341  ;;  %v2123_v31 = vld [vmem:[#allocation3 + $0x58] sm:$0xff] }
 0x1bd   : > { %1437 = vst.msk [vmem:[#allocation3 + $0x10] sm:$0xff] %vm1435_vm7, %v1342_v45 }
 0x1be   : > { %v1344_v8 = vpop.permute.xlu0 %1343  ;;  %1754 = vrot.lane.b32.xlu1 %v5370_v30, %s4859_s24  ;;  %v1870_v30 = vld [vmem:[#allocation2 + $0x130] sm:$0xff] }
 0x1bf   : > { %1438 = vst.msk [vmem:[#allocation3 + $0x20] sm:$0xff] %vm1435_vm7, %v1344_v8  ;;  %v1491_v8 = vld [vmem:[#allocation2 + $0x191] sm:$0xff] }
 0x1c0   : > { %1947 = vrot.lane.b32.xlu0 %v1869_v10, %s4860_s25  ;;  %v1346_v20 = vpop.permute.xlu1 %1345 }
 0x1c1   : > { %1439 = vst.msk [vmem:[#allocation3 + $0x30] sm:$0xff] %vm1435_vm7, %v1346_v20 }
 0x1c2   : > { %v1348_v22 = vpop.permute.xlu0 %1347  ;;  %1562 = vrot.lane.b32.xlu1 %v1483_v32, %s4858_s23  ;;  %v1878_v32 = vld [vmem:[#allocation2 + $0x1b0] sm:$0xff] }
 0x1c3   : > { %1440 = vst.msk [vmem:[#allocation3 + $0x40] sm:$0xff] %vm1435_vm7, %v1348_v22 }
 0x1c4   : > { %1756 = vrot.lane.b32.xlu0 %v5372_v36, %s4859_s24  ;;  %v1350_v6 = vpop.permute.xlu1 %1349 }
 0x1c5   : > { %1441 = vst.msk [vmem:[#allocation3 + $0x50] sm:$0xff] %vm1435_vm7, %v1350_v6  ;;  %v2125_v6 = vld [vmem:[#allocation3 + $0x68] sm:$0xff] }
 0x1c6   : > { %v1352_v55 = vpop.permute.xlu0 %1351  ;;  %1949 = vrot.lane.b32.xlu1 %v1870_v30, %s4860_s25 }
 0x1c7   : > { %1442 = vst.msk [vmem:[#allocation3 + $0x60] sm:$0xff] %vm1435_vm7, %v1352_v55 }
 0x1c8   : > { %1371 = vrot.lane.b32.xlu0 %v1869_v10, %s4857_s22  ;;  %v1354_v50 = vpop.permute.xlu1 %1353 }
 0x1c9   : > { %1443 = vst.msk [vmem:[#allocation3 + $0x70] sm:$0xff] %vm1435_vm7, %v1354_v50 }
 0x1ca   : > { %v1356_v33 = vpop.permute.xlu0 %1355  ;;  %1564 = vrot.lane.b32.xlu1 %v1484_v58, %s4858_s23  ;;  %v2127_v58 = vld [vmem:[#allocation3 + $0x78] sm:$0xff] }
 0x1cb   : > { %1444 = vst.msk [vmem:[#allocation3 + $0x80] sm:$0xff] %vm1435_vm7, %v1356_v33  ;;  %v1686_v33 = vld [vmem:[#allocation2 + $0x1c7] sm:$0xff] }
 0x1cc   : > { %1758 = vrot.lane.b32.xlu0 %v5390_v61, %s4859_s24  ;;  %v1358_v36 = vpop.permute.xlu1 %1357 }
 0x1cd   : > { %1445 = vst.msk [vmem:[#allocation3 + $0x90] sm:$0xff] %vm1435_vm7, %v1358_v36 }
 0x1ce   : > { %v1360_v40 = vpop.permute.xlu0 %1359  ;;  %1951 = vrot.lane.b32.xlu1 %v1871_v41, %s4860_s25 }
 0x1cf   : > { %1446 = vst.msk [vmem:[#allocation3 + $0xa0] sm:$0xff] %vm1435_vm7, %v1360_v40 }
 0x1d0   : > { %1373 = vrot.lane.b32.xlu0 %v1870_v30, %s4857_s22  ;;  %v1362_v13 = vpop.permute.xlu1 %1361  ;;  %v1492_v30 = vld [vmem:[#allocation2 + $0x1a9] sm:$0xff] }
 0x1d1   : > { %1447 = vst.msk [vmem:[#allocation3 + $0xb0] sm:$0xff] %vm1435_vm7, %v1362_v13 }
 0x1d2   : > { %v1364_v3 = vpop.permute.xlu0 %1363  ;;  %1566 = vrot.lane.b32.xlu1 %v1485_v42, %s4858_s23 }
 0x1d3   : > { %1448 = vst.msk [vmem:[#allocation3 + $0xc0] sm:$0xff] %vm1435_vm7, %v1364_v3 }
 0x1d4   : > { %1760 = vrot.lane.b32.xlu0 %v5392_v63, %s4859_s24  ;;  %v1366_v61 = vpop.permute.xlu1 %1365 }
 0x1d5   : > { %1449 = vst.msk [vmem:[#allocation3 + $0xd0] sm:$0xff] %vm1435_vm7, %v1366_v61  ;;  %v1493_v61 = vld [vmem:[#allocation2 + $0x1b1] sm:$0xff] }
 0x1d6   : > { %v1368_v0 = vpop.permute.xlu0 %1367  ;;  %1953 = vrot.lane.b32.xlu1 %v1872_v37, %s4860_s25 }
 0x1d7   : > { %1450 = vst.msk [vmem:[#allocation3 + $0xe0] sm:$0xff] %vm1435_vm7, %v1368_v0  ;;  %v2129_v0 = vld [vmem:[#allocation3 + $0x88] sm:$0xff] }
 0x1d8   : > { %1375 = vrot.lane.b32.xlu0 %v1871_v41, %s4857_s22  ;;  %v1370_v19 = vpop.permute.xlu1 %1369  ;;  %v1879_v41 = vld [vmem:[#allocation2 + $0x1c8] sm:$0xff] }
 0x1d9   : > { %1451 = vst.msk [vmem:[#allocation3 + $0xf0] sm:$0xff] %vm1435_vm7, %v1370_v19 }
 0x1da   : > { %v1533_v21 = vpop.permute.xlu0 %1532  ;;  %1568 = vrot.lane.b32.xlu1 %v1486_v26, %s4858_s23  ;;  %v1880_v26 = vld [vmem:[#allocation2 + $0x1d0] sm:$0xff] }
 0x1db   : > { %1629 = vst.msk [vmem:[#allocation3] sm:$0xff] %vm1628_vm8, %v1533_v21 }
 0x1dc   : > { %1762 = vrot.lane.b32.xlu0 %v5410_v47, %s4859_s24  ;;  %v1727_v63 = vpop.permute.xlu1 %1726 }
 0x1dd   : > { %1823 = vst.msk [vmem:[#allocation3] sm:$0xff] %vm1822_vm9, %v1727_v63 }
 0x1de   : > { %v1920_v48 = vpop.permute.xlu0 %1919  ;;  %1955 = vrot.lane.b32.xlu1 %v1873_v27, %s4860_s25 }
 0x1df   : > { %2016 = vst.msk [vmem:[#allocation3] sm:$0xff] %vm2015_vm10, %v1920_v48  ;;  %v2131_v48 = vld [vmem:[#allocation3 + $0x98] sm:$0xff] }
 0x1e0   : > { %1377 = vrot.lane.b32.xlu0 %v1872_v37, %s4857_s22  ;;  %v1535_v15 = vpop.permute.xlu1 %1534  ;;  %v1687_v37 = vld [vmem:[#allocation2 + $0x1cf] sm:$0xff] }
 0x1e1   : > { %1630 = vst.msk [vmem:[#allocation3 + $0x10] sm:$0xff] %vm1628_vm8, %v1535_v15 }
 0x1e2   : > { %v1729_v29 = vpop.permute.xlu0 %1728  ;;  %1570 = vrot.lane.b32.xlu1 %v1487_v49, %s4858_s23  ;;  %v1688_v49 = vld [vmem:[#allocation2 + $0x1e7] sm:$0xff] }
 0x1e3   : > { %1824 = vst.msk [vmem:[#allocation3 + $0x10] sm:$0xff] %vm1822_vm9, %v1729_v29  ;;  %v1494_v29 = vld [vmem:[#allocation2 + $0x1c9] sm:$0xff] }
 0x1e4   : > { %1764 = vrot.lane.b32.xlu0 %v5412_v53, %s4859_s24  ;;  %v1922_v47 = vpop.permute.xlu1 %1921 }
 0x1e5   : > { %2017 = vst.msk [vmem:[#allocation3 + $0x10] sm:$0xff] %vm2015_vm10, %v1922_v47 }
 0x1e6   : > { %v1537_v24 = vpop.permute.xlu0 %1536  ;;  %v2112_v35 = vld [vmem:[#allocation3] sm:$0xff]  ;;  %1957 = vrot.lane.b32.xlu1 %v1874_v34, %s4860_s25 }
 0x1e7   : > { %1631 = vst.msk [vmem:[#allocation3 + $0x20] sm:$0xff] %vm1628_vm8, %v1537_v24  ;;  %2355 = vmatmul.mubr.f32.vlgmr.msra.gmra.mxu0 %v2112_v35  ;;  %v1881_v35 = vld [vmem:[#allocation2 + $0x1e8] sm:$0xff] }
 0x1e8   : > { %1379 = vrot.lane.b32.xlu0 %v1873_v27, %s4857_s22  ;;  %4753 = vmatprep.mubr.msk.f32.mxu0 %vm326_vm0, %v2115_v39  ;;  %v1731_v43 = vpop.permute.xlu1 %1730  ;;  %v2133_v39 = vld [vmem:[#allocation3 + $0xa8] sm:$0xff] }
 0x1e9   : > { %1825 = vst.msk [vmem:[#allocation3 + $0x20] sm:$0xff] %vm1822_vm9, %v1731_v43 }
 0x1ea   : > { %v1924_v53 = vpop.permute.xlu0 %1923  ;;  %1572 = vrot.lane.b32.xlu1 %v1488_v56, %s4858_s23  ;;  %v1495_v56 = vld [vmem:[#allocation2 + $0x1d1] sm:$0xff] }
 0x1eb   : > { %2018 = vst.msk [vmem:[#allocation3 + $0x20] sm:$0xff] %vm2015_vm10, %v1924_v53 }
 0x1ec   : > { %1766 = vrot.lane.b32.xlu0 %v5430_v28, %s4859_s24  ;;  %v1539_v44 = vpop.permute.xlu1 %1538  ;;  %v2114_v46 = vld [vmem:[#allocation3 + $0x10] sm:$0xff] }
 0x1ed   : > { %1632 = vst.msk [vmem:[#allocation3 + $0x30] sm:$0xff] %vm1628_vm8, %v1539_v44  ;;  %2360 = vmatmul.mubr.f32.gmra.mxu0 %v2114_v46  ;;  %v1689_v46 = vld [vmem:[#allocation2 + $0x1ef] sm:$0xff] }
 0x1ee   : > { %v1733_v51 = vpop.permute.xlu0 %1732  ;;  %1959 = vrot.lane.b32.xlu1 %v1875_v57, %s4860_s25  ;;  %4754 = vmatprep.mubr.msk.f32.mxu0 %vm326_vm0, %v2117_v52 }
 0x1ef   : > { %1826 = vst.msk [vmem:[#allocation3 + $0x30] sm:$0xff] %vm1822_vm9, %v1733_v51  ;;  %v2135_v51 = vld [vmem:[#allocation3 + $0xb8] sm:$0xff] }
 0x1f0   : > { %1381 = vrot.lane.b32.xlu0 %v1874_v34, %s4857_s22  ;;  %v1926_v59 = vpop.permute.xlu1 %1925 }
 0x1f1   : > { %2019 = vst.msk [vmem:[#allocation3 + $0x30] sm:$0xff] %vm2015_vm10, %v1926_v59  ;;  %v1882_v59 = vld [vmem:[#allocation2 + $0x1f0] sm:$0xff] }
 0x1f2   : > { %v1541_v28 = vpop.permute.xlu0 %1540  ;;  %v2116_v16 = vld [vmem:[#allocation3 + $0x20] sm:$0xff]  ;;  %1574 = vrot.lane.b32.xlu1 %v1489_v17, %s4858_s23 }
 0x1f3   : > { %1633 = vst.msk [vmem:[#allocation3 + $0x40] sm:$0xff] %vm1628_vm8, %v1541_v28  ;;  %2365 = vmatmul.mubr.f32.gmra.mxu0 %v2116_v16 }
 0x1f4   : > { %1768 = vrot.lane.b32.xlu0 %v5432_v7, %s4859_s24  ;;  %4755 = vmatprep.mubr.msk.f32.mxu0 %vm326_vm0, %v2119_v60  ;;  %v1735_v1 = vpop.permute.xlu1 %1734  ;;  %v1490_v7 = vld [vmem:[#allocation2 + $0x189] sm:$0xff] }
 0x1f5   : > { %1827 = vst.msk [vmem:[#allocation3 + $0x40] sm:$0xff] %vm1822_vm9, %v1735_v1  ;;  %v1496_v60 = vld [vmem:[#allocation2 + $0x1e9] sm:$0xff] }
 0x1f6   : > { %v1928_v62 = vpop.permute.xlu0 %1927  ;;  %1961 = vrot.lane.b32.xlu1 %v1876_v4, %s4860_s25  ;;  %v2137_v1 = vld [vmem:[#allocation3 + $0xc8] sm:$0xff] }
 0x1f7   : > { %2020 = vst.msk [vmem:[#allocation3 + $0x40] sm:$0xff] %vm2015_vm10, %v1928_v62  ;;  %v1690_v62 = vld [vmem:[#allocation2 + $0x207] sm:$0xff] }
 0x1f8   : > { %1383 = vrot.lane.b32.xlu0 %v1875_v57, %s4857_s22  ;;  %v1543_v5 = vpop.permute.xlu1 %1542  ;;  %v2118_v2 = vld [vmem:[#allocation3 + $0x30] sm:$0xff] }
 0x1f9   : > { %1634 = vst.msk [vmem:[#allocation3 + $0x50] sm:$0xff] %vm1628_vm8, %v1543_v5  ;;  %2370 = vmatmul.mubr.f32.gmra.mxu0 %v2118_v2  ;;  %v1883_v2 = vld [vmem:[#allocation2 + $0x208] sm:$0xff] }
 0x1fa   : > { %v1737_v25 = vpop.permute.xlu0 %1736  ;;  %1576 = vrot.lane.b32.xlu1 %v1490_v7, %s4858_s23  ;;  %4756 = vmatprep.mubr.msk.f32.mxu0 %vm326_vm0, %v2121_v23  ;;  %v2139_v7 = vld [vmem:[#allocation3 + $0xd8] sm:$0xff] }
 0x1fb   : > { %1828 = vst.msk [vmem:[#allocation3 + $0x50] sm:$0xff] %vm1822_vm9, %v1737_v25 }
 0x1fc   : > { %1770 = vrot.lane.b32.xlu0 %v5450_v11, %s4859_s24  ;;  %v1930_v12 = vpop.permute.xlu1 %1929 }
 0x1fd   : > { %2021 = vst.msk [vmem:[#allocation3 + $0x50] sm:$0xff] %vm2015_vm10, %v1930_v12 }
 0x1fe   : > { %v1545_v14 = vpop.permute.xlu0 %1544  ;;  %v2120_v38 = vld [vmem:[#allocation3 + $0x40] sm:$0xff]  ;;  %1963 = vrot.lane.b32.xlu1 %v1877_v9, %s4860_s25 }
 0x1ff   : > { %1635 = vst.msk [vmem:[#allocation3 + $0x60] sm:$0xff] %vm1628_vm8, %v1545_v14  ;;  %2375 = vmatmul.mubr.f32.gmra.mxu0 %v2120_v38  ;;  %v1497_v14 = vld [vmem:[#allocation2 + $0x1f1] sm:$0xff] }
 0x200   : > { %1385 = vrot.lane.b32.xlu0 %v1876_v4, %s4857_s22  ;;  %4757 = vmatprep.mubr.msk.f32.mxu0 %vm326_vm0, %v2123_v31  ;;  %v1739_v45 = vpop.permute.xlu1 %1738 }
 0x201   : > { %1829 = vst.msk [vmem:[#allocation3 + $0x60] sm:$0xff] %vm1822_vm9, %v1739_v45 }
 0x202   : > { %v1932_v11 = vpop.permute.xlu0 %1931  ;;  %1578 = vrot.lane.b32.xlu1 %v1491_v8, %s4858_s23  ;;  %v2141_v8 = vld [vmem:[#allocation3 + $0xe8] sm:$0xff] }
 0x203   : > { %2022 = vst.msk [vmem:[#allocation3 + $0x60] sm:$0xff] %vm2015_vm10, %v1932_v11  ;;  %v1884_v11 = vld [vmem:[#allocation2 + $0x210] sm:$0xff] }
 0x204   : > { %1772 = vrot.lane.b32.xlu0 %v5452_v54, %s4859_s24  ;;  %v1547_v10 = vpop.permute.xlu1 %1546  ;;  %v2122_v20 = vld [vmem:[#allocation3 + $0x50] sm:$0xff] }
 0x205   : > { %1636 = vst.msk [vmem:[#allocation3 + $0x70] sm:$0xff] %vm1628_vm8, %v1547_v10  ;;  %2380 = vmatmul.mubr.f32.gmra.mxu0 %v2122_v20  ;;  %v1692_v20 = vld [vmem:[#allocation2 + $0x227] sm:$0xff] }
 0x206   : > { %v1741_v22 = vpop.permute.xlu0 %1740  ;;  %1965 = vrot.lane.b32.xlu1 %v1878_v32, %s4860_s25  ;;  %4758 = vmatprep.mubr.msk.f32.mxu0 %vm326_vm0, %v2125_v6 }
 0x207   : > { %1830 = vst.msk [vmem:[#allocation3 + $0x70] sm:$0xff] %vm1822_vm9, %v1741_v22 }
 0x208   : > { %1387 = vrot.lane.b32.xlu0 %v1877_v9, %s4857_s22  ;;  %v1934_v55 = vpop.permute.xlu1 %1933  ;;  %v1691_v9 = vld [vmem:[#allocation2 + $0x20f] sm:$0xff] }
 0x209   : > { %2023 = vst.msk [vmem:[#allocation3 + $0x70] sm:$0xff] %vm2015_vm10, %v1934_v55  ;;  %v2143_v55 = vld [vmem:[#allocation3 + $0xf8] sm:$0xff] }
 0x20a   : > { %v1549_v54 = vpop.permute.xlu0 %1548  ;;  %v2124_v50 = vld [vmem:[#allocation3 + $0x60] sm:$0xff]  ;;  %1580 = vrot.lane.b32.xlu1 %v1492_v30, %s4858_s23 }
 0x20b   : > { %1637 = vst.msk [vmem:[#allocation3 + $0x80] sm:$0xff] %vm1628_vm8, %v1549_v54  ;;  %2385 = vmatmul.mubr.f32.gmra.mxu0 %v2124_v50  ;;  %v1885_v54 = vld [vmem:[#allocation2 + $0x228] sm:$0xff] }
 0x20c   : > { %1774 = vrot.lane.b32.xlu0 %v1686_v33, %s4859_s24  ;;  %4759 = vmatprep.mubr.msk.f32.mxu0 %vm326_vm0, %v2127_v58  ;;  %v1743_v36 = vpop.permute.xlu1 %1742 }
 0x20d   : > { %1831 = vst.msk [vmem:[#allocation3 + $0x80] sm:$0xff] %vm1822_vm9, %v1743_v36  ;;  %v1693_v36 = vld [vmem:[#allocation2 + $0x22f] sm:$0xff] }
 0x20e   : > { %v1936_v40 = vpop.permute.xlu0 %1935  ;;  %1967 = vrot.lane.b32.xlu1 %v1879_v41, %s4860_s25 }
 0x20f   : > { %2024 = vst.msk [vmem:[#allocation3 + $0x80] sm:$0xff] %vm2015_vm10, %v1936_v40 }
 0x210   : > { %1389 = vrot.lane.b32.xlu0 %v1878_v32, %s4857_s22  ;;  %v1551_v13 = vpop.permute.xlu1 %1550  ;;  %v2126_v3 = vld [vmem:[#allocation3 + $0x70] sm:$0xff] }
 0x211   : > { %1638 = vst.msk [vmem:[#allocation3 + $0x90] sm:$0xff] %vm1628_vm8, %v1551_v13  ;;  %2390 = vmatmul.mubr.f32.gmra.mxu0 %v2126_v3  ;;  %v1498_v32 = vld [vmem:[#allocation2 + $0x209] sm:$0xff] }
 0x212   : > { %v1745_v42 = vpop.permute.xlu0 %1744  ;;  %1582 = vrot.lane.b32.xlu1 %v1493_v61, %s4858_s23  ;;  %4760 = vmatprep.mubr.msk.f32.mxu0 %vm326_vm0, %v2129_v0  ;;  %v2145_v13 = vld [vmem:[#allocation3 + $0x108] sm:$0xff]  ;;  %v1886_v3 = vld [vmem:[#allocation2 + $0x230] sm:$0xff] }
 0x213   : > { %1832 = vst.msk [vmem:[#allocation3 + $0x90] sm:$0xff] %vm1822_vm9, %v1745_v42  ;;  %v2721_v61 = vld [vmem:[#allocation2 + $0x8] sm:$0xff] }
 0x214   : > { %1776 = vrot.lane.b32.xlu0 %v1687_v37, %s4859_s24  ;;  %v1938_v19 = vpop.permute.xlu1 %1937  ;;  %v2722_v37 = vld [vmem:[#allocation2 + $0x10] sm:$0xff] }
 0x215   : > { %2025 = vst.msk [vmem:[#allocation3 + $0x90] sm:$0xff] %vm2015_vm10, %v1938_v19 }
 0x216   : > { %v1553_v21 = vpop.permute.xlu0 %1552  ;;  %v2128_v63 = vld [vmem:[#allocation3 + $0x80] sm:$0xff]  ;;  %1969 = vrot.lane.b32.xlu1 %v1880_v26, %s4860_s25 }
 0x217   : > { %1639 = vst.msk [vmem:[#allocation3 + $0xa0] sm:$0xff] %vm1628_vm8, %v1553_v21  ;;  %2395 = vmatmul.mubr.f32.gmra.mxu0 %v2128_v63  ;;  %v2147_v63 = vld [vmem:[#allocation3 + $0x118] sm:$0xff] }
 0x218   : > { %1391 = vrot.lane.b32.xlu0 %v1879_v41, %s4857_s22  ;;  %4761 = vmatprep.mubr.msk.f32.mxu0 %vm326_vm0, %v2131_v48  ;;  %v1747_v27 = vpop.permute.xlu1 %1746  ;;  %v1499_v41 = vld [vmem:[#allocation2 + $0x211] sm:$0xff] }
 0x219   : > { %1833 = vst.msk [vmem:[#allocation3 + $0xa0] sm:$0xff] %vm1822_vm9, %v1747_v27 }
 0x21a   : > { %v1940_v15 = vpop.permute.xlu0 %1939  ;;  %1584 = vrot.lane.b32.xlu1 %v1494_v29, %s4858_s23 }
 0x21b   : > { %2026 = vst.msk [vmem:[#allocation3 + $0xa0] sm:$0xff] %vm2015_vm10, %v1940_v15 }
 0x21c   : > { %1778 = vrot.lane.b32.xlu0 %v1688_v49, %s4859_s24  ;;  %v1555_v47 = vpop.permute.xlu1 %1554  ;;  %v2130_v24 = vld [vmem:[#allocation3 + $0x90] sm:$0xff] }
 0x21d   : > { %1640 = vst.msk [vmem:[#allocation3 + $0xb0] sm:$0xff] %vm1628_vm8, %v1555_v47  ;;  %2400 = vmatmul.mubr.f32.gmra.mxu0 %v2130_v24  ;;  %v2149_v47 = vld [vmem:[#allocation3 + $0x128] sm:$0xff] }
 0x21e   : > { %v1749_v34 = vpop.permute.xlu0 %1748  ;;  %1971 = vrot.lane.b32.xlu1 %v1881_v35, %s4860_s25  ;;  %4762 = vmatprep.mubr.msk.f32.mxu0 %vm326_vm0, %v2133_v39 }
 0x21f   : > { %1834 = vst.msk [vmem:[#allocation3 + $0xb0] sm:$0xff] %vm1822_vm9, %v1749_v34 }
 0x220   : > { %1393 = vrot.lane.b32.xlu0 %v1880_v26, %s4857_s22  ;;  %v1942_v43 = vpop.permute.xlu1 %1941 }
 0x221   : > { %2027 = vst.msk [vmem:[#allocation3 + $0xb0] sm:$0xff] %vm2015_vm10, %v1942_v43 }
 0x222   : > { %v1557_v53 = vpop.permute.xlu0 %1556  ;;  %v2132_v44 = vld [vmem:[#allocation3 + $0xa0] sm:$0xff]  ;;  %1586 = vrot.lane.b32.xlu1 %v1495_v56, %s4858_s23 }
 0x223   : > { %1641 = vst.msk [vmem:[#allocation3 + $0xc0] sm:$0xff] %vm1628_vm8, %v1557_v53  ;;  %2405 = vmatmul.mubr.f32.gmra.mxu0 %v2132_v44  ;;  %v2151_v53 = vld [vmem:[#allocation3 + $0x138] sm:$0xff] }
 0x224   : > { %1780 = vrot.lane.b32.xlu0 %v1689_v46, %s4859_s24  ;;  %4763 = vmatprep.mubr.msk.f32.mxu0 %vm326_vm0, %v2135_v51  ;;  %v1751_v57 = vpop.permute.xlu1 %1750 }
 0x225   : > { %1835 = vst.msk [vmem:[#allocation3 + $0xc0] sm:$0xff] %vm1822_vm9, %v1751_v57 }
 0x226   : > { %v1944_v52 = vpop.permute.xlu0 %1943  ;;  %1973 = vrot.lane.b32.xlu1 %v1882_v59, %s4860_s25 }
 0x227   : > { %2028 = vst.msk [vmem:[#allocation3 + $0xc0] sm:$0xff] %vm2015_vm10, %v1944_v52  ;;  %v2153_v52 = vld [vmem:[#allocation3 + $0x148] sm:$0xff] }
 0x228   : > { %1395 = vrot.lane.b32.xlu0 %v1881_v35, %s4857_s22  ;;  %v1559_v28 = vpop.permute.xlu1 %1558  ;;  %v2134_v17 = vld [vmem:[#allocation3 + $0xb0] sm:$0xff] }
 0x229   : > { %1642 = vst.msk [vmem:[#allocation3 + $0xd0] sm:$0xff] %vm1628_vm8, %v1559_v28  ;;  %2410 = vmatmul.mubr.f32.gmra.mxu0 %v2134_v17 }
 0x22a   : > { %v1753_v16 = vpop.permute.xlu0 %1752  ;;  %1588 = vrot.lane.b32.xlu1 %v1496_v60, %s4858_s23  ;;  %4764 = vmatprep.mubr.msk.f32.mxu0 %vm326_vm0, %v2137_v1  ;;  %v2155_v1 = vld [vmem:[#allocation3 + $0x158] sm:$0xff] }
 0x22b   : > { %1836 = vst.msk [vmem:[#allocation3 + $0xd0] sm:$0xff] %vm1822_vm9, %v1753_v16 }
 0x22c   : > { %1782 = vrot.lane.b32.xlu0 %v1690_v62, %s4859_s24  ;;  %v1946_v4 = vpop.permute.xlu1 %1945 }
 0x22d   : > { %2029 = vst.msk [vmem:[#allocation3 + $0xd0] sm:$0xff] %vm2015_vm10, %v1946_v4 }
 0x22e   : > { %v1561_v5 = vpop.permute.xlu0 %1560  ;;  %v2136_v25 = vld [vmem:[#allocation3 + $0xc0] sm:$0xff]  ;;  %1975 = vrot.lane.b32.xlu1 %v1883_v2, %s4860_s25 }
 0x22f   : > { %1643 = vst.msk [vmem:[#allocation3 + $0xe0] sm:$0xff] %vm1628_vm8, %v1561_v5  ;;  %2415 = vmatmul.mubr.f32.gmra.mxu0 %v2136_v25 }
 0x230   : > { %1397 = vrot.lane.b32.xlu0 %v1882_v59, %s4857_s22  ;;  %4765 = vmatprep.mubr.msk.f32.mxu0 %vm326_vm0, %v2139_v7  ;;  %v1755_v23 = vpop.permute.xlu1 %1754  ;;  %v2157_v7 = vld [vmem:[#allocation3 + $0x168] sm:$0xff] }
 0x231   : > { %1837 = vst.msk [vmem:[#allocation3 + $0xe0] sm:$0xff] %vm1822_vm9, %v1755_v23 }
 0x232   : > { %v1948_v12 = vpop.permute.xlu0 %1947  ;;  %1590 = vrot.lane.b32.xlu1 %v1497_v14, %s4858_s23 }
 0x233   : > { %2030 = vst.msk [vmem:[#allocation3 + $0xe0] sm:$0xff] %vm2015_vm10, %v1948_v12 }
 0x234   : > { %1784 = vrot.lane.b32.xlu0 %v1691_v9, %s4859_s24  ;;  %v1563_v38 = vpop.permute.xlu1 %1562  ;;  %v2138_v31 = vld [vmem:[#allocation3 + $0xd0] sm:$0xff] }
 0x235   : > { %1644 = vst.msk [vmem:[#allocation3 + $0xf0] sm:$0xff] %vm1628_vm8, %v1563_v38  ;;  %2420 = vmatmul.mubr.f32.gmra.mxu0 %v2138_v31  ;;  %v2159_v31 = vld [vmem:[#allocation3 + $0x178] sm:$0xff] }
 0x236   : > { %v1757_v45 = vpop.permute.xlu0 %1756  ;;  %1977 = vrot.lane.b32.xlu1 %v1884_v11, %s4860_s25  ;;  %4766 = vmatprep.mubr.msk.f32.mxu0 %vm326_vm0, %v2141_v8 }
 0x237   : > { %1838 = vst.msk [vmem:[#allocation3 + $0xf0] sm:$0xff] %vm1822_vm9, %v1757_v45 }
 0x238   : > { %1399 = vrot.lane.b32.xlu0 %v1883_v2, %s4857_s22  ;;  %v1950_v10 = vpop.permute.xlu1 %1949 }
 0x239   : > { %2031 = vst.msk [vmem:[#allocation3 + $0xf0] sm:$0xff] %vm2015_vm10, %v1950_v10 }
 0x23a   : > { %v1372_v22 = vpop.permute.xlu0 %1371  ;;  %v2140_v6 = vld [vmem:[#allocation3 + $0xe0] sm:$0xff]  ;;  %1592 = vrot.lane.b32.xlu1 %v1498_v32, %s4858_s23 }
 0x23b   : > { %1452 = vst.msk [vmem:[#allocation3 + $0x100] sm:$0xff] %vm1435_vm7, %v1372_v22  ;;  %2425 = vmatmul.mubr.f32.gmra.mxu0 %v2140_v6  ;;  %v2161_v22 = vld [vmem:[#allocation3 + $0x188] sm:$0xff] }
 0x23c   : > { %1786 = vrot.lane.b32.xlu0 %v1692_v20, %s4859_s24  ;;  %4767 = vmatprep.mubr.msk.f32.mxu0 %vm326_vm0, %v2143_v55  ;;  %v1565_v30 = vpop.permute.xlu1 %1564 }
 0x23d   : > { %1645 = vst.msk [vmem:[#allocation3 + $0x100] sm:$0xff] %vm1628_vm8, %v1565_v30 }
 0x23e   : > { %v1759_v50 = vpop.permute.xlu0 %1758  ;;  %1979 = vrot.lane.b32.xlu1 %v1885_v54, %s4860_s25 }
 0x23f   : > { %1839 = vst.msk [vmem:[#allocation3 + $0x100] sm:$0xff] %vm1822_vm9, %v1759_v50  ;;  %v2163_v50 = vld [vmem:[#allocation3 + $0x198] sm:$0xff] }
 0x240   : > { %1401 = vrot.lane.b32.xlu0 %v1884_v11, %s4857_s22  ;;  %v1952_v33 = vpop.permute.xlu1 %1951  ;;  %v2142_v58 = vld [vmem:[#allocation3 + $0xf0] sm:$0xff] }
 0x241   : > { %2032 = vst.msk [vmem:[#allocation3 + $0x100] sm:$0xff] %vm2015_vm10, %v1952_v33  ;;  %2430 = vmatmul.mubr.f32.gmra.mxu0 %v2142_v58 }
 0x242   : > { %v1374_v40 = vpop.permute.xlu0 %1373  ;;  %1594 = vrot.lane.b32.xlu1 %v1499_v41, %s4858_s23  ;;  %4768 = vmatprep.mubr.msk.f32.mxu0 %vm326_vm0, %v2145_v13  ;;  %v2165_v13 = vld [vmem:[#allocation3 + $0x1a8] sm:$0xff] }
 0x243   : > { %1453 = vst.msk [vmem:[#allocation3 + $0x110] sm:$0xff] %vm1435_vm7, %v1374_v40 }
 0x244   : > { %1788 = vrot.lane.b32.xlu0 %v1693_v36, %s4859_s24  ;;  %v1567_v42 = vpop.permute.xlu1 %1566 }
 0x245   : > { %1646 = vst.msk [vmem:[#allocation3 + $0x110] sm:$0xff] %vm1628_vm8, %v1567_v42 }
 0x246   : > { %v1761_v0 = vpop.permute.xlu0 %1760  ;;  %1981 = vrot.lane.b32.xlu1 %v1886_v3, %s4860_s25 }
 0x247   : > { %1840 = vst.msk [vmem:[#allocation3 + $0x110] sm:$0xff] %vm1822_vm9, %v1761_v0 }
 0x248   : > { %2785 = vrot.lane.b32.xlu0 %v2721_v61, %s4854_s15  ;;  %v1954_v19 = vpop.permute.xlu1 %1953  ;;  %v2144_v21 = vld [vmem:[#allocation3 + $0x100] sm:$0xff] }
 0x249   : > { %2033 = vst.msk [vmem:[#allocation3 + $0x110] sm:$0xff] %vm2015_vm10, %v1954_v19  ;;  %2435 = vmatmul.mubr.f32.gmra.mxu0 %v2144_v21  ;;  %v2167_v19 = vld [vmem:[#allocation3 + $0x1b8] sm:$0xff] }
 0x24a   : > { %v1376_v26 = vpop.permute.xlu0 %1375  ;;  %4769 = vmatprep.mubr.msk.f32.mxu0 %vm326_vm0, %v2147_v63  ;;  %2787 = vrot.lane.b32.xlu1 %v2722_v37, %s4854_s15 }
 0x24b   : > { %1454 = vst.msk [vmem:[#allocation3 + $0x120] sm:$0xff] %vm1435_vm7, %v1376_v26 }
 0x24c   : > { %v1569_v48 = vpop.permute.xlu1 %1568 }
 0x24d   : > { %1647 = vst.msk [vmem:[#allocation3 + $0x120] sm:$0xff] %vm1628_vm8, %v1569_v48 }
 0x24e   : > { %v1763_v27 = vpop.permute.xlu0 %1762 }
 0x24f   : > { %1841 = vst.msk [vmem:[#allocation3 + $0x120] sm:$0xff] %vm1822_vm9, %v1763_v27 }
 0x250   : > { %v1956_v15 = vpop.permute.xlu1 %1955  ;;  %v2146_v29 = vld [vmem:[#allocation3 + $0x110] sm:$0xff] }
 0x251   : > { %2034 = vst.msk [vmem:[#allocation3 + $0x120] sm:$0xff] %vm2015_vm10, %v1956_v15  ;;  %2440 = vmatmul.mubr.f32.gmra.mxu0 %v2146_v29  ;;  %v2169_v15 = vld [vmem:[#allocation3 + $0x1c8] sm:$0xff] }
 0x252   : > { %v1378_v49 = vpop.permute.xlu0 %1377  ;;  %4770 = vmatprep.mubr.msk.f32.mxu0 %vm326_vm0, %v2149_v47 }
 0x253   : > { %1455 = vst.msk [vmem:[#allocation3 + $0x130] sm:$0xff] %vm1435_vm7, %v1378_v49  ;;  %v6105_v49 = vld [vmem:[%s7372_s3] ss:$0 sm:$0xff] }
 0x254   : > { %v1571_v24 = vpop.permute.xlu1 %1570 }
 0x255   : > { %1648 = vst.msk [vmem:[#allocation3 + $0x130] sm:$0xff] %vm1628_vm8, %v1571_v24 }
 0x256   : > { %v1765_v34 = vpop.permute.xlu0 %1764 }
 0x257   : > { %1842 = vst.msk [vmem:[#allocation3 + $0x130] sm:$0xff] %vm1822_vm9, %v1765_v34  ;;  %v6112_v34 = vld [vmem:[%s7373_s4] ss:$0 sm:$0xff] }
 0x258   : > { %v1958_v35 = vpop.permute.xlu1 %1957  ;;  %v2148_v39 = vld [vmem:[#allocation3 + $0x120] sm:$0xff] }
 0x259   : > { %2035 = vst.msk [vmem:[#allocation3 + $0x130] sm:$0xff] %vm2015_vm10, %v1958_v35  ;;  %2445 = vmatmul.mubr.f32.gmra.mxu0 %v2148_v39 }
 0x25a   : > { %v1380_v43 = vpop.permute.xlu0 %1379  ;;  %4771 = vmatprep.mubr.msk.f32.mxu0 %vm326_vm0, %v2151_v53 }
 0x25b   : > { %1456 = vst.msk [vmem:[#allocation3 + $0x140] sm:$0xff] %vm1435_vm7, %v1380_v43 }
 0x25c   : > { %v1573_v56 = vpop.permute.xlu1 %1572 }
 0x25d   : > { %1649 = vst.msk [vmem:[#allocation3 + $0x140] sm:$0xff] %vm1628_vm8, %v1573_v56  ;;  %v2657_v56 = vld [vmem:[#allocation2 + $0x7] sm:$0xff] }
 0x25e   : > { %v1767_v44 = vpop.permute.xlu0 %1766  ;;  %2689 = vst.msk [vmem:[#allocation3] sm:$0xff] %vm326_vm0, %v2657_v56 }
 0x25f   : > { %1843 = vst.msk [vmem:[#allocation3 + $0x140] sm:$0xff] %vm1822_vm9, %v1767_v44 }
 0x260   : > { %v1960_v46 = vpop.permute.xlu1 %1959  ;;  %v2150_v51 = vld [vmem:[#allocation3 + $0x130] sm:$0xff] }
 0x261   : > { %2036 = vst.msk [vmem:[#allocation3 + $0x140] sm:$0xff] %vm2015_vm10, %v1960_v46  ;;  %2450 = vmatmul.mubr.f32.gmra.mxu0 %v2150_v51  ;;  %v2171_v51 = vld [vmem:[#allocation3 + $0x1d8] sm:$0xff] }
 0x262   : > { %v1382_v57 = vpop.permute.xlu0 %1381  ;;  %4772 = vmatprep.mubr.msk.f32.mxu0 %vm326_vm0, %v2153_v52 }
 0x263   : > { %1457 = vst.msk [vmem:[#allocation3 + $0x150] sm:$0xff] %vm1435_vm7, %v1382_v57 }
 0x264   : > { %v1575_v59 = vpop.permute.xlu1 %1574 }
 0x265   : > { %1650 = vst.msk [vmem:[#allocation3 + $0x150] sm:$0xff] %vm1628_vm8, %v1575_v59 }
 0x266   : > { %v1769_v28 = vpop.permute.xlu0 %1768 }
 0x267   : > { %1844 = vst.msk [vmem:[#allocation3 + $0x150] sm:$0xff] %vm1822_vm9, %v1769_v28 }
 0x268   : > { %v1962_v17 = vpop.permute.xlu1 %1961  ;;  %v2152_v16 = vld [vmem:[#allocation3 + $0x140] sm:$0xff] }
 0x269   : > { %2037 = vst.msk [vmem:[#allocation3 + $0x150] sm:$0xff] %vm2015_vm10, %v1962_v17  ;;  %2455 = vmatmul.mubr.f32.gmra.mxu0 %v2152_v16 }
 0x26a   : > { %v1384_v60 = vpop.permute.xlu0 %1383  ;;  %4773 = vmatprep.mubr.msk.f32.mxu0 %vm326_vm0, %v2155_v1 }
 0x26b   : > { %1458 = vst.msk [vmem:[#allocation3 + $0x160] sm:$0xff] %vm1435_vm7, %v1384_v60 }
 0x26c   : > { %v1577_v62 = vpop.permute.xlu1 %1576 }
 0x26d   : > { %1651 = vst.msk [vmem:[#allocation3 + $0x160] sm:$0xff] %vm1628_vm8, %v1577_v62 }
 0x26e   : > { %v1771_v4 = vpop.permute.xlu0 %1770 }
 0x26f   : > { %1845 = vst.msk [vmem:[#allocation3 + $0x160] sm:$0xff] %vm1822_vm9, %v1771_v4  ;;  %v2658_v4 = vld [vmem:[#allocation2 + $0xf] sm:$0xff] }
 0x270   : > { %v1964_v5 = vpop.permute.xlu1 %1963  ;;  %v2154_v2 = vld [vmem:[#allocation3 + $0x150] sm:$0xff]  ;;  %2690 = vst.msk [vmem:[#allocation3 + $0x10] sm:$0xff] %vm326_vm0, %v2658_v4 }
 0x271   : > { %2038 = vst.msk [vmem:[#allocation3 + $0x160] sm:$0xff] %vm2015_vm10, %v1964_v5  ;;  %2460 = vmatmul.mubr.f32.gmra.mxu0 %v2154_v2 }
 0x272   : > { %v1386_v25 = vpop.permute.xlu0 %1385  ;;  %4774 = vmatprep.mubr.msk.f32.mxu0 %vm326_vm0, %v2157_v7 }
 0x273   : > { %1459 = vst.msk [vmem:[#allocation3 + $0x170] sm:$0xff] %vm1435_vm7, %v1386_v25 }
 0x274   : > { %v1579_v23 = vpop.permute.xlu1 %1578 }
 0x275   : > { %1652 = vst.msk [vmem:[#allocation3 + $0x170] sm:$0xff] %vm1628_vm8, %v1579_v23 }
 0x276   : > { %v1773_v12 = vpop.permute.xlu0 %1772 }
 0x277   : > { %1846 = vst.msk [vmem:[#allocation3 + $0x170] sm:$0xff] %vm1822_vm9, %v1773_v12 }
 0x278   : > { %v1966_v14 = vpop.permute.xlu1 %1965  ;;  %v2156_v9 = vld [vmem:[#allocation3 + $0x160] sm:$0xff] }
 0x279   : > { %2039 = vst.msk [vmem:[#allocation3 + $0x170] sm:$0xff] %vm2015_vm10, %v1966_v14  ;;  %2465 = vmatmul.mubr.f32.gmra.mxu0 %v2156_v9 }
 0x27a   : > { %v1388_v38 = vpop.permute.xlu0 %1387  ;;  %4775 = vmatprep.mubr.msk.f32.mxu0 %vm326_vm0, %v2159_v31 }
 0x27b   : > { %1460 = vst.msk [vmem:[#allocation3 + $0x180] sm:$0xff] %vm1435_vm7, %v1388_v38 }
 0x27c   : > { %v1581_v45 = vpop.permute.xlu1 %1580 }
 0x27d   : > { %1653 = vst.msk [vmem:[#allocation3 + $0x180] sm:$0xff] %vm1628_vm8, %v1581_v45 }
 0x27e   : > { %v1775_v11 = vpop.permute.xlu0 %1774 }
 0x27f   : > { %1847 = vst.msk [vmem:[#allocation3 + $0x180] sm:$0xff] %vm1822_vm9, %v1775_v11 }
 0x280   : > { %v1968_v8 = vpop.permute.xlu1 %1967  ;;  %v2158_v10 = vld [vmem:[#allocation3 + $0x170] sm:$0xff] }
 0x281   : > { %2040 = vst.msk [vmem:[#allocation3 + $0x180] sm:$0xff] %vm2015_vm10, %v1968_v8  ;;  %2470 = vmatmul.mubr.f32.gmra.mxu0 %v2158_v10 }
 0x282   : > { %v1390_v20 = vpop.permute.xlu0 %1389  ;;  %4776 = vmatprep.mubr.msk.f32.mxu0 %vm326_vm0, %v2161_v22 }
 0x283   : > { %1461 = vst.msk [vmem:[#allocation3 + $0x190] sm:$0xff] %vm1435_vm7, %v1390_v20 }
 0x284   : > { %v1583_v32 = vpop.permute.xlu1 %1582 }
 0x285   : > { %1654 = vst.msk [vmem:[#allocation3 + $0x190] sm:$0xff] %vm1628_vm8, %v1583_v32 }
 0x286   : > { %v1777_v6 = vpop.permute.xlu0 %1776 }
 0x287   : > { %1848 = vst.msk [vmem:[#allocation3 + $0x190] sm:$0xff] %vm1822_vm9, %v1777_v6 }
 0x288   : > { %v1970_v55 = vpop.permute.xlu1 %1969  ;;  %v2160_v54 = vld [vmem:[#allocation3 + $0x180] sm:$0xff] }
 0x289   : > { %2041 = vst.msk [vmem:[#allocation3 + $0x190] sm:$0xff] %vm2015_vm10, %v1970_v55  ;;  %2475 = vmatmul.mubr.f32.gmra.mxu0 %v2160_v54 }
 0x28a   : > { %v1392_v30 = vpop.permute.xlu0 %1391  ;;  %4777 = vmatprep.mubr.msk.f32.mxu0 %vm326_vm0, %v2163_v50 }
 0x28b   : > { %1462 = vst.msk [vmem:[#allocation3 + $0x1a0] sm:$0xff] %vm1435_vm7, %v1392_v30 }
 0x28c   : > { %v1585_v33 = vpop.permute.xlu1 %1584 }
 0x28d   : > { %1655 = vst.msk [vmem:[#allocation3 + $0x1a0] sm:$0xff] %vm1628_vm8, %v1585_v33 }
 0x28e   : > { %v1779_v58 = vpop.permute.xlu0 %1778 }
 0x28f   : > { %1849 = vst.msk [vmem:[#allocation3 + $0x1a0] sm:$0xff] %vm1822_vm9, %v1779_v58 }
 0x290   : > { %v1972_v36 = vpop.permute.xlu1 %1971  ;;  %v2162_v40 = vld [vmem:[#allocation3 + $0x190] sm:$0xff] }
 0x291   : > { %2042 = vst.msk [vmem:[#allocation3 + $0x1a0] sm:$0xff] %vm2015_vm10, %v1972_v36  ;;  %2480 = vmatmul.mubr.f32.gmra.mxu0 %v2162_v40 }
 0x292   : > { %v1394_v41 = vpop.permute.xlu0 %1393  ;;  %4778 = vmatprep.mubr.msk.f32.mxu0 %vm326_vm0, %v2165_v13 }
 0x293   : > { %1463 = vst.msk [vmem:[#allocation3 + $0x1b0] sm:$0xff] %vm1435_vm7, %v1394_v41 }
 0x294   : > { %v1587_v3 = vpop.permute.xlu1 %1586 }
 0x295   : > { %1656 = vst.msk [vmem:[#allocation3 + $0x1b0] sm:$0xff] %vm1628_vm8, %v1587_v3 }
 0x296   : > { %v1781_v42 = vpop.permute.xlu0 %1780 }
 0x297   : > { %1850 = vst.msk [vmem:[#allocation3 + $0x1b0] sm:$0xff] %vm1822_vm9, %v1781_v42 }
 0x298   : > { %v1974_v61 = vpop.permute.xlu1 %1973  ;;  %v2164_v0 = vld [vmem:[#allocation3 + $0x1a0] sm:$0xff] }
 0x299   : > { %2043 = vst.msk [vmem:[#allocation3 + $0x1b0] sm:$0xff] %vm2015_vm10, %v1974_v61  ;;  %2485 = vmatmul.mubr.f32.gmra.mxu0 %v2164_v0 }
 0x29a   : > { %v1396_v37 = vpop.permute.xlu0 %1395  ;;  %4779 = vmatprep.mubr.msk.f32.mxu0 %vm326_vm0, %v2167_v19 }
 0x29b   : > { %1464 = vst.msk [vmem:[#allocation3 + $0x1c0] sm:$0xff] %vm1435_vm7, %v1396_v37 }
 0x29c   : > { %v1589_v21 = vpop.permute.xlu1 %1588 }
 0x29d   : > { %1657 = vst.msk [vmem:[#allocation3 + $0x1c0] sm:$0xff] %vm1628_vm8, %v1589_v21 }
 0x29e   : > { %v1783_v26 = vpop.permute.xlu0 %1782 }
 0x29f   : > { %1851 = vst.msk [vmem:[#allocation3 + $0x1c0] sm:$0xff] %vm1822_vm9, %v1783_v26 }
 0x2a0   : > { %v1976_v63 = vpop.permute.xlu1 %1975  ;;  %v2166_v48 = vld [vmem:[#allocation3 + $0x1b0] sm:$0xff] }
 0x2a1   : > { %2044 = vst.msk [vmem:[#allocation3 + $0x1c0] sm:$0xff] %vm2015_vm10, %v1976_v63  ;;  %2490 = vmatmul.mubr.f32.gmra.mxu0 %v2166_v48 }
 0x2a2   : > { %v1398_v27 = vpop.permute.xlu0 %1397  ;;  %4780 = vmatprep.mubr.msk.f32.mxu0 %vm326_vm0, %v2169_v15 }
 0x2a3   : > { %1465 = vst.msk [vmem:[#allocation3 + $0x1d0] sm:$0xff] %vm1435_vm7, %v1398_v27 }
 0x2a4   : > { %v1591_v29 = vpop.permute.xlu1 %1590 }
 0x2a5   : > { %1658 = vst.msk [vmem:[#allocation3 + $0x1d0] sm:$0xff] %vm1628_vm8, %v1591_v29 }
 0x2a6   : > { %v1785_v47 = vpop.permute.xlu0 %1784 }
 0x2a7   : > { %1852 = vst.msk [vmem:[#allocation3 + $0x1d0] sm:$0xff] %vm1822_vm9, %v1785_v47  ;;  %v2356_v24 = vpop.f32.mrf.mxu0 }
 0x2a8   : > { %v2522_v35 = vmul.f32 %v6105_v49, %v2356_v24  ;;  %v1978_v39 = vpop.permute.xlu1 %1977  ;;  %v2168_v53 = vld [vmem:[#allocation3 + $0x1c0] sm:$0xff] }
 0x2a9   : > { %v2358_v43 = vpop.f32.mrf.mxu0  ;;  %2045 = vst.msk [vmem:[#allocation3 + $0x1d0] sm:$0xff] %vm2015_vm10, %v1978_v39  ;;  %2495 = vmatmul.mubr.f32.gmra.mxu0 %v2168_v53 }
 0x2aa   : > { %v2561_v44 = vadd.f32 %v6112_v34, %v2522_v35  ;;  %v1400_v46 = vpop.permute.xlu0 %1399  ;;  %4781 = vmatprep.mubr.msk.f32.mxu0 %vm326_vm0, %v2171_v51 }
 0x2ab   : > { %1466 = vst.msk [vmem:[#allocation3 + $0x1e0] sm:$0xff] %vm1435_vm7, %v1400_v46 }
 0x2ac   : > { %v2593_v57 = vmax.f32 %v2561_v44, 0.0  ;;  %v1593_v52 = vpop.permute.xlu1 %1592 }
 0x2ad   : > { %1659 = vst.msk [vmem:[#allocation3 + $0x1e0] sm:$0xff] %vm1628_vm8, %v1593_v52  ;;  %v2361_v28 = vpop.f32.mrf.mxu0 }
 0x2ae   : > { %2625 = vst.msk [vmem:[#allocation2 + $0x28] sm:$0xff] %vm326_vm0, %v2593_v57  ;;  %v1787_v59 = vpop.permute.xlu0 %1786  ;;  %v2523_v17 = vmul.f32 %v6105_v49, %v2361_v28 }
 0x2af   : > { %1853 = vst.msk [vmem:[#allocation3 + $0x1e0] sm:$0xff] %vm1822_vm9, %v1787_v59  ;;  %v2363_v16 = vpop.f32.mrf.mxu0 }
 0x2b0   : > { %v2562_v60 = vadd.f32 %v6112_v34, %v2523_v17  ;;  %v1980_v1 = vpop.permute.xlu1 %1979  ;;  %v2170_v62 = vld [vmem:[#allocation3 + $0x1d0] sm:$0xff] }
 0x2b1   : > { %2046 = vst.msk [vmem:[#allocation3 + $0x1e0] sm:$0xff] %vm2015_vm10, %v1980_v1  ;;  %2500 = vmatmul.mubr.f32.gmra.mxu0 %v2170_v62 }
 0x2b2   : > { %v1402_v5 = vpop.permute.xlu0 %1401  ;;  %v2594_v2 = vmax.f32 %v2562_v60, 0.0 }
 0x2b3   : > { %1467 = vst.msk [vmem:[#allocation3 + $0x1f0] sm:$0xff] %vm1435_vm7, %v1402_v5  ;;  %v2366_v25 = vpop.f32.mrf.mxu0 }
 0x2b4   : > { %v2524_v7 = vmul.f32 %v6105_v49, %v2366_v25  ;;  %2626 = vst.msk [vmem:[#allocation2 + $0x30] sm:$0xff] %vm326_vm0, %v2594_v2  ;;  %v1595_v23 = vpop.permute.xlu1 %1594 }
 0x2b5   : > { %v2368_v12 = vpop.f32.mrf.mxu0  ;;  %v6130_v14 = vld [vmem:[#allocation2 + $0x28] sm:$0xff]  ;;  %1660 = vst.msk [vmem:[#allocation3 + $0x1f0] sm:$0xff] %vm1628_vm8, %v1595_v23 }
 0x2b6   : > { %v6132_v9 = vld [vmem:[#allocation2 + $0x27] sm:$0xff]  ;;  %v2563_v38 = vadd.f32 %v6112_v34, %v2524_v7  ;;  %2789 = vrot.lane.b32.xlu0 %v6130_v14, %s4854_s15  ;;  %v1789_v31 = vpop.permute.xlu0 %1788 }
 0x2b7   : > { %2691 = vst.msk [vmem:[#allocation3 + $0x20] sm:$0xff] %vm326_vm0, %v6132_v9 }
 0x2b8   : > { %1854 = vst.msk [vmem:[#allocation3 + $0x1f0] sm:$0xff] %vm1822_vm9, %v1789_v31  ;;  %v2595_v45 = vmax.f32 %v2563_v38, 0.0  ;;  %v1982_v11 = vpop.permute.xlu1 %1981 }
 0x2b9   : > { %v2371_v8 = vpop.f32.mrf.mxu0  ;;  %2047 = vst.msk [vmem:[#allocation3 + $0x1f0] sm:$0xff] %vm2015_vm10, %v1982_v11 }
 0x2ba   : > { %2627 = vst.msk [vmem:[#allocation2 + $0x48] sm:$0xff] %vm326_vm0, %v2595_v45  ;;  %v2786_v10 = vpop.permute.xlu0 %2785  ;;  %v2525_v20 = vmul.f32 %v6105_v49, %v2371_v8 }
 0x2bb   : > { %2881 = vst.msk [vmem:[#allocation3] sm:$0xff] %vm856_vm4, %v2786_v10  ;;  %v2373_v22 = vpop.f32.mrf.mxu0  ;;  %v6145_v32 = vld [vmem:[#allocation2 + $0x30] sm:$0xff] }
 0x2bc   : > { %v6147_v6 = vld [vmem:[#allocation2 + $0x2f] sm:$0xff]  ;;  %v2564_v55 = vadd.f32 %v6112_v34, %v2525_v20  ;;  %2791 = vrot.lane.b32.xlu1 %v6145_v32, %s4854_s15  ;;  %v2788_v54 = vpop.permute.xlu1 %2787 }
 0x2bd   : > { %2692 = vst.msk [vmem:[#allocation3 + $0x30] sm:$0xff] %vm326_vm0, %v6147_v6 }
 0x2be   : > { %2882 = vst.msk [vmem:[#allocation3 + $0x10] sm:$0xff] %vm856_vm4, %v2788_v54  ;;  %v2596_v30 = vmax.f32 %v2564_v55, 0.0 }
 0x2bf   : > { %v2376_v50 = vpop.f32.mrf.mxu0 }
 0x2c0   : > { %v2526_v33 = vmul.f32 %v6105_v49, %v2376_v50  ;;  %2628 = vst.msk [vmem:[#allocation2 + $0x50] sm:$0xff] %vm326_vm0, %v2596_v30 }
 0x2c1   : > { %v2378_v58 = vpop.f32.mrf.mxu0  ;;  %v6157_v36 = vld [vmem:[#allocation2 + $0x48] sm:$0xff] }
 0x2c2   : > { %v6159_v40 = vld [vmem:[#allocation2 + $0x47] sm:$0xff]  ;;  %v2565_v41 = vadd.f32 %v6112_v34, %v2526_v33  ;;  %2793 = vrot.lane.b32.xlu0 %v6157_v36, %s4854_s15 }
 0x2c3   : > { %2693 = vst.msk [vmem:[#allocation3 + $0x40] sm:$0xff] %vm326_vm0, %v6159_v40 }
 0x2c4   : > { %v2597_v13 = vmax.f32 %v2565_v41, 0.0 }
 0x2c5   : > { %v2381_v3 = vpop.f32.mrf.mxu0 }
 0x2c6   : > { %2629 = vst.msk [vmem:[#allocation2 + $0x68] sm:$0xff] %vm326_vm0, %v2597_v13  ;;  %v2527_v42 = vmul.f32 %v6105_v49, %v2381_v3 }
 0x2c7   : > { %v2383_v61 = vpop.f32.mrf.mxu0  ;;  %v6168_v0 = vld [vmem:[#allocation2 + $0x50] sm:$0xff] }
 0x2c8   : > { %v6170_v37 = vld [vmem:[#allocation2 + $0x49] sm:$0xff]  ;;  %v2566_v21 = vadd.f32 %v6112_v34, %v2527_v42  ;;  %2795 = vrot.lane.b32.xlu1 %v6168_v0, %s4854_s15  ;;  %v6181_v26 = vld [vmem:[#allocation2 + $0x51] sm:$0xff] }
 0x2c9   : > { %v6172_v19 = vld [vmem:[#allocation2 + $0x4f] sm:$0xff]  ;;  %4097 = vst.msk [vmem:[#allocation3 + $0x8] sm:$0xff] %vm326_vm0, %v6170_v37  ;;  %4098 = vst.msk [vmem:[#allocation3 + $0x18] sm:$0xff] %vm326_vm0, %v6181_v26 }
 0x2ca   : > { %2694 = vst.msk [vmem:[#allocation3 + $0x50] sm:$0xff] %vm326_vm0, %v6172_v19  ;;  %v2598_v63 = vmax.f32 %v2566_v21, 0.0 }
 0x2cb   : > { %v2386_v48 = vpop.f32.mrf.mxu0 }
 0x2cc   : > { %v2528_v27 = vmul.f32 %v6105_v49, %v2386_v48  ;;  %2630 = vst.msk [vmem:[#allocation2 + $0x70] sm:$0xff] %vm326_vm0, %v2598_v63 }
 0x2cd   : > { %v2388_v15 = vpop.f32.mrf.mxu0  ;;  %v6187_v29 = vld [vmem:[#allocation2 + $0x68] sm:$0xff] }
 0x2ce   : > { %v6189_v47 = vld [vmem:[#allocation2 + $0x67] sm:$0xff]  ;;  %v2567_v24 = vadd.f32 %v6112_v34, %v2528_v27  ;;  %2797 = vrot.lane.b32.xlu0 %v6187_v29, %s4854_s15 }
 0x2cf   : > { %2695 = vst.msk [vmem:[#allocation3 + $0x60] sm:$0xff] %vm326_vm0, %v6189_v47 }
 0x2d0   : > { %v2599_v35 = vmax.f32 %v2567_v24, 0.0  ;;  %v4130_v39 = vld [vmem:[#allocation3 + $0x8] sm:$0xff] }
 0x2d1   : > { %4786 = vmatprep.mubr.msk.f32.mxu1 %vm326_vm0, %v4130_v39  ;;  %v2391_v43 = vpop.f32.mrf.mxu0 }
 0x2d2   : > { %2631 = vst.msk [vmem:[#allocation2 + $0x88] sm:$0xff] %vm326_vm0, %v2599_v35  ;;  %v2529_v53 = vmul.f32 %v6105_v49, %v2391_v43 }
 0x2d3   : > { %v2393_v56 = vpop.f32.mrf.mxu0  ;;  %v6199_v44 = vld [vmem:[#allocation2 + $0x70] sm:$0xff] }
 0x2d4   : > { %v6201_v46 = vld [vmem:[#allocation2 + $0x6f] sm:$0xff]  ;;  %v2568_v57 = vadd.f32 %v6112_v34, %v2529_v53  ;;  %2799 = vrot.lane.b32.xlu1 %v6199_v44, %s4854_s15 }
 0x2d5   : > { %v6203_v51 = vld [vmem:[#allocation2 + $0x69] sm:$0xff]  ;;  %2696 = vst.msk [vmem:[#allocation3 + $0x70] sm:$0xff] %vm326_vm0, %v6201_v46  ;;  %v6210_v52 = vld [vmem:[#allocation2 + $0x71] sm:$0xff] }
 0x2d6   : > { %4099 = vst.msk [vmem:[#allocation3 + $0x28] sm:$0xff] %vm326_vm0, %v6203_v51  ;;  %4100 = vst.msk [vmem:[#allocation3 + $0x38] sm:$0xff] %vm326_vm0, %v6210_v52  ;;  %v2600_v59 = vmax.f32 %v2568_v57, 0.0 }
 0x2d7   : > { %v2396_v28 = vpop.f32.mrf.mxu0 }
 0x2d8   : > { %v2530_v17 = vmul.f32 %v6105_v49, %v2396_v28  ;;  %2632 = vst.msk [vmem:[#allocation2 + $0x90] sm:$0xff] %vm326_vm0, %v2600_v59 }
 0x2d9   : > { %v2398_v16 = vpop.f32.mrf.mxu0  ;;  %v6218_v60 = vld [vmem:[#allocation2 + $0x88] sm:$0xff] }
 0x2da   : > { %v6220_v1 = vld [vmem:[#allocation2 + $0x87] sm:$0xff]  ;;  %v2569_v62 = vadd.f32 %v6112_v34, %v2530_v17  ;;  %2801 = vrot.lane.b32.xlu0 %v6218_v60, %s4854_s15 }
 0x2db   : > { %2697 = vst.msk [vmem:[#allocation3 + $0x80] sm:$0xff] %vm326_vm0, %v6220_v1 }
 0x2dc   : > { %v2601_v4 = vmax.f32 %v2569_v62, 0.0 }
 0x2dd   : > { %v2401_v5 = vpop.f32.mrf.mxu0 }
 0x2de   : > { %2633 = vst.msk [vmem:[#allocation2 + $0xa8] sm:$0xff] %vm326_vm0, %v2601_v4  ;;  %v2531_v2 = vmul.f32 %v6105_v49, %v2401_v5 }
 0x2df   : > { %v2403_v25 = vpop.f32.mrf.mxu0  ;;  %v6229_v7 = vld [vmem:[#allocation2 + $0x90] sm:$0xff] }
 0x2e0   : > { %v6231_v23 = vld [vmem:[#allocation2 + $0x8f] sm:$0xff]  ;;  %v2570_v38 = vadd.f32 %v6112_v34, %v2531_v2  ;;  %2803 = vrot.lane.b32.xlu1 %v6229_v7, %s4854_s15 }
 0x2e1   : > { %v6233_v12 = vld [vmem:[#allocation2 + $0x89] sm:$0xff]  ;;  %2698 = vst.msk [vmem:[#allocation3 + $0x90] sm:$0xff] %vm326_vm0, %v6231_v23  ;;  %v6240_v31 = vld [vmem:[#allocation2 + $0x91] sm:$0xff] }
 0x2e2   : > { %4101 = vst.msk [vmem:[#allocation3 + $0x48] sm:$0xff] %vm326_vm0, %v6233_v12  ;;  %4102 = vst.msk [vmem:[#allocation3 + $0x58] sm:$0xff] %vm326_vm0, %v6240_v31  ;;  %v2602_v45 = vmax.f32 %v2570_v38, 0.0 }
 0x2e3   : > { %v2406_v11 = vpop.f32.mrf.mxu0 }
 0x2e4   : > { %v2532_v8 = vmul.f32 %v6105_v49, %v2406_v11  ;;  %2634 = vst.msk [vmem:[#allocation2 + $0xb0] sm:$0xff] %vm326_vm0, %v2602_v45 }
 0x2e5   : > { %v2408_v10 = vpop.f32.mrf.mxu0  ;;  %v6248_v20 = vld [vmem:[#allocation2 + $0xa8] sm:$0xff] }
 0x2e6   : > { %v6250_v22 = vld [vmem:[#allocation2 + $0xa7] sm:$0xff]  ;;  %v2571_v55 = vadd.f32 %v6112_v34, %v2532_v8  ;;  %2805 = vrot.lane.b32.xlu0 %v6248_v20, %s4854_s15 }
 0x2e7   : > { %2699 = vst.msk [vmem:[#allocation3 + $0xa0] sm:$0xff] %vm326_vm0, %v6250_v22 }
 0x2e8   : > { %v2603_v54 = vmax.f32 %v2571_v55, 0.0 }
 0x2e9   : > { %v2411_v30 = vpop.f32.mrf.mxu0 }
 0x2ea   : > { %2635 = vst.msk [vmem:[#allocation2 + $0xc8] sm:$0xff] %vm326_vm0, %v2603_v54  ;;  %v2533_v50 = vmul.f32 %v6105_v49, %v2411_v30 }
 0x2eb   : > { %v2413_v33 = vpop.f32.mrf.mxu0  ;;  %v6259_v58 = vld [vmem:[#allocation2 + $0xb0] sm:$0xff] }
 0x2ec   : > { %v6261_v41 = vld [vmem:[#allocation2 + $0xaf] sm:$0xff]  ;;  %v2572_v3 = vadd.f32 %v6112_v34, %v2533_v50  ;;  %2807 = vrot.lane.b32.xlu1 %v6259_v58, %s4854_s15 }
 0x2ed   : > { %v6263_v13 = vld [vmem:[#allocation2 + $0xa9] sm:$0xff]  ;;  %2700 = vst.msk [vmem:[#allocation3 + $0xb0] sm:$0xff] %vm326_vm0, %v6261_v41  ;;  %v6270_v42 = vld [vmem:[#allocation2 + $0xb1] sm:$0xff] }
 0x2ee   : > { %4103 = vst.msk [vmem:[#allocation3 + $0x68] sm:$0xff] %vm326_vm0, %v6263_v13  ;;  %4104 = vst.msk [vmem:[#allocation3 + $0x78] sm:$0xff] %vm326_vm0, %v6270_v42  ;;  %v2604_v61 = vmax.f32 %v2572_v3, 0.0 }
 0x2ef   : > { %v2416_v21 = vpop.f32.mrf.mxu0 }
 0x2f0   : > { %v2534_v63 = vmul.f32 %v6105_v49, %v2416_v21  ;;  %2636 = vst.msk [vmem:[#allocation2 + $0xd0] sm:$0xff] %vm326_vm0, %v2604_v61 }
 0x2f1   : > { %v2418_v48 = vpop.f32.mrf.mxu0  ;;  %v6278_v27 = vld [vmem:[#allocation2 + $0xc8] sm:$0xff] }
 0x2f2   : > { %v6280_v15 = vld [vmem:[#allocation2 + $0xc7] sm:$0xff]  ;;  %v2573_v24 = vadd.f32 %v6112_v34, %v2534_v63  ;;  %2809 = vrot.lane.b32.xlu0 %v6278_v27, %s4854_s15 }
 0x2f3   : > { %2701 = vst.msk [vmem:[#allocation3 + $0xc0] sm:$0xff] %vm326_vm0, %v6280_v15 }
 0x2f4   : > { %v2605_v35 = vmax.f32 %v2573_v24, 0.0 }
 0x2f5   : > { %v2421_v39 = vpop.f32.mrf.mxu0 }
 0x2f6   : > { %2637 = vst.msk [vmem:[#allocation2 + $0xe8] sm:$0xff] %vm326_vm0, %v2605_v35  ;;  %v2535_v43 = vmul.f32 %v6105_v49, %v2421_v39  ;;  %v2078_v39 = vld [vmem:[#allocation2 + $0x229] sm:$0xff] }
 0x2f7   : > { %v2423_v53 = vpop.f32.mrf.mxu0  ;;  %v6289_v56 = vld [vmem:[#allocation2 + $0xd0] sm:$0xff]  ;;  %2110 = vst.msk [vmem:[#allocation3 + $0x1e8] sm:$0xff] %vm326_vm0, %v2078_v39 }
 0x2f8   : > { %v6291_v57 = vld [vmem:[#allocation2 + $0xcf] sm:$0xff]  ;;  %v2574_v28 = vadd.f32 %v6112_v34, %v2535_v43  ;;  %2811 = vrot.lane.b32.xlu1 %v6289_v56, %s4854_s15 }
 0x2f9   : > { %v6293_v59 = vld [vmem:[#allocation2 + $0xc9] sm:$0xff]  ;;  %2702 = vst.msk [vmem:[#allocation3 + $0xd0] sm:$0xff] %vm326_vm0, %v6291_v57  ;;  %v6300_v17 = vld [vmem:[#allocation2 + $0xd1] sm:$0xff] }
 0x2fa   : > { %4105 = vst.msk [vmem:[#allocation3 + $0x88] sm:$0xff] %vm326_vm0, %v6293_v59  ;;  %4106 = vst.msk [vmem:[#allocation3 + $0x98] sm:$0xff] %vm326_vm0, %v6300_v17  ;;  %v2606_v16 = vmax.f32 %v2574_v28, 0.0 }
 0x2fb   : > { %v2426_v62 = vpop.f32.mrf.mxu0 }
 0x2fc   : > { %v2536_v4 = vmul.f32 %v6105_v49, %v2426_v62  ;;  %2638 = vst.msk [vmem:[#allocation2 + $0xf0] sm:$0xff] %vm326_vm0, %v2606_v16 }
 0x2fd   : > { %v2428_v5 = vpop.f32.mrf.mxu0  ;;  %v6308_v2 = vld [vmem:[#allocation2 + $0xe8] sm:$0xff] }
 0x2fe   : > { %v6310_v25 = vld [vmem:[#allocation2 + $0xe7] sm:$0xff]  ;;  %v2575_v38 = vadd.f32 %v6112_v34, %v2536_v4  ;;  %2813 = vrot.lane.b32.xlu0 %v6308_v2, %s4854_s15 }
 0x2ff   : > { %2703 = vst.msk [vmem:[#allocation3 + $0xe0] sm:$0xff] %vm326_vm0, %v6310_v25 }
 0x300   : > { %v2607_v45 = vmax.f32 %v2575_v38, 0.0  ;;  %v2079_v38 = vld [vmem:[#allocation2 + $0x231] sm:$0xff] }
 0x301   : > { %v2431_v11 = vpop.f32.mrf.mxu0  ;;  %2111 = vst.msk [vmem:[#allocation3 + $0x1f8] sm:$0xff] %vm326_vm0, %v2079_v38 }
 0x302   : > { %2639 = vst.msk [vmem:[#allocation2 + $0x108] sm:$0xff] %vm326_vm0, %v2607_v45  ;;  %v2537_v8 = vmul.f32 %v6105_v49, %v2431_v11 }
 0x303   : > { %v2433_v10 = vpop.f32.mrf.mxu0  ;;  %v6319_v55 = vld [vmem:[#allocation2 + $0xf0] sm:$0xff] }
 0x304   : > { %v6321_v54 = vld [vmem:[#allocation2 + $0xef] sm:$0xff]  ;;  %v2576_v50 = vadd.f32 %v6112_v34, %v2537_v8  ;;  %2815 = vrot.lane.b32.xlu1 %v6319_v55, %s4854_s15  ;;  %v2172_v10 = vld [vmem:[#allocation3 + $0x1e0] sm:$0xff] }
 0x305   : > { %v6323_v30 = vld [vmem:[#allocation2 + $0xe9] sm:$0xff]  ;;  %2704 = vst.msk [vmem:[#allocation3 + $0xf0] sm:$0xff] %vm326_vm0, %v6321_v54  ;;  %v6330_v33 = vld [vmem:[#allocation2 + $0xf1] sm:$0xff] }
 0x306   : > { %4107 = vst.msk [vmem:[#allocation3 + $0xa8] sm:$0xff] %vm326_vm0, %v6323_v30  ;;  %4108 = vst.msk [vmem:[#allocation3 + $0xb8] sm:$0xff] %vm326_vm0, %v6330_v33  ;;  %v2608_v3 = vmax.f32 %v2576_v50, 0.0  ;;  %v2173_v8 = vld [vmem:[#allocation3 + $0x1e8] sm:$0xff] }
 0x307   : > { %4782 = vmatprep.mubr.msk.f32.mxu0 %vm326_vm0, %v2173_v8  ;;  %4127 = vst.msk [vmem:[#allocation3 + $0x1e8] sm:$0xff] %vm326_vm0, %v2078_v39  ;;  %v2174_v39 = vld [vmem:[#allocation3 + $0x1f0] sm:$0xff] }
 0x308   : > { %2640 = vst.msk [vmem:[#allocation2 + $0x110] sm:$0xff] %vm326_vm0, %v2608_v3  ;;  %2505 = vmatmul.mubr.f32.gmra.mxu0 %v2172_v10 }
 0x309   : > { %v6337_v61 = vld [vmem:[#allocation2 + $0x108] sm:$0xff]  ;;  %v2436_v63 = vpop.f32.mrf.mxu0 }
 0x30a   : > { %v6339_v21 = vld [vmem:[#allocation2 + $0x107] sm:$0xff]  ;;  %2817 = vrot.lane.b32.xlu0 %v6337_v61, %s4854_s15  ;;  %v2538_v48 = vmul.f32 %v6105_v49, %v2436_v63 }
 0x30b   : > { %2705 = vst.msk [vmem:[#allocation3 + $0x100] sm:$0xff] %vm326_vm0, %v6339_v21  ;;  %v2438_v24 = vpop.f32.mrf.mxu0 }
 0x30c   : > { %v2577_v35 = vadd.f32 %v6112_v34, %v2538_v48 }
 0x30e   : > { %v2609_v43 = vmax.f32 %v2577_v35, 0.0  ;;  %v2175_v35 = vld [vmem:[#allocation3 + $0x1f8] sm:$0xff] }
 0x30f   : > { %v2738_v53 = vld [vmem:[#allocation2 + $0x110] sm:$0xff]  ;;  %4783 = vmatprep.mubr.msk.f32.mxu0 %vm326_vm0, %v2175_v35  ;;  %4128 = vst.msk [vmem:[#allocation3 + $0x1f8] sm:$0xff] %vm326_vm0, %v2079_v38 }
 0x310   : > { %v6348_v28 = vld [vmem:[#allocation2 + $0x10f] sm:$0xff]  ;;  %2641 = vst.msk [vmem:[#allocation2 + $0x128] sm:$0xff] %vm326_vm0, %v2609_v43  ;;  %2819 = vrot.lane.b32.xlu1 %v2738_v53, %s4854_s15  ;;  %2510 = vmatmul.mubr.f32.gmra.mxu0 %v2174_v39 }
 0x311   : > { %2706 = vst.msk [vmem:[#allocation3 + $0x110] sm:$0xff] %vm326_vm0, %v6348_v28  ;;  %v6354_v16 = vld [vmem:[#allocation2 + $0x109] sm:$0xff]  ;;  %v6356_v62 = vld [vmem:[#allocation2 + $0x111] sm:$0xff]  ;;  %v2441_v4 = vpop.f32.mrf.mxu0 }
 0x312   : > { %4109 = vst.msk [vmem:[#allocation3 + $0xc8] sm:$0xff] %vm326_vm0, %v6354_v16  ;;  %4110 = vst.msk [vmem:[#allocation3 + $0xd8] sm:$0xff] %vm326_vm0, %v6356_v62  ;;  %v2539_v5 = vmul.f32 %v6105_v49, %v2441_v4 }
 0x313   : > { %v2443_v45 = vpop.f32.mrf.mxu0 }
 0x314   : > { %v2578_v11 = vadd.f32 %v6112_v34, %v2539_v5 }
 0x316   : > { %v2610_v50 = vmax.f32 %v2578_v11, 0.0 }
 0x317   : > { %v2739_v3 = vld [vmem:[#allocation2 + $0x128] sm:$0xff] }
 0x318   : > { %v6367_v63 = vld [vmem:[#allocation2 + $0x127] sm:$0xff]  ;;  %2642 = vst.msk [vmem:[#allocation2 + $0x130] sm:$0xff] %vm326_vm0, %v2610_v50  ;;  %2821 = vrot.lane.b32.xlu0 %v2739_v3, %s4854_s15 }
 0x319   : > { %2707 = vst.msk [vmem:[#allocation3 + $0x120] sm:$0xff] %vm326_vm0, %v6367_v63  ;;  %v2446_v48 = vpop.f32.mrf.mxu0 }
 0x31a   : > { %v2540_v24 = vmul.f32 %v6105_v49, %v2446_v48 }
 0x31b   : > { %v2448_v43 = vpop.f32.mrf.mxu0 }
 0x31c   : > { %v2579_v53 = vadd.f32 %v6112_v34, %v2540_v24 }
 0x31e   : > { %v2611_v4 = vmax.f32 %v2579_v53, 0.0 }
 0x31f   : > { %v2740_v5 = vld [vmem:[#allocation2 + $0x130] sm:$0xff] }
 0x320   : > { %v6377_v45 = vld [vmem:[#allocation2 + $0x12f] sm:$0xff]  ;;  %2643 = vst.msk [vmem:[#allocation2 + $0x148] sm:$0xff] %vm326_vm0, %v2611_v4  ;;  %2823 = vrot.lane.b32.xlu1 %v2740_v5, %s4854_s15 }
 0x321   : > { %2708 = vst.msk [vmem:[#allocation3 + $0x130] sm:$0xff] %vm326_vm0, %v6377_v45  ;;  %v6383_v11 = vld [vmem:[#allocation2 + $0x129] sm:$0xff]  ;;  %v6385_v8 = vld [vmem:[#allocation2 + $0x131] sm:$0xff]  ;;  %v2451_v38 = vpop.f32.mrf.mxu0 }
 0x322   : > { %4111 = vst.msk [vmem:[#allocation3 + $0xe8] sm:$0xff] %vm326_vm0, %v6383_v11  ;;  %4112 = vst.msk [vmem:[#allocation3 + $0xf8] sm:$0xff] %vm326_vm0, %v6385_v8  ;;  %v2541_v10 = vmul.f32 %v6105_v49, %v2451_v38 }
 0x323   : > { %v2453_v50 = vpop.f32.mrf.mxu0 }
 0x324   : > { %v2580_v3 = vadd.f32 %v6112_v34, %v2541_v10 }
 0x326   : > { %v2612_v48 = vmax.f32 %v2580_v3, 0.0 }
 0x327   : > { %v2741_v35 = vld [vmem:[#allocation2 + $0x148] sm:$0xff] }
 0x328   : > { %v2790_v24 = vpop.permute.xlu0 %2789  ;;  %v6393_v43 = vld [vmem:[#allocation2 + $0x147] sm:$0xff]  ;;  %2644 = vst.msk [vmem:[#allocation2 + $0x150] sm:$0xff] %vm326_vm0, %v2612_v48  ;;  %2825 = vrot.lane.b32.xlu0 %v2741_v35, %s4854_s15 }
 0x329   : > { %2883 = vst.msk [vmem:[#allocation3 + $0x20] sm:$0xff] %vm856_vm4, %v2790_v24  ;;  %v2456_v39 = vpop.f32.mrf.mxu0 }
 0x32a   : > { %2709 = vst.msk [vmem:[#allocation3 + $0x140] sm:$0xff] %vm326_vm0, %v6393_v43  ;;  %v2542_v53 = vmul.f32 %v6105_v49, %v2456_v39 }
 0x32b   : > { %v2458_v4 = vpop.f32.mrf.mxu0 }
 0x32c   : > { %v2581_v5 = vadd.f32 %v6112_v34, %v2542_v53 }
 0x32e   : > { %v2613_v38 = vmax.f32 %v2581_v5, 0.0  ;;  %v2792_v10 = vpop.permute.xlu1 %2791 }
 0x32f   : > { %2884 = vst.msk [vmem:[#allocation3 + $0x30] sm:$0xff] %vm856_vm4, %v2792_v10  ;;  %v2742_v50 = vld [vmem:[#allocation2 + $0x150] sm:$0xff] }
 0x330   : > { %v6403_v3 = vld [vmem:[#allocation2 + $0x14f] sm:$0xff]  ;;  %2645 = vst.msk [vmem:[#allocation2 + $0x168] sm:$0xff] %vm326_vm0, %v2613_v38  ;;  %2827 = vrot.lane.b32.xlu1 %v2742_v50, %s4854_s15 }
 0x331   : > { %2710 = vst.msk [vmem:[#allocation3 + $0x150] sm:$0xff] %vm326_vm0, %v6403_v3  ;;  %v6409_v48 = vld [vmem:[#allocation2 + $0x149] sm:$0xff]  ;;  %v6411_v24 = vld [vmem:[#allocation2 + $0x151] sm:$0xff]  ;;  %v2461_v35 = vpop.f32.mrf.mxu0 }
 0x332   : > { %7452 = vst [vmem:[#allocation20_spill] sm:$0xff] %v6409_v48  ;;  %7453 = vst [vmem:[#allocation4_spill] sm:$0xff] %v6411_v24  ;;  %v2543_v39 = vmul.f32 %v6105_v49, %v2461_v35 }
 0x333   : > { %4113 = vst.msk [vmem:[#allocation3 + $0x108] sm:$0xff] %vm326_vm0, %v6409_v48  ;;  %4114 = vst.msk [vmem:[#allocation3 + $0x118] sm:$0xff] %vm326_vm0, %v6411_v24  ;;  %v2463_v4 = vpop.f32.mrf.mxu0 }
 0x334   : > { %v2794_v53 = vpop.permute.xlu0 %2793  ;;  %v2582_v5 = vadd.f32 %v6112_v34, %v2543_v39  ;;  %v4208_v4 = vld [vmem:[%s7374_s5 + $0x78] sm:$0xff] }
 0x335   : > { %2885 = vst.msk [vmem:[#allocation3 + $0x40] sm:$0xff] %vm856_vm4, %v2794_v53  ;;  %4308 = vmatpush1.msra.mxu1 %v4208_v4 }
 0x336   : > { %v2614_v38 = vmax.f32 %v2582_v5, 0.0  ;;  %4309 = vmatprep.subr.mxu1 %v7435_v18 }
 0x337   : > { %v2743_v10 = vld [vmem:[#allocation2 + $0x168] sm:$0xff] }
 0x338   : > { %v6420_v50 = vld [vmem:[#allocation2 + $0x167] sm:$0xff]  ;;  %2646 = vst.msk [vmem:[#allocation2 + $0x170] sm:$0xff] %vm326_vm0, %v2614_v38  ;;  %2829 = vrot.lane.b32.xlu0 %v2743_v10, %s4854_s15 }
 0x339   : > { %7454 = vst [vmem:[#allocation6_spill] sm:$0xff] %v6420_v50  ;;  %2711 = vst.msk [vmem:[#allocation3 + $0x160] sm:$0xff] %vm326_vm0, %v6420_v50  ;;  %v2466_v24 = vpop.f32.mrf.mxu0 }
 0x33a   : > { %v2544_v35 = vmul.f32 %v6105_v49, %v2466_v24  ;;  %v2796_v48 = vpop.permute.xlu1 %2795 }
 0x33b   : > { %2886 = vst.msk [vmem:[#allocation3 + $0x50] sm:$0xff] %vm856_vm4, %v2796_v48  ;;  %v2468_v39 = vpop.f32.mrf.mxu0  ;;  %v4207_v48 = vld [vmem:[%s7374_s5 + $0x70] sm:$0xff] }
 0x33c   : > { %v2583_v53 = vadd.f32 %v6112_v34, %v2544_v35  ;;  %4310 = vmatpush1.msra.mxu1 %v4207_v48 }
 0x33d   : > { %4311 = vmatprep.subr.mxu1 %v7435_v18 }
 0x33e   : > { %v2615_v5 = vmax.f32 %v2583_v53, 0.0 }
 0x33f   : > { %v2744_v10 = vld [vmem:[#allocation2 + $0x170] sm:$0xff] }
 0x340   : > { %v2798_v38 = vpop.permute.xlu0 %2797  ;;  %v6433_v50 = vld [vmem:[#allocation2 + $0x16f] sm:$0xff]  ;;  %2647 = vst.msk [vmem:[#allocation2 + $0x188] sm:$0xff] %vm326_vm0, %v2615_v5  ;;  %2831 = vrot.lane.b32.xlu1 %v2744_v10, %s4854_s15  ;;  %v4205_v10 = vld [vmem:[%s7374_s5 + $0x60] sm:$0xff] }
 0x341   : > { %7455 = vst [vmem:[#allocation5_spill] sm:$0xff] %v6433_v50  ;;  %2887 = vst.msk [vmem:[#allocation3 + $0x60] sm:$0xff] %vm856_vm4, %v2798_v38  ;;  %v6443_v24 = vld [vmem:[#allocation2 + $0x169] sm:$0xff]  ;;  %v6445_v35 = vld [vmem:[#allocation2 + $0x171] sm:$0xff]  ;;  %v2471_v39 = vpop.f32.mrf.mxu0 }
 0x342   : > { %2712 = vst.msk [vmem:[#allocation3 + $0x170] sm:$0xff] %vm326_vm0, %v6433_v50  ;;  %7456 = vst [vmem:[#allocation7_spill] sm:$0xff] %v6443_v24  ;;  %v2545_v53 = vmul.f32 %v6105_v49, %v2471_v39  ;;  %v4206_v5 = vld [vmem:[%s7374_s5 + $0x68] sm:$0xff] }
 0x343   : > { %7457 = vst [vmem:[#allocation8_spill] sm:$0xff] %v6445_v35  ;;  %4115 = vst.msk [vmem:[#allocation3 + $0x128] sm:$0xff] %vm326_vm0, %v6443_v24  ;;  %v2473_v4 = vpop.f32.mrf.mxu0  ;;  %4312 = vmatpush1.msra.mxu1 %v4206_v5 }
 0x344   : > { %4116 = vst.msk [vmem:[#allocation3 + $0x138] sm:$0xff] %vm326_vm0, %v6445_v35  ;;  %v2584_v38 = vadd.f32 %v6112_v34, %v2545_v53  ;;  %4313 = vmatprep.subr.mxu1 %v7435_v18  ;;  %v4204_v53 = vld [vmem:[%s7374_s5 + $0x58] sm:$0xff] }
 0x345   : > { %4314 = vmatpush1.msra.mxu1 %v4205_v10 }
 0x346   : > { %v2616_v48 = vmax.f32 %v2584_v38, 0.0  ;;  %v2800_v35 = vpop.permute.xlu1 %2799  ;;  %4315 = vmatprep.subr.mxu1 %v7435_v18 }
 0x347   : > { %2888 = vst.msk [vmem:[#allocation3 + $0x70] sm:$0xff] %vm856_vm4, %v2800_v35  ;;  %v2745_v39 = vld [vmem:[#allocation2 + $0x188] sm:$0xff]  ;;  %4316 = vmatpush1.msra.mxu1 %v4204_v53  ;;  %v4203_v35 = vld [vmem:[%s7374_s5 + $0x50] sm:$0xff]  ;;  %v4201_v53 = vld [vmem:[%s7374_s5 + $0x40] sm:$0xff] }
 0x348   : > { %v6462_v4 = vld [vmem:[#allocation2 + $0x187] sm:$0xff]  ;;  %2648 = vst.msk [vmem:[#allocation2 + $0x190] sm:$0xff] %vm326_vm0, %v2616_v48  ;;  %2833 = vrot.lane.b32.xlu0 %v2745_v39, %s4854_s15  ;;  %4317 = vmatprep.subr.mxu1 %v7435_v18 }
 0x349   : > { %7458 = vst [vmem:[#allocation9_spill] sm:$0xff] %v6462_v4  ;;  %2713 = vst.msk [vmem:[#allocation3 + $0x180] sm:$0xff] %vm326_vm0, %v6462_v4  ;;  %v2476_v5 = vpop.f32.mrf.mxu0  ;;  %4318 = vmatpush1.msra.mxu1 %v4203_v35  ;;  %v4202_v48 = vld [vmem:[%s7374_s5 + $0x48] sm:$0xff] }
 0x34a   : > { %v2546_v38 = vmul.f32 %v6105_v49, %v2476_v5  ;;  %4319 = vmatprep.subr.mxu1 %v7435_v18 }
 0x34b   : > { %v2478_v24 = vpop.f32.mrf.mxu0  ;;  %4320 = vmatpush1.msra.mxu1 %v4202_v48 }
 0x34c   : > { %v2802_v10 = vpop.permute.xlu0 %2801  ;;  %v2585_v39 = vadd.f32 %v6112_v34, %v2546_v38  ;;  %4321 = vmatprep.subr.mxu1 %v7435_v18  ;;  %v4200_v38 = vld [vmem:[%s7374_s5 + $0x38] sm:$0xff] }
 0x34d   : > { %2889 = vst.msk [vmem:[#allocation3 + $0x80] sm:$0xff] %vm856_vm4, %v2802_v10  ;;  %4322 = vmatpush1.msra.mxu1 %v4201_v53  ;;  %v4199_v10 = vld [vmem:[%s7374_s5 + $0x30] sm:$0xff] }
 0x34e   : > { %v2617_v35 = vmax.f32 %v2585_v39, 0.0  ;;  %4323 = vmatprep.subr.mxu1 %v7435_v18  ;;  %v2913_v53 = vld [vmem:[#allocation2 + $0x9] sm:$0xff] }
 0x34f   : > { %v2746_v24 = vld [vmem:[#allocation2 + $0x190] sm:$0xff]  ;;  %4324 = vmatpush1.msra.mxu1 %v4200_v38  ;;  %v4198_v38 = vld [vmem:[%s7374_s5 + $0x28] sm:$0xff] }
 0x350   : > { %v6487_v5 = vld [vmem:[#allocation2 + $0x18f] sm:$0xff]  ;;  %2649 = vst.msk [vmem:[#allocation2 + $0x1a8] sm:$0xff] %vm326_vm0, %v2617_v35  ;;  %2835 = vrot.lane.b32.xlu1 %v2746_v24, %s4854_s15  ;;  %4325 = vmatprep.subr.mxu1 %v7435_v18 }
 0x351   : > { %7459 = vst [vmem:[#allocation10_spill] sm:$0xff] %v6487_v5  ;;  %2714 = vst.msk [vmem:[#allocation3 + $0x190] sm:$0xff] %vm326_vm0, %v6487_v5  ;;  %v6500_v48 = vld [vmem:[#allocation2 + $0x189] sm:$0xff]  ;;  %v2481_v39 = vpop.f32.mrf.mxu0  ;;  %v6502_v4 = vld [vmem:[#allocation2 + $0x191] sm:$0xff]  ;;  %4326 = vmatpush1.msra.mxu1 %v4199_v10 }
 0x352   : > { %7460 = vst [vmem:[#allocation11_spill] sm:$0xff] %v6502_v4  ;;  %4117 = vst.msk [vmem:[#allocation3 + $0x148] sm:$0xff] %vm326_vm0, %v6500_v48  ;;  %v2547_v35 = vmul.f32 %v6105_v49, %v2481_v39  ;;  %v2804_v24 = vpop.permute.xlu1 %2803  ;;  %4327 = vmatprep.subr.mxu1 %v7435_v18  ;;  %v4197_v39 = vld [vmem:[%s7374_s5 + $0x20] sm:$0xff] }
 0x353   : > { %4118 = vst.msk [vmem:[#allocation3 + $0x158] sm:$0xff] %vm326_vm0, %v6502_v4  ;;  %v2483_v5 = vpop.f32.mrf.mxu0  ;;  %4328 = vmatpush1.msra.mxu1 %v4198_v38 }
 0x354   : > { %2890 = vst.msk [vmem:[#allocation3 + $0x90] sm:$0xff] %vm856_vm4, %v2804_v24  ;;  %v2586_v50 = vadd.f32 %v6112_v34, %v2547_v35  ;;  %2977 = vrot.lane.b32.xlu1 %v2913_v53, %s4855_s16  ;;  %4329 = vmatprep.subr.mxu1 %v7435_v18  ;;  %v4196_v35 = vld [vmem:[%s7374_s5 + $0x18] sm:$0xff] }
 0x355   : > { %4330 = vmatpush1.msra.mxu1 %v4197_v39  ;;  %v2914_v53 = vld [vmem:[#allocation2 + $0x11] sm:$0xff] }
 0x356   : > { %v2618_v4 = vmax.f32 %v2586_v50, 0.0  ;;  %4331 = vmatprep.subr.mxu1 %v7435_v18 }
 0x357   : > { %v2747_v10 = vld [vmem:[#allocation2 + $0x1a8] sm:$0xff]  ;;  %4332 = vmatpush1.msra.mxu1 %v4196_v35 }
 0x358   : > { %v2806_v5 = vpop.permute.xlu0 %2805  ;;  %v6521_v24 = vld [vmem:[#allocation2 + $0x1a7] sm:$0xff]  ;;  %2650 = vst.msk [vmem:[#allocation2 + $0x1b0] sm:$0xff] %vm326_vm0, %v2618_v4  ;;  %3361 = vrot.lane.b32.xlu1 %v6130_v14, %s4857_s22  ;;  %2837 = vrot.lane.b32.xlu0 %v2747_v10, %s4854_s15  ;;  %v4195_v4 = vld [vmem:[%s7374_s5 + $0x10] sm:$0xff] }
 0x359   : > { %2891 = vst.msk [vmem:[#allocation3 + $0xa0] sm:$0xff] %vm856_vm4, %v2806_v5  ;;  %v2486_v50 = vpop.f32.mrf.mxu0  ;;  %4333 = vmatprep.subr.mxu1 %v7435_v18  ;;  %v4194_v5 = vld [vmem:[%s7374_s5 + $0x8] sm:$0xff] }
 0x35a   : > { %2715 = vst.msk [vmem:[#allocation3 + $0x1a0] sm:$0xff] %vm326_vm0, %v6521_v24  ;;  %v2548_v38 = vmul.f32 %v6105_v49, %v2486_v50  ;;  %4334 = vmatpush1.msra.mxu1 %v4195_v4  ;;  %v3489_v50 = vld [vmem:[#allocation2 + $0x29] sm:$0xff] }
 0x35b   : > { %v2488_v39 = vpop.f32.mrf.mxu0  ;;  %4335 = vmatprep.subr.mxu1 %v7435_v18 }
 0x35c   : > { %v2587_v14 = vadd.f32 %v6112_v34, %v2548_v38  ;;  %2979 = vrot.lane.b32.xlu1 %v2914_v53, %s4855_s16  ;;  %3169 = vrot.lane.b32.xlu0 %v6132_v9, %s4856_s17  ;;  %v4193_v53 = vld [vmem:[%s7374_s5] sm:$0xff] }
 0x35d   : > { %4336 = vmatpush1.msra.mxu1 %v4194_v5 }
 0x35e   : > { %v2619_v10 = vmax.f32 %v2587_v14, 0.0  ;;  %v2808_v35 = vpop.permute.xlu1 %2807  ;;  %4337 = vmatprep.subr.mxu1 %v7435_v18  ;;  %v4210_v14 = vld [vmem:[%s7374_s5 + $0x88] sm:$0xff] }
 0x35f   : > { %2892 = vst.msk [vmem:[#allocation3 + $0xb0] sm:$0xff] %vm856_vm4, %v2808_v35  ;;  %v6551_v38 = vld [vmem:[#allocation2 + $0x1af] sm:$0xff]  ;;  %4338 = vmatpush1.msra.mxu1 %v4193_v53  ;;  %v4209_v53 = vld [vmem:[%s7374_s5 + $0x80] sm:$0xff] }
 0x360   : > { %2651 = vst.msk [vmem:[#allocation2 + $0x1c8] sm:$0xff] %vm326_vm0, %v2619_v10  ;;  %3171 = vrot.lane.b32.xlu1 %v6147_v6, %s4856_s17  ;;  %3553 = vrot.lane.b32.xlu0 %v3489_v50, %s4858_s23  ;;  %v6557_v9 = vld [vmem:[#allocation2 + $0x1a9] sm:$0xff]  ;;  %v6559_v4 = vld [vmem:[#allocation2 + $0x1b1] sm:$0xff]  ;;  %2716 = vst.msk [vmem:[#allocation3 + $0x1b0] sm:$0xff] %vm326_vm0, %v6551_v38 }
 0x361   : > { %7461 = vst [vmem:[#allocation12_spill] sm:$0xff] %v6559_v4  ;;  %v2491_v39 = vpop.f32.mrf.mxu0  ;;  %4119 = vst.msk [vmem:[#allocation3 + $0x168] sm:$0xff] %vm326_vm0, %v6557_v9  ;;  %4367 = vmatprep.subr.mxu1 %v7435_v18 }
 0x362   : > { %4120 = vst.msk [vmem:[#allocation3 + $0x178] sm:$0xff] %vm326_vm0, %v6559_v4  ;;  %v2549_v6 = vmul.f32 %v6105_v49, %v2491_v39  ;;  %4368 = vmatpush2.msra.mxu1 %v4210_v14 }
 0x363   : > { %v2493_v10 = vpop.f32.mrf.mxu0  ;;  %4369 = vmatprep.subr.mxu1 %v7435_v18 }
 0x364   : > { %v2810_v5 = vpop.permute.xlu0 %2809  ;;  %v2588_v35 = vadd.f32 %v6112_v34, %v2549_v6  ;;  %3363 = vrot.lane.b32.xlu1 %v6145_v32, %s4857_s22  ;;  %3745 = vrot.lane.b32.xlu0 %v6159_v40, %s4859_s24 }
 0x365   : > { %2893 = vst.msk [vmem:[#allocation3 + $0xc0] sm:$0xff] %vm856_vm4, %v2810_v5  ;;  %4370 = vmatpush2.msra.mxu1 %v4209_v53  ;;  %v3490_v5 = vld [vmem:[#allocation2 + $0x31] sm:$0xff] }
 0x366   : > { %v2620_v39 = vmax.f32 %v2588_v35, 0.0 }
 0x367   : > { %v6583_v10 = vld [vmem:[#allocation2 + $0x1c7] sm:$0xff] }
 0x368   : > { %2652 = vst.msk [vmem:[#allocation2 + $0x1d0] sm:$0xff] %vm326_vm0, %v2620_v39  ;;  %2981 = vrot.lane.b32.xlu1 %v3489_v50, %s4855_s16  ;;  %3937 = vrot.lane.b32.xlu0 %v6157_v36, %s4860_s25  ;;  %2717 = vst.msk [vmem:[#allocation3 + $0x1c0] sm:$0xff] %vm326_vm0, %v6583_v10 }
 0x369   : > { %v2496_v32 = vpop.f32.mrf.mxu0 }
 0x36a   : > { %v2550_v6 = vmul.f32 %v6105_v49, %v2496_v32  ;;  %v2812_v14 = vpop.permute.xlu1 %2811 }
 0x36b   : > { %2894 = vst.msk [vmem:[#allocation3 + $0xd0] sm:$0xff] %vm856_vm4, %v2812_v14  ;;  %v2498_v18 = vpop.f32.mrf.mxu0 }
 0x36c   : > { %v2589_v35 = vadd.f32 %v6112_v34, %v2550_v6  ;;  %3173 = vrot.lane.b32.xlu1 %v6159_v40, %s4856_s17  ;;  %3555 = vrot.lane.b32.xlu0 %v3490_v5, %s4858_s23 }
 0x36e   : > { %v2621_v50 = vmax.f32 %v2589_v35, 0.0 }
 0x36f   : > { %v6597_v39 = vld [vmem:[#allocation2 + $0x1cf] sm:$0xff] }
 0x370   : > { %v2814_v53 = vpop.permute.xlu0 %2813  ;;  %v6599_v4 = vld [vmem:[#allocation2 + $0x1c9] sm:$0xff]  ;;  %2653 = vst.msk [vmem:[#allocation2 + $0x1e8] sm:$0xff] %vm326_vm0, %v2621_v50  ;;  %3365 = vrot.lane.b32.xlu1 %v6157_v36, %s4857_s22  ;;  %3747 = vrot.lane.b32.xlu0 %v6172_v19, %s4859_s24  ;;  %v6607_v32 = vld [vmem:[#allocation2 + $0x1d1] sm:$0xff]  ;;  %2718 = vst.msk [vmem:[#allocation3 + $0x1d0] sm:$0xff] %vm326_vm0, %v6597_v39 }
 0x371   : > { %2895 = vst.msk [vmem:[#allocation3 + $0xe0] sm:$0xff] %vm856_vm4, %v2814_v53  ;;  %v2501_v40 = vpop.f32.mrf.mxu0 }
 0x372   : > { %4121 = vst.msk [vmem:[#allocation3 + $0x188] sm:$0xff] %vm326_vm0, %v6599_v4  ;;  %4122 = vst.msk [vmem:[#allocation3 + $0x198] sm:$0xff] %vm326_vm0, %v6607_v32  ;;  %v2551_v6 = vmul.f32 %v6105_v49, %v2501_v40  ;;  %v4843_v40 = vld [vmem:[%s7373_s4] ss:$0 sm:$0xff] }
 0x373   : > { %v2503_v14 = vpop.f32.mrf.mxu0 }
 0x374   : > { %v2590_v36 = vadd.f32 %v6112_v34, %v2551_v6  ;;  %2983 = vrot.lane.b32.xlu1 %v3490_v5, %s4855_s16  ;;  %3939 = vrot.lane.b32.xlu0 %v6168_v0, %s4860_s25 }
 0x376   : > { %v2622_v18 = vmax.f32 %v2590_v36, 0.0  ;;  %v2816_v35 = vpop.permute.xlu1 %2815 }
 0x377   : > { %2896 = vst.msk [vmem:[#allocation3 + $0xf0] sm:$0xff] %vm856_vm4, %v2816_v35  ;;  %v6621_v50 = vld [vmem:[#allocation2 + $0x1e7] sm:$0xff] }
 0x378   : > { %2654 = vst.msk [vmem:[#allocation2 + $0x1f0] sm:$0xff] %vm326_vm0, %v2622_v18  ;;  %3175 = vrot.lane.b32.xlu1 %v6172_v19, %s4856_s17  ;;  %3557 = vrot.lane.b32.xlu0 %v6170_v37, %s4858_s23  ;;  %2719 = vst.msk [vmem:[#allocation3 + $0x1e0] sm:$0xff] %vm326_vm0, %v6621_v50 }
 0x37c   : > { %v2818_v49 = vpop.permute.xlu0 %2817  ;;  %3367 = vrot.lane.b32.xlu1 %v6168_v0, %s4857_s22  ;;  %3749 = vrot.lane.b32.xlu0 %v6189_v47, %s4859_s24 }
 0x37d   : > { %2897 = vst.msk [vmem:[#allocation3 + $0x100] sm:$0xff] %vm856_vm4, %v2818_v49 }
 0x37f   : > { %v6635_v34 = vld [vmem:[#allocation2 + $0x1ef] sm:$0xff] }
 0x380   : > { %v6637_v5 = vld [vmem:[#allocation2 + $0x1e9] sm:$0xff]  ;;  %2985 = vrot.lane.b32.xlu1 %v6170_v37, %s4855_s16  ;;  %3941 = vrot.lane.b32.xlu0 %v6187_v29, %s4860_s25  ;;  %v6643_v19 = vld [vmem:[#allocation2 + $0x1f1] sm:$0xff]  ;;  %2720 = vst.msk [vmem:[#allocation3 + $0x1f0] sm:$0xff] %vm326_vm0, %v6635_v34 }
 0x381   : > { %4123 = vst.msk [vmem:[#allocation3 + $0x1a8] sm:$0xff] %vm326_vm0, %v6637_v5  ;;  %4124 = vst.msk [vmem:[#allocation3 + $0x1b8] sm:$0xff] %vm326_vm0, %v6643_v19 }
 0x382   : > { %v2820_v0 = vpop.permute.xlu1 %2819 }
 0x383   : > { %2898 = vst.msk [vmem:[#allocation3 + $0x110] sm:$0xff] %vm856_vm4, %v2820_v0 }
 0x384   : > { %3177 = vrot.lane.b32.xlu1 %v6189_v47, %s4856_s17  ;;  %3559 = vrot.lane.b32.xlu0 %v6181_v26, %s4858_s23 }
 0x388   : > { %3369 = vrot.lane.b32.xlu1 %v6187_v29, %s4857_s22  ;;  %3751 = vrot.lane.b32.xlu0 %v6201_v46, %s4859_s24 }
 0x38a   : > { %v2822_v37 = vpop.permute.xlu0 %2821 }
 0x38b   : > { %2899 = vst.msk [vmem:[#allocation3 + $0x120] sm:$0xff] %vm856_vm4, %v2822_v37 }
 0x38c   : > { %2987 = vrot.lane.b32.xlu1 %v6181_v26, %s4855_s16  ;;  %3943 = vrot.lane.b32.xlu0 %v6199_v44, %s4860_s25 }
 0x390   : > { %3179 = vrot.lane.b32.xlu1 %v6201_v46, %s4856_s17  ;;  %3561 = vrot.lane.b32.xlu0 %v6203_v51, %s4858_s23 }
 0x392   : > { %v2824_v47 = vpop.permute.xlu1 %2823 }
 0x393   : > { %2900 = vst.msk [vmem:[#allocation3 + $0x130] sm:$0xff] %vm856_vm4, %v2824_v47 }
 0x394   : > { %3371 = vrot.lane.b32.xlu1 %v6199_v44, %s4857_s22  ;;  %3753 = vrot.lane.b32.xlu0 %v6220_v1, %s4859_s24 }
 0x398   : > { %2989 = vrot.lane.b32.xlu1 %v6203_v51, %s4855_s16  ;;  %3945 = vrot.lane.b32.xlu0 %v6218_v60, %s4860_s25 }
 0x39a   : > { %v2826_v26 = vpop.permute.xlu0 %2825 }
 0x39b   : > { %2901 = vst.msk [vmem:[#allocation3 + $0x140] sm:$0xff] %vm856_vm4, %v2826_v26 }
 0x39c   : > { %3181 = vrot.lane.b32.xlu1 %v6220_v1, %s4856_s17  ;;  %3563 = vrot.lane.b32.xlu0 %v6210_v52, %s4858_s23 }
 0x3a0   : > { %3373 = vrot.lane.b32.xlu1 %v6218_v60, %s4857_s22  ;;  %3755 = vrot.lane.b32.xlu0 %v6231_v23, %s4859_s24 }
 0x3a2   : > { %v2828_v29 = vpop.permute.xlu1 %2827 }
 0x3a3   : > { %2902 = vst.msk [vmem:[#allocation3 + $0x150] sm:$0xff] %vm856_vm4, %v2828_v29 }
 0x3a4   : > { %2991 = vrot.lane.b32.xlu1 %v6210_v52, %s4855_s16  ;;  %3947 = vrot.lane.b32.xlu0 %v6229_v7, %s4860_s25 }
 0x3a8   : > { %3183 = vrot.lane.b32.xlu1 %v6231_v23, %s4856_s17  ;;  %3565 = vrot.lane.b32.xlu0 %v6233_v12, %s4858_s23 }
 0x3aa   : > { %v2830_v44 = vpop.permute.xlu0 %2829 }
 0x3ab   : > { %2903 = vst.msk [vmem:[#allocation3 + $0x160] sm:$0xff] %vm856_vm4, %v2830_v44 }
 0x3ac   : > { %3375 = vrot.lane.b32.xlu1 %v6229_v7, %s4857_s22  ;;  %3757 = vrot.lane.b32.xlu0 %v6250_v22, %s4859_s24 }
 0x3b0   : > { %2993 = vrot.lane.b32.xlu1 %v6233_v12, %s4855_s16  ;;  %3949 = vrot.lane.b32.xlu0 %v6248_v20, %s4860_s25 }
 0x3b2   : > { %v2832_v46 = vpop.permute.xlu1 %2831 }
 0x3b3   : > { %2904 = vst.msk [vmem:[#allocation3 + $0x170] sm:$0xff] %vm856_vm4, %v2832_v46 }
 0x3b4   : > { %3185 = vrot.lane.b32.xlu1 %v6250_v22, %s4856_s17  ;;  %3567 = vrot.lane.b32.xlu0 %v6240_v31, %s4858_s23 }
 0x3b8   : > { %3377 = vrot.lane.b32.xlu1 %v6248_v20, %s4857_s22  ;;  %3759 = vrot.lane.b32.xlu0 %v6261_v41, %s4859_s24 }
 0x3ba   : > { %v2834_v51 = vpop.permute.xlu0 %2833 }
 0x3bb   : > { %2905 = vst.msk [vmem:[#allocation3 + $0x180] sm:$0xff] %vm856_vm4, %v2834_v51 }
 0x3bc   : > { %2995 = vrot.lane.b32.xlu1 %v6240_v31, %s4855_s16  ;;  %3951 = vrot.lane.b32.xlu0 %v6259_v58, %s4860_s25 }
 0x3c0   : > { %3187 = vrot.lane.b32.xlu1 %v6261_v41, %s4856_s17  ;;  %3569 = vrot.lane.b32.xlu0 %v6263_v13, %s4858_s23 }
 0x3c2   : > { %v2836_v52 = vpop.permute.xlu1 %2835 }
 0x3c3   : > { %2906 = vst.msk [vmem:[#allocation3 + $0x190] sm:$0xff] %vm856_vm4, %v2836_v52 }
 0x3c4   : > { %3379 = vrot.lane.b32.xlu1 %v6259_v58, %s4857_s22  ;;  %3761 = vrot.lane.b32.xlu0 %v6280_v15, %s4859_s24 }
 0x3c6   : > { %v2978_v60 = vpop.permute.xlu1 %2977 }
 0x3c7   : > { %3073 = vst.msk [vmem:[#allocation3] sm:$0xff] %vm1049_vm5, %v2978_v60 }
 0x3c8   : > { %2997 = vrot.lane.b32.xlu1 %v6263_v13, %s4855_s16  ;;  %3953 = vrot.lane.b32.xlu0 %v6278_v27, %s4860_s25  ;;  %v2506_v41 = vpop.f32.mrf.mxu0  ;;  %v4842_v13 = vld [vmem:[%s7372_s3] ss:$0 sm:$0xff] }
 0x3ca   : > { %v3362_v1 = vpop.permute.xlu1 %3361  ;;  %v2838_v7 = vpop.permute.xlu0 %2837 }
 0x3cb   : > { %2907 = vst.msk [vmem:[#allocation3 + $0x1a0] sm:$0xff] %vm856_vm4, %v2838_v7 }
 0x3cc   : > { %3189 = vrot.lane.b32.xlu1 %v6280_v15, %s4856_s17  ;;  %3571 = vrot.lane.b32.xlu0 %v6270_v42, %s4858_s23 }
 0x3ce   : > { %v2980_v23 = vpop.permute.xlu1 %2979  ;;  %v3170_v12 = vpop.permute.xlu0 %3169 }
 0x3cf   : > { %3074 = vst.msk [vmem:[#allocation3 + $0x10] sm:$0xff] %vm1049_vm5, %v2980_v23 }
 0x3d0   : > { %3265 = vst.msk [vmem:[#allocation3] sm:$0xff] %vm1242_vm6, %v3170_v12  ;;  %3381 = vrot.lane.b32.xlu1 %v6278_v27, %s4857_s22  ;;  %3763 = vrot.lane.b32.xlu0 %v6291_v57, %s4859_s24  ;;  %v2508_v27 = vpop.f32.mrf.mxu0 }
 0x3d1   : > { %3457 = vst.msk [vmem:[#allocation3] sm:$0xff] %vm1435_vm7, %v3362_v1 }
 0x3d2   : > { %v3172_v31 = vpop.permute.xlu1 %3171  ;;  %v3554_v20 = vpop.permute.xlu0 %3553 }
 0x3d3   : > { %3266 = vst.msk [vmem:[#allocation3 + $0x10] sm:$0xff] %vm1242_vm6, %v3172_v31  ;;  %v2511_v14 = vpop.f32.mrf.mxu0 }
 0x3d4   : > { %3649 = vst.msk [vmem:[#allocation3] sm:$0xff] %vm1628_vm8, %v3554_v20  ;;  %2999 = vrot.lane.b32.xlu1 %v6270_v42, %s4855_s16  ;;  %3955 = vrot.lane.b32.xlu0 %v6289_v56, %s4860_s25  ;;  %v2552_v42 = vmul.f32 %v4842_v13, %v2506_v41  ;;  %v2553_v36 = vmul.f32 %v4842_v13, %v2511_v14  ;;  %v3886_v13 = vld [vmem:[#allocation2 + $0x110] sm:$0xff] }
 0x3d5   : > { %v2513_v0 = vpop.f32.mrf.mxu0 }
 0x3d6   : > { %v3364_v22 = vpop.permute.xlu1 %3363  ;;  %v3746_v58 = vpop.permute.xlu0 %3745  ;;  %v2591_v6 = vadd.f32 %v4843_v40, %v2552_v42  ;;  %v2592_v49 = vadd.f32 %v4843_v40, %v2553_v36 }
 0x3d7   : > { %3458 = vst.msk [vmem:[#allocation3 + $0x10] sm:$0xff] %vm1435_vm7, %v3364_v22 }
 0x3d8   : > { %3841 = vst.msk [vmem:[#allocation3] sm:$0xff] %vm1822_vm9, %v3746_v58  ;;  %3191 = vrot.lane.b32.xlu1 %v6291_v57, %s4856_s17  ;;  %3573 = vrot.lane.b32.xlu0 %v6293_v59, %s4858_s23  ;;  %v2623_v57 = vmax.f32 %v2591_v6, 0.0 }
 0x3da   : > { %v2982_v15 = vpop.permute.xlu1 %2981  ;;  %v3938_v53 = vpop.permute.xlu0 %3937  ;;  %2655 = vst.msk [vmem:[#allocation2 + $0x208] sm:$0xff] %vm326_vm0, %v2623_v57 }
 0x3db   : > { %3075 = vst.msk [vmem:[#allocation3 + $0x20] sm:$0xff] %vm1049_vm5, %v2982_v15 }
 0x3dc   : > { %4033 = vst.msk [vmem:[#allocation3] sm:$0xff] %vm2015_vm10, %v3938_v53  ;;  %3383 = vrot.lane.b32.xlu1 %v6289_v56, %s4857_s22  ;;  %3765 = vrot.lane.b32.xlu0 %v6310_v25, %s4859_s24  ;;  %v2624_v56 = vmax.f32 %v2592_v49, 0.0  ;;  %v4138_v53 = vld [vmem:[#allocation3 + $0x48] sm:$0xff] }
 0x3de   : > { %v3174_v18 = vpop.permute.xlu1 %3173  ;;  %v3556_v35 = vpop.permute.xlu0 %3555  ;;  %2656 = vst.msk [vmem:[#allocation2 + $0x210] sm:$0xff] %vm326_vm0, %v2624_v56 }
 0x3df   : > { %3267 = vst.msk [vmem:[#allocation3 + $0x20] sm:$0xff] %vm1242_vm6, %v3174_v18 }
 0x3e0   : > { %3650 = vst.msk [vmem:[#allocation3 + $0x10] sm:$0xff] %vm1628_vm8, %v3556_v35  ;;  %3001 = vrot.lane.b32.xlu1 %v6293_v59, %s4855_s16  ;;  %3957 = vrot.lane.b32.xlu0 %v6308_v2, %s4860_s25  ;;  %v4132_v59 = vld [vmem:[#allocation3 + $0x18] sm:$0xff] }
 0x3e1   : > { %v4140_v35 = vld [vmem:[#allocation3 + $0x58] sm:$0xff] }
 0x3e2   : > { %v3366_v37 = vpop.permute.xlu1 %3365  ;;  %v3748_v47 = vpop.permute.xlu0 %3747 }
 0x3e3   : > { %v4129_v26 = vld [vmem:[#allocation3] sm:$0xff]  ;;  %3459 = vst.msk [vmem:[#allocation3 + $0x20] sm:$0xff] %vm1435_vm7, %v3366_v37 }
 0x3e4   : > { %3842 = vst.msk [vmem:[#allocation3 + $0x10] sm:$0xff] %vm1822_vm9, %v3748_v47  ;;  %4372 = vmatmul.mubr.f32.vlgmr.msra.gmra.mxu1 %v4129_v26  ;;  %3193 = vrot.lane.b32.xlu1 %v6310_v25, %s4856_s17 }
 0x3e5   : > { %3575 = vrot.lane.b32.xlu0 %v6300_v17, %s4858_s23  ;;  %4787 = vmatprep.mubr.msk.f32.mxu1 %vm326_vm0, %v4132_v59  ;;  %v6792_v51 = vld [vmem:[#allocation2 + $0x209] sm:$0xff]  ;;  %v6807_v23 = vld [vmem:[#allocation2 + $0x211] sm:$0xff] }
 0x3e6   : > { %v2984_v29 = vpop.permute.xlu1 %2983  ;;  %v3940_v44 = vpop.permute.xlu0 %3939  ;;  %4125 = vst.msk [vmem:[#allocation3 + $0x1c8] sm:$0xff] %vm326_vm0, %v6792_v51  ;;  %4126 = vst.msk [vmem:[#allocation3 + $0x1d8] sm:$0xff] %vm326_vm0, %v6807_v23  ;;  %v4142_v59 = vld [vmem:[#allocation3 + $0x68] sm:$0xff] }
 0x3e7   : > { %3076 = vst.msk [vmem:[#allocation3 + $0x30] sm:$0xff] %vm1049_vm5, %v2984_v29 }
 0x3e8   : > { %4034 = vst.msk [vmem:[#allocation3 + $0x10] sm:$0xff] %vm2015_vm10, %v3940_v44  ;;  %3385 = vrot.lane.b32.xlu1 %v6308_v2, %s4857_s22 }
 0x3e9   : > { %3767 = vrot.lane.b32.xlu0 %v6321_v54, %s4859_s24 }
 0x3ea   : > { %v3176_v46 = vpop.permute.xlu1 %3175  ;;  %v3558_v25 = vpop.permute.xlu0 %3557 }
 0x3eb   : > { %3268 = vst.msk [vmem:[#allocation3 + $0x30] sm:$0xff] %vm1242_vm6, %v3176_v46 }
 0x3ec   : > { %3651 = vst.msk [vmem:[#allocation3 + $0x20] sm:$0xff] %vm1628_vm8, %v3558_v25  ;;  %3003 = vrot.lane.b32.xlu1 %v6300_v17, %s4855_s16  ;;  %v4134_v17 = vld [vmem:[#allocation3 + $0x28] sm:$0xff] }
 0x3ed   : > { %3959 = vrot.lane.b32.xlu0 %v6319_v55, %s4860_s25 }
 0x3ee   : > { %v3368_v2 = vpop.permute.xlu1 %3367  ;;  %v3750_v52 = vpop.permute.xlu0 %3749 }
 0x3ef   : > { %v4131_v60 = vld [vmem:[#allocation3 + $0x10] sm:$0xff]  ;;  %3460 = vst.msk [vmem:[#allocation3 + $0x30] sm:$0xff] %vm1435_vm7, %v3368_v2 }
 0x3f0   : > { %3843 = vst.msk [vmem:[#allocation3 + $0x20] sm:$0xff] %vm1822_vm9, %v3750_v52  ;;  %4377 = vmatmul.mubr.f32.gmra.mxu1 %v4131_v60  ;;  %3195 = vrot.lane.b32.xlu1 %v6321_v54, %s4856_s17  ;;  %v4144_v60 = vld [vmem:[#allocation3 + $0x78] sm:$0xff] }
 0x3f1   : > { %3577 = vrot.lane.b32.xlu0 %v6323_v30, %s4858_s23  ;;  %4788 = vmatprep.mubr.msk.f32.mxu1 %vm326_vm0, %v4134_v17 }
 0x3f2   : > { %v2986_v1 = vpop.permute.xlu1 %2985  ;;  %v3942_v7 = vpop.permute.xlu0 %3941 }
 0x3f3   : > { %3077 = vst.msk [vmem:[#allocation3 + $0x40] sm:$0xff] %vm1049_vm5, %v2986_v1 }
 0x3f4   : > { %4035 = vst.msk [vmem:[#allocation3 + $0x20] sm:$0xff] %vm2015_vm10, %v3942_v7  ;;  %3387 = vrot.lane.b32.xlu1 %v6319_v55, %s4857_s22  ;;  %v4136_v55 = vld [vmem:[#allocation3 + $0x38] sm:$0xff] }
 0x3f5   : > { %3769 = vrot.lane.b32.xlu0 %v6339_v21, %s4859_s24 }
 0x3f6   : > { %v3178_v54 = vpop.permute.xlu1 %3177  ;;  %v3560_v12 = vpop.permute.xlu0 %3559 }
 0x3f7   : > { %3269 = vst.msk [vmem:[#allocation3 + $0x40] sm:$0xff] %vm1242_vm6, %v3178_v54 }
 0x3f8   : > { %3652 = vst.msk [vmem:[#allocation3 + $0x30] sm:$0xff] %vm1628_vm8, %v3560_v12  ;;  %3005 = vrot.lane.b32.xlu1 %v6323_v30, %s4855_s16 }
 0x3f9   : > { %3961 = vrot.lane.b32.xlu0 %v6337_v61, %s4860_s25  ;;  %v3311_v61 = vld [vmem:[#allocation2 + $0x108] sm:$0xff] }
 0x3fa   : > { %v3370_v31 = vpop.permute.xlu1 %3369  ;;  %v3752_v20 = vpop.permute.xlu0 %3751 }
 0x3fb   : > { %v4133_v22 = vld [vmem:[#allocation3 + $0x20] sm:$0xff]  ;;  %3461 = vst.msk [vmem:[#allocation3 + $0x40] sm:$0xff] %vm1435_vm7, %v3370_v31 }
 0x3fc   : > { %3844 = vst.msk [vmem:[#allocation3 + $0x30] sm:$0xff] %vm1822_vm9, %v3752_v20  ;;  %4382 = vmatmul.mubr.f32.gmra.mxu1 %v4133_v22  ;;  %3197 = vrot.lane.b32.xlu1 %v6339_v21, %s4856_s17  ;;  %v7462_v20 = vld [vmem:[#allocation20_spill] sm:$0xff]  ;;  %v4146_v22 = vld [vmem:[#allocation3 + $0x88] sm:$0xff] }
 0x3fd   : > { %3579 = vrot.lane.b32.xlu0 %v6330_v33, %s4858_s23  ;;  %4789 = vmatprep.mubr.msk.f32.mxu1 %vm326_vm0, %v4136_v55 }
 0x3fe   : > { %v2988_v30 = vpop.permute.xlu1 %2987  ;;  %v3944_v58 = vpop.permute.xlu0 %3943 }
 0x3ff   : > { %3078 = vst.msk [vmem:[#allocation3 + $0x50] sm:$0xff] %vm1049_vm5, %v2988_v30  ;;  %v7463_v30 = vld [vmem:[#allocation6_spill] sm:$0xff] }
 0x400   : > { %4036 = vst.msk [vmem:[#allocation3 + $0x30] sm:$0xff] %vm2015_vm10, %v3944_v58  ;;  %3389 = vrot.lane.b32.xlu1 %v3311_v61, %s4857_s22 }
 0x401   : > { %3771 = vrot.lane.b32.xlu0 %v6348_v28, %s4859_s24 }
 0x402   : > { %v3180_v41 = vpop.permute.xlu1 %3179  ;;  %v3562_v21 = vpop.permute.xlu0 %3561 }
 0x403   : > { %3270 = vst.msk [vmem:[#allocation3 + $0x50] sm:$0xff] %vm1242_vm6, %v3180_v41 }
 0x404   : > { %3653 = vst.msk [vmem:[#allocation3 + $0x40] sm:$0xff] %vm1628_vm8, %v3562_v21  ;;  %3007 = vrot.lane.b32.xlu1 %v6330_v33, %s4855_s16 }
 0x405   : > { %3963 = vrot.lane.b32.xlu0 %v3886_v13, %s4860_s25 }
 0x406   : > { %v3372_v42 = vpop.permute.xlu1 %3371  ;;  %v3754_v27 = vpop.permute.xlu0 %3753 }
 0x407   : > { %v4135_v15 = vld [vmem:[#allocation3 + $0x30] sm:$0xff]  ;;  %3462 = vst.msk [vmem:[#allocation3 + $0x50] sm:$0xff] %vm1435_vm7, %v3372_v42  ;;  %v7464_v42 = vld [vmem:[#allocation4_spill] sm:$0xff] }
 0x408   : > { %3845 = vst.msk [vmem:[#allocation3 + $0x40] sm:$0xff] %vm1822_vm9, %v3754_v27  ;;  %4387 = vmatmul.mubr.f32.gmra.mxu1 %v4135_v15  ;;  %3199 = vrot.lane.b32.xlu1 %v6348_v28, %s4856_s17  ;;  %v3887_v28 = vld [vmem:[#allocation2 + $0x128] sm:$0xff]  ;;  %v4148_v27 = vld [vmem:[#allocation3 + $0x98] sm:$0xff] }
 0x409   : > { %3581 = vrot.lane.b32.xlu0 %v6354_v16, %s4858_s23  ;;  %4790 = vmatprep.mubr.msk.f32.mxu1 %vm326_vm0, %v4138_v53 }
 0x40a   : > { %v2990_v33 = vpop.permute.xlu1 %2989  ;;  %v3946_v40 = vpop.permute.xlu0 %3945 }
 0x40b   : > { %3079 = vst.msk [vmem:[#allocation3 + $0x60] sm:$0xff] %vm1049_vm5, %v2990_v33  ;;  %v7465_v33 = vld [vmem:[#allocation5_spill] sm:$0xff] }
 0x40c   : > { %4037 = vst.msk [vmem:[#allocation3 + $0x40] sm:$0xff] %vm2015_vm10, %v3946_v40  ;;  %3391 = vrot.lane.b32.xlu1 %v3886_v13, %s4857_s22 }
 0x40d   : > { %3773 = vrot.lane.b32.xlu0 %v6367_v63, %s4859_s24 }
 0x40e   : > { %v3182_v6 = vpop.permute.xlu1 %3181  ;;  %v3564_v57 = vpop.permute.xlu0 %3563 }
 0x40f   : > { %3271 = vst.msk [vmem:[#allocation3 + $0x60] sm:$0xff] %vm1242_vm6, %v3182_v6 }
 0x410   : > { %3654 = vst.msk [vmem:[#allocation3 + $0x50] sm:$0xff] %vm1628_vm8, %v3564_v57  ;;  %3009 = vrot.lane.b32.xlu1 %v6354_v16, %s4855_s16  ;;  %v3892_v57 = vld [vmem:[#allocation2 + $0x170] sm:$0xff] }
 0x411   : > { %3965 = vrot.lane.b32.xlu0 %v3887_v28, %s4860_s25 }
 0x412   : > { %v3374_v14 = vpop.permute.xlu1 %3373  ;;  %v3756_v36 = vpop.permute.xlu0 %3755 }
 0x413   : > { %v4137_v18 = vld [vmem:[#allocation3 + $0x40] sm:$0xff]  ;;  %3463 = vst.msk [vmem:[#allocation3 + $0x60] sm:$0xff] %vm1435_vm7, %v3374_v14 }
 0x414   : > { %3846 = vst.msk [vmem:[#allocation3 + $0x50] sm:$0xff] %vm1822_vm9, %v3756_v36  ;;  %4392 = vmatmul.mubr.f32.gmra.mxu1 %v4137_v18  ;;  %3201 = vrot.lane.b32.xlu1 %v6367_v63, %s4856_s17  ;;  %v3888_v63 = vld [vmem:[#allocation2 + $0x130] sm:$0xff]  ;;  %v7466_v18 = vld [vmem:[#allocation7_spill] sm:$0xff] }
 0x415   : > { %3583 = vrot.lane.b32.xlu0 %v6356_v62, %s4858_s23  ;;  %4791 = vmatprep.mubr.msk.f32.mxu1 %vm326_vm0, %v4140_v35  ;;  %v4150_v35 = vld [vmem:[#allocation3 + $0xa8] sm:$0xff] }
 0x416   : > { %v2992_v16 = vpop.permute.xlu1 %2991  ;;  %v3948_v49 = vpop.permute.xlu0 %3947 }
 0x417   : > { %3080 = vst.msk [vmem:[#allocation3 + $0x70] sm:$0xff] %vm1049_vm5, %v2992_v16 }
 0x418   : > { %4038 = vst.msk [vmem:[#allocation3 + $0x50] sm:$0xff] %vm2015_vm10, %v3948_v49  ;;  %3393 = vrot.lane.b32.xlu1 %v3887_v28, %s4857_s22 }
 0x419   : > { %3775 = vrot.lane.b32.xlu0 %v6377_v45, %s4859_s24 }
 0x41a   : > { %v3184_v0 = vpop.permute.xlu1 %3183  ;;  %v3566_v56 = vpop.permute.xlu0 %3565 }
 0x41b   : > { %3272 = vst.msk [vmem:[#allocation3 + $0x70] sm:$0xff] %vm1242_vm6, %v3184_v0  ;;  %v7467_v0 = vld [vmem:[#allocation9_spill] sm:$0xff] }
 0x41c   : > { %3655 = vst.msk [vmem:[#allocation3 + $0x60] sm:$0xff] %vm1628_vm8, %v3566_v56  ;;  %3011 = vrot.lane.b32.xlu1 %v6356_v62, %s4855_s16 }
 0x41d   : > { %3967 = vrot.lane.b32.xlu0 %v3888_v63, %s4860_s25 }
 0x41e   : > { %v3376_v37 = vpop.permute.xlu1 %3375  ;;  %v3758_v47 = vpop.permute.xlu0 %3757 }
 0x41f   : > { %v4139_v26 = vld [vmem:[#allocation3 + $0x50] sm:$0xff]  ;;  %3464 = vst.msk [vmem:[#allocation3 + $0x70] sm:$0xff] %vm1435_vm7, %v3376_v37  ;;  %v3893_v37 = vld [vmem:[#allocation2 + $0x188] sm:$0xff] }
 0x420   : > { %3847 = vst.msk [vmem:[#allocation3 + $0x60] sm:$0xff] %vm1822_vm9, %v3758_v47  ;;  %4397 = vmatmul.mubr.f32.gmra.mxu1 %v4139_v26  ;;  %3203 = vrot.lane.b32.xlu1 %v6377_v45, %s4856_s17  ;;  %v3889_v45 = vld [vmem:[#allocation2 + $0x148] sm:$0xff] }
 0x421   : > { %3585 = vrot.lane.b32.xlu0 %v6383_v11, %s4858_s23  ;;  %4792 = vmatprep.mubr.msk.f32.mxu1 %vm326_vm0, %v4142_v59 }
 0x422   : > { %v2994_v62 = vpop.permute.xlu1 %2993  ;;  %v3950_v29 = vpop.permute.xlu0 %3949 }
 0x423   : > { %3081 = vst.msk [vmem:[#allocation3 + $0x80] sm:$0xff] %vm1049_vm5, %v2994_v62  ;;  %v7468_v62 = vld [vmem:[#allocation8_spill] sm:$0xff] }
 0x424   : > { %4039 = vst.msk [vmem:[#allocation3 + $0x60] sm:$0xff] %vm2015_vm10, %v3950_v29  ;;  %3395 = vrot.lane.b32.xlu1 %v3888_v63, %s4857_s22  ;;  %v4152_v29 = vld [vmem:[#allocation3 + $0xb8] sm:$0xff] }
 0x425   : > { %3777 = vrot.lane.b32.xlu0 %v6393_v43, %s4859_s24 }
 0x426   : > { %v3186_v44 = vpop.permute.xlu1 %3185  ;;  %v3568_v46 = vpop.permute.xlu0 %3567 }
 0x427   : > { %3273 = vst.msk [vmem:[#allocation3 + $0x80] sm:$0xff] %vm1242_vm6, %v3186_v44 }
 0x428   : > { %3656 = vst.msk [vmem:[#allocation3 + $0x70] sm:$0xff] %vm1628_vm8, %v3568_v46  ;;  %3013 = vrot.lane.b32.xlu1 %v6383_v11, %s4855_s16 }
 0x429   : > { %3969 = vrot.lane.b32.xlu0 %v3889_v45, %s4860_s25 }
 0x42a   : > { %v3378_v25 = vpop.permute.xlu1 %3377  ;;  %v3760_v2 = vpop.permute.xlu0 %3759 }
 0x42b   : > { %v4141_v52 = vld [vmem:[#allocation3 + $0x60] sm:$0xff]  ;;  %3465 = vst.msk [vmem:[#allocation3 + $0x80] sm:$0xff] %vm1435_vm7, %v3378_v25 }
 0x42c   : > { %3848 = vst.msk [vmem:[#allocation3 + $0x70] sm:$0xff] %vm1822_vm9, %v3760_v2  ;;  %4402 = vmatmul.mubr.f32.gmra.mxu1 %v4141_v52  ;;  %3205 = vrot.lane.b32.xlu1 %v6393_v43, %s4856_s17  ;;  %v3890_v43 = vld [vmem:[#allocation2 + $0x150] sm:$0xff] }
 0x42d   : > { %3587 = vrot.lane.b32.xlu0 %v6385_v8, %s4858_s23  ;;  %4793 = vmatprep.mubr.msk.f32.mxu1 %vm326_vm0, %v4144_v60  ;;  %v3894_v52 = vld [vmem:[#allocation2 + $0x190] sm:$0xff] }
 0x42e   : > { %v2996_v11 = vpop.permute.xlu1 %2995  ;;  %v3952_v17 = vpop.permute.xlu0 %3951 }
 0x42f   : > { %3082 = vst.msk [vmem:[#allocation3 + $0x90] sm:$0xff] %vm1049_vm5, %v2996_v11 }
 0x430   : > { %4040 = vst.msk [vmem:[#allocation3 + $0x70] sm:$0xff] %vm2015_vm10, %v3952_v17  ;;  %3397 = vrot.lane.b32.xlu1 %v3889_v45, %s4857_s22  ;;  %v7469_v45 = vld [vmem:[#allocation10_spill] sm:$0xff] }
 0x431   : > { %3779 = vrot.lane.b32.xlu0 %v6403_v3, %s4859_s24 }
 0x432   : > { %v3188_v1 = vpop.permute.xlu1 %3187  ;;  %v3570_v7 = vpop.permute.xlu0 %3569 }
 0x433   : > { %3274 = vst.msk [vmem:[#allocation3 + $0x90] sm:$0xff] %vm1242_vm6, %v3188_v1  ;;  %v4154_v1 = vld [vmem:[#allocation3 + $0xc8] sm:$0xff] }
 0x434   : > { %3657 = vst.msk [vmem:[#allocation3 + $0x80] sm:$0xff] %vm1628_vm8, %v3570_v7  ;;  %3015 = vrot.lane.b32.xlu1 %v6385_v8, %s4855_s16 }
 0x435   : > { %3971 = vrot.lane.b32.xlu0 %v3890_v43, %s4860_s25 }
 0x436   : > { %v3380_v54 = vpop.permute.xlu1 %3379  ;;  %v3762_v12 = vpop.permute.xlu0 %3761 }
 0x437   : > { %v4143_v31 = vld [vmem:[#allocation3 + $0x70] sm:$0xff]  ;;  %3466 = vst.msk [vmem:[#allocation3 + $0x90] sm:$0xff] %vm1435_vm7, %v3380_v54 }
 0x438   : > { %3849 = vst.msk [vmem:[#allocation3 + $0x80] sm:$0xff] %vm1822_vm9, %v3762_v12  ;;  %4407 = vmatmul.mubr.f32.gmra.mxu1 %v4143_v31  ;;  %3207 = vrot.lane.b32.xlu1 %v6403_v3, %s4856_s17  ;;  %v3891_v3 = vld [vmem:[#allocation2 + $0x168] sm:$0xff] }
 0x439   : > { %3589 = vrot.lane.b32.xlu0 %v7462_v20, %s4858_s23  ;;  %4794 = vmatprep.mubr.msk.f32.mxu1 %vm326_vm0, %v4146_v22  ;;  %v3895_v31 = vld [vmem:[#allocation2 + $0x1a8] sm:$0xff] }
 0x43a   : > { %v2998_v8 = vpop.permute.xlu1 %2997  ;;  %v3954_v55 = vpop.permute.xlu0 %3953 }
 0x43b   : > { %3083 = vst.msk [vmem:[#allocation3 + $0xa0] sm:$0xff] %vm1049_vm5, %v2998_v8 }
 0x43c   : > { %4041 = vst.msk [vmem:[#allocation3 + $0x80] sm:$0xff] %vm2015_vm10, %v3954_v55  ;;  %3399 = vrot.lane.b32.xlu1 %v3890_v43, %s4857_s22  ;;  %v7470_v55 = vld [vmem:[#allocation11_spill] sm:$0xff] }
 0x43d   : > { %3781 = vrot.lane.b32.xlu0 %v7463_v30, %s4859_s24 }
 0x43e   : > { %v3190_v58 = vpop.permute.xlu1 %3189  ;;  %v3572_v61 = vpop.permute.xlu0 %3571 }
 0x43f   : > { %3275 = vst.msk [vmem:[#allocation3 + $0xa0] sm:$0xff] %vm1242_vm6, %v3190_v58 }
 0x440   : > { %3658 = vst.msk [vmem:[#allocation3 + $0x90] sm:$0xff] %vm1628_vm8, %v3572_v61  ;;  %3017 = vrot.lane.b32.xlu1 %v7462_v20, %s4855_s16 }
 0x441   : > { %3973 = vrot.lane.b32.xlu0 %v3891_v3, %s4860_s25 }
 0x442   : > { %v3382_v41 = vpop.permute.xlu1 %3381  ;;  %v3764_v21 = vpop.permute.xlu0 %3763 }
 0x443   : > { %v4145_v13 = vld [vmem:[#allocation3 + $0x80] sm:$0xff]  ;;  %3467 = vst.msk [vmem:[#allocation3 + $0xa0] sm:$0xff] %vm1435_vm7, %v3382_v41 }
 0x444   : > { %3850 = vst.msk [vmem:[#allocation3 + $0x90] sm:$0xff] %vm1822_vm9, %v3764_v21  ;;  %4412 = vmatmul.mubr.f32.gmra.mxu1 %v4145_v13  ;;  %3209 = vrot.lane.b32.xlu1 %v7463_v30, %s4856_s17  ;;  %v4156_v30 = vld [vmem:[#allocation3 + $0xd8] sm:$0xff] }
 0x445   : > { %3591 = vrot.lane.b32.xlu0 %v7464_v42, %s4858_s23  ;;  %4795 = vmatprep.mubr.msk.f32.mxu1 %vm326_vm0, %v4148_v27 }
 0x446   : > { %v3000_v15 = vpop.permute.xlu1 %2999  ;;  %v3956_v53 = vpop.permute.xlu0 %3955 }
 0x447   : > { %3084 = vst.msk [vmem:[#allocation3 + $0xb0] sm:$0xff] %vm1049_vm5, %v3000_v15 }
 0x448   : > { %4042 = vst.msk [vmem:[#allocation3 + $0x90] sm:$0xff] %vm2015_vm10, %v3956_v53  ;;  %3401 = vrot.lane.b32.xlu1 %v3891_v3, %s4857_s22 }
 0x449   : > { %3783 = vrot.lane.b32.xlu0 %v7465_v33, %s4859_s24 }
 0x44a   : > { %v3192_v40 = vpop.permute.xlu1 %3191  ;;  %v3574_v6 = vpop.permute.xlu0 %3573 }
 0x44b   : > { %3276 = vst.msk [vmem:[#allocation3 + $0xb0] sm:$0xff] %vm1242_vm6, %v3192_v40  ;;  %v3897_v40 = vld [vmem:[#allocation2 + $0x1c8] sm:$0xff] }
 0x44c   : > { %3659 = vst.msk [vmem:[#allocation3 + $0xa0] sm:$0xff] %vm1628_vm8, %v3574_v6  ;;  %3019 = vrot.lane.b32.xlu1 %v7464_v42, %s4855_s16  ;;  %v4158_v42 = vld [vmem:[#allocation3 + $0xe8] sm:$0xff] }
 0x44d   : > { %3975 = vrot.lane.b32.xlu0 %v3892_v57, %s4860_s25 }
 0x44e   : > { %v3384_v28 = vpop.permute.xlu1 %3383  ;;  %v3766_v14 = vpop.permute.xlu0 %3765 }
 0x44f   : > { %v4147_v36 = vld [vmem:[#allocation3 + $0x90] sm:$0xff]  ;;  %3468 = vst.msk [vmem:[#allocation3 + $0xb0] sm:$0xff] %vm1435_vm7, %v3384_v28  ;;  %v4160_v28 = vld [vmem:[#allocation3 + $0xf8] sm:$0xff] }
 0x450   : > { %3851 = vst.msk [vmem:[#allocation3 + $0xa0] sm:$0xff] %vm1822_vm9, %v3766_v14  ;;  %4417 = vmatmul.mubr.f32.gmra.mxu1 %v4147_v36  ;;  %3211 = vrot.lane.b32.xlu1 %v7465_v33, %s4856_s17  ;;  %v7471_v14 = vld [vmem:[#allocation12_spill] sm:$0xff] }
 0x451   : > { %3593 = vrot.lane.b32.xlu0 %v7466_v18, %s4858_s23  ;;  %4796 = vmatprep.mubr.msk.f32.mxu1 %vm326_vm0, %v4150_v35 }
 0x452   : > { %v3002_v16 = vpop.permute.xlu1 %3001  ;;  %v3958_v49 = vpop.permute.xlu0 %3957 }
 0x453   : > { %3085 = vst.msk [vmem:[#allocation3 + $0xc0] sm:$0xff] %vm1049_vm5, %v3002_v16  ;;  %v7041_v16 = vld [vmem:[#allocation2 + $0x1d0] sm:$0xff] }
 0x454   : > { %4043 = vst.msk [vmem:[#allocation3 + $0xa0] sm:$0xff] %vm2015_vm10, %v3958_v49  ;;  %3403 = vrot.lane.b32.xlu1 %v3892_v57, %s4857_s22 }
 0x455   : > { %3785 = vrot.lane.b32.xlu0 %v7467_v0, %s4859_s24 }
 0x456   : > { %v3194_v56 = vpop.permute.xlu1 %3193 }
 0x457   : > { %v3576_v63 = vpop.permute.xlu0 %3575  ;;  %3277 = vst.msk [vmem:[#allocation3 + $0xc0] sm:$0xff] %vm1242_vm6, %v3194_v56  ;;  %v4162_v56 = vld [vmem:[#allocation3 + $0x108] sm:$0xff] }
 0x458   : > { %3660 = vst.msk [vmem:[#allocation3 + $0xb0] sm:$0xff] %vm1628_vm8, %v3576_v63  ;;  %3021 = vrot.lane.b32.xlu1 %v7466_v18, %s4855_s16 }
 0x459   : > { %3977 = vrot.lane.b32.xlu0 %v3893_v37, %s4860_s25 }
 0x45a   : > { %v3386_v47 = vpop.permute.xlu1 %3385 }
 0x45b   : > { %v3768_v26 = vpop.permute.xlu0 %3767  ;;  %v4149_v59 = vld [vmem:[#allocation3 + $0xa0] sm:$0xff]  ;;  %3469 = vst.msk [vmem:[#allocation3 + $0xc0] sm:$0xff] %vm1435_vm7, %v3386_v47  ;;  %v7057_v47 = vld [vmem:[#allocation2 + $0x1e8] sm:$0xff] }
 0x45c   : > { %3852 = vst.msk [vmem:[#allocation3 + $0xb0] sm:$0xff] %vm1822_vm9, %v3768_v26  ;;  %4422 = vmatmul.mubr.f32.gmra.mxu1 %v4149_v59  ;;  %3213 = vrot.lane.b32.xlu1 %v7467_v0, %s4856_s17 }
 0x45d   : > { %3595 = vrot.lane.b32.xlu0 %v7468_v62, %s4858_s23  ;;  %4797 = vmatprep.mubr.msk.f32.mxu1 %vm326_vm0, %v4152_v29 }
 0x45e   : > { %v3004_v44 = vpop.permute.xlu1 %3003 }
 0x45f   : > { %v3960_v46 = vpop.permute.xlu0 %3959  ;;  %3086 = vst.msk [vmem:[#allocation3 + $0xd0] sm:$0xff] %vm1049_vm5, %v3004_v44 }
 0x460   : > { %4044 = vst.msk [vmem:[#allocation3 + $0xb0] sm:$0xff] %vm2015_vm10, %v3960_v46  ;;  %3405 = vrot.lane.b32.xlu1 %v3893_v37, %s4857_s22 }
 0x461   : > { %3787 = vrot.lane.b32.xlu0 %v7469_v45, %s4859_s24 }
 0x462   : > { %v3196_v25 = vpop.permute.xlu1 %3195 }
 0x463   : > { %v3578_v2 = vpop.permute.xlu0 %3577  ;;  %3278 = vst.msk [vmem:[#allocation3 + $0xd0] sm:$0xff] %vm1242_vm6, %v3196_v25  ;;  %v4164_v25 = vld [vmem:[#allocation3 + $0x118] sm:$0xff] }
 0x464   : > { %3661 = vst.msk [vmem:[#allocation3 + $0xc0] sm:$0xff] %vm1628_vm8, %v3578_v2  ;;  %3023 = vrot.lane.b32.xlu1 %v7468_v62, %s4855_s16  ;;  %v7069_v62 = vld [vmem:[%s7375_s6] ss:$0 sm:$0xff] }
 0x465   : > { %3979 = vrot.lane.b32.xlu0 %v3894_v52, %s4860_s25 }
 0x466   : > { %v3388_v60 = vpop.permute.xlu1 %3387 }
 0x467   : > { %v3770_v11 = vpop.permute.xlu0 %3769  ;;  %v4151_v17 = vld [vmem:[#allocation3 + $0xb0] sm:$0xff]  ;;  %3470 = vst.msk [vmem:[#allocation3 + $0xd0] sm:$0xff] %vm1435_vm7, %v3388_v60 }
 0x468   : > { %3853 = vst.msk [vmem:[#allocation3 + $0xc0] sm:$0xff] %vm1822_vm9, %v3770_v11  ;;  %4427 = vmatmul.mubr.f32.gmra.mxu1 %v4151_v17  ;;  %3215 = vrot.lane.b32.xlu1 %v7469_v45, %s4856_s17 }
 0x469   : > { %3597 = vrot.lane.b32.xlu0 %v6500_v48, %s4858_s23  ;;  %4798 = vmatprep.mubr.msk.f32.mxu1 %vm326_vm0, %v4154_v1 }
 0x46a   : > { %v3006_v7 = vpop.permute.xlu1 %3005 }
 0x46b   : > { %v3962_v43 = vpop.permute.xlu0 %3961  ;;  %3087 = vst.msk [vmem:[#allocation3 + $0xe0] sm:$0xff] %vm1049_vm5, %v3006_v7 }
 0x46c   : > { %4045 = vst.msk [vmem:[#allocation3 + $0xc0] sm:$0xff] %vm2015_vm10, %v3962_v43  ;;  %3407 = vrot.lane.b32.xlu1 %v3894_v52, %s4857_s22 }
 0x46d   : > { %3789 = vrot.lane.b32.xlu0 %v6521_v24, %s4859_s24 }
 0x46e   : > { %v3198_v54 = vpop.permute.xlu1 %3197 }
 0x46f   : > { %v3580_v12 = vpop.permute.xlu0 %3579  ;;  %3279 = vst.msk [vmem:[#allocation3 + $0xe0] sm:$0xff] %vm1242_vm6, %v3198_v54 }
 0x470   : > { %3662 = vst.msk [vmem:[#allocation3 + $0xd0] sm:$0xff] %vm1628_vm8, %v3580_v12  ;;  %3025 = vrot.lane.b32.xlu1 %v6500_v48, %s4855_s16 }
 0x471   : > { %3981 = vrot.lane.b32.xlu0 %v3895_v31, %s4860_s25 }
 0x472   : > { %v3390_v20 = vpop.permute.xlu1 %3389 }
 0x473   : > { %v3772_v22 = vpop.permute.xlu0 %3771  ;;  %v4153_v8 = vld [vmem:[#allocation3 + $0xc0] sm:$0xff]  ;;  %3471 = vst.msk [vmem:[#allocation3 + $0xe0] sm:$0xff] %vm1435_vm7, %v3390_v20  ;;  %v7107_v20 = vld [vmem:[#allocation2 + $0x1f0] sm:$0xff] }
 0x474   : > { %3854 = vst.msk [vmem:[#allocation3 + $0xd0] sm:$0xff] %vm1822_vm9, %v3772_v22  ;;  %4432 = vmatmul.mubr.f32.gmra.mxu1 %v4153_v8  ;;  %3217 = vrot.lane.b32.xlu1 %v6521_v24, %s4856_s17  ;;  %v3896_v24 = vld [vmem:[#allocation2 + $0x1b0] sm:$0xff] }
 0x475   : > { %3599 = vrot.lane.b32.xlu0 %v7470_v55, %s4858_s23  ;;  %4799 = vmatprep.mubr.msk.f32.mxu1 %vm326_vm0, %v4156_v30 }
 0x476   : > { %v3008_v48 = vpop.permute.xlu1 %3007 }
 0x477   : > { %v3964_v58 = vpop.permute.xlu0 %3963  ;;  %3088 = vst.msk [vmem:[#allocation3 + $0xf0] sm:$0xff] %vm1049_vm5, %v3008_v48 }
 0x478   : > { %4046 = vst.msk [vmem:[#allocation3 + $0xd0] sm:$0xff] %vm2015_vm10, %v3964_v58  ;;  %3409 = vrot.lane.b32.xlu1 %v3895_v31, %s4857_s22  ;;  %v4166_v31 = vld [vmem:[#allocation3 + $0x128] sm:$0xff] }
 0x479   : > { %3791 = vrot.lane.b32.xlu0 %v6551_v38, %s4859_s24 }
 0x47a   : > { %v3200_v61 = vpop.permute.xlu1 %3199 }
 0x47b   : > { %v3582_v3 = vpop.permute.xlu0 %3581  ;;  %3280 = vst.msk [vmem:[#allocation3 + $0xf0] sm:$0xff] %vm1242_vm6, %v3200_v61  ;;  %v3709_v61 = vld [vmem:[#allocation2 + $0x207] sm:$0xff] }
 0x47c   : > { %3663 = vst.msk [vmem:[#allocation3 + $0xe0] sm:$0xff] %vm1628_vm8, %v3582_v3  ;;  %3027 = vrot.lane.b32.xlu1 %v7470_v55, %s4855_s16 }
 0x47d   : > { %3983 = vrot.lane.b32.xlu0 %v3896_v24, %s4860_s25 }
 0x47e   : > { %v3392_v41 = vpop.permute.xlu1 %3391 }
 0x47f   : > { %v3774_v21 = vpop.permute.xlu0 %3773  ;;  %v4155_v13 = vld [vmem:[#allocation3 + $0xd0] sm:$0xff]  ;;  %3472 = vst.msk [vmem:[#allocation3 + $0xf0] sm:$0xff] %vm1435_vm7, %v3392_v41  ;;  %v3901_v41 = vld [vmem:[#allocation2 + $0x208] sm:$0xff] }
 0x480   : > { %3855 = vst.msk [vmem:[#allocation3 + $0xe0] sm:$0xff] %vm1822_vm9, %v3774_v21  ;;  %4437 = vmatmul.mubr.f32.gmra.mxu1 %v4155_v13  ;;  %3219 = vrot.lane.b32.xlu1 %v6551_v38, %s4856_s17 }
 0x481   : > { %4800 = vmatprep.mubr.msk.f32.mxu1 %vm326_vm0, %v4158_v42  ;;  %3601 = vrot.lane.b32.xlu0 %v6557_v9, %s4858_s23 }
 0x482   : > { %v3010_v27 = vpop.permute.xlu1 %3009 }
 0x483   : > { %v3966_v15 = vpop.permute.xlu0 %3965  ;;  %3089 = vst.msk [vmem:[#allocation3 + $0x100] sm:$0xff] %vm1049_vm5, %v3010_v27 }
 0x484   : > { %4047 = vst.msk [vmem:[#allocation3 + $0xe0] sm:$0xff] %vm2015_vm10, %v3966_v15  ;;  %3411 = vrot.lane.b32.xlu1 %v3896_v24, %s4857_s22  ;;  %v4168_v15 = vld [vmem:[#allocation3 + $0x138] sm:$0xff] }
 0x485   : > { %3793 = vrot.lane.b32.xlu0 %v6583_v10, %s4859_s24 }
 0x486   : > { %v3202_v53 = vpop.permute.xlu1 %3201 }
 0x487   : > { %v3584_v33 = vpop.permute.xlu0 %3583  ;;  %3281 = vst.msk [vmem:[#allocation3 + $0x100] sm:$0xff] %vm1242_vm6, %v3202_v53 }
 0x488   : > { %3664 = vst.msk [vmem:[#allocation3 + $0xf0] sm:$0xff] %vm1628_vm8, %v3584_v33  ;;  %3029 = vrot.lane.b32.xlu1 %v6557_v9, %s4855_s16 }
 0x489   : > { %3985 = vrot.lane.b32.xlu0 %v3897_v40, %s4860_s25 }
 0x48a   : > { %v3394_v38 = vpop.permute.xlu1 %3393 }
 0x48b   : > { %v3776_v6 = vpop.permute.xlu0 %3775  ;;  %v4157_v57 = vld [vmem:[#allocation3 + $0xe0] sm:$0xff]  ;;  %3473 = vst.msk [vmem:[#allocation3 + $0x100] sm:$0xff] %vm1435_vm7, %v3394_v38 }
 0x48c   : > { %3856 = vst.msk [vmem:[#allocation3 + $0xf0] sm:$0xff] %vm1822_vm9, %v3776_v6  ;;  %4442 = vmatmul.mubr.f32.gmra.mxu1 %v4157_v57  ;;  %3221 = vrot.lane.b32.xlu1 %v6583_v10, %s4856_s17 }
 0x48d   : > { %4801 = vmatprep.mubr.msk.f32.mxu1 %vm326_vm0, %v4160_v28  ;;  %3603 = vrot.lane.b32.xlu0 %v7471_v14, %s4858_s23 }
 0x48e   : > { %v3012_v36 = vpop.permute.xlu1 %3011 }
 0x48f   : > { %v3968_v18 = vpop.permute.xlu0 %3967  ;;  %3090 = vst.msk [vmem:[#allocation3 + $0x110] sm:$0xff] %vm1049_vm5, %v3012_v36 }
 0x490   : > { %4048 = vst.msk [vmem:[#allocation3 + $0xf0] sm:$0xff] %vm2015_vm10, %v3968_v18  ;;  %3413 = vrot.lane.b32.xlu1 %v3897_v40, %s4857_s22  ;;  %v4170_v18 = vld [vmem:[#allocation3 + $0x148] sm:$0xff] }
 0x491   : > { %3795 = vrot.lane.b32.xlu0 %v6597_v39, %s4859_s24 }
 0x492   : > { %v3204_v9 = vpop.permute.xlu1 %3203 }
 0x493   : > { %v3586_v35 = vpop.permute.xlu0 %3585  ;;  %3282 = vst.msk [vmem:[#allocation3 + $0x110] sm:$0xff] %vm1242_vm6, %v3204_v9  ;;  %v3710_v9 = vld [vmem:[#allocation2 + $0x20f] sm:$0xff] }
 0x494   : > { %3665 = vst.msk [vmem:[#allocation3 + $0x100] sm:$0xff] %vm1628_vm8, %v3586_v35  ;;  %3605 = vrot.lane.b32.xlu1 %v6599_v4, %s4858_s23 }
 0x495   : > { %3987 = vrot.lane.b32.xlu0 %v7041_v16, %s4860_s25 }
 0x496   : > { %v3396_v10 = vpop.permute.xlu1 %3395 }
 0x497   : > { %v3778_v49 = vpop.permute.xlu0 %3777  ;;  %v4159_v0 = vld [vmem:[#allocation3 + $0xf0] sm:$0xff]  ;;  %3474 = vst.msk [vmem:[#allocation3 + $0x110] sm:$0xff] %vm1435_vm7, %v3396_v10 }
 0x498   : > { %3857 = vst.msk [vmem:[#allocation3 + $0x100] sm:$0xff] %vm1822_vm9, %v3778_v49  ;;  %4447 = vmatmul.mubr.f32.gmra.mxu1 %v4159_v0  ;;  %3797 = vrot.lane.b32.xlu1 %v6621_v50, %s4859_s24 }
 0x499   : > { %4802 = vmatprep.mubr.msk.f32.mxu1 %vm326_vm0, %v4162_v56  ;;  %2839 = vrot.lane.b32.xlu0 %v3896_v24, %s4854_s15  ;;  %v3902_v56 = vld [vmem:[#allocation2 + $0x210] sm:$0xff] }
 0x49a   : > { %v3014_v63 = vpop.permute.xlu1 %3013 }
 0x49b   : > { %v3970_v37 = vpop.permute.xlu0 %3969  ;;  %3091 = vst.msk [vmem:[#allocation3 + $0x120] sm:$0xff] %vm1049_vm5, %v3014_v63 }
 0x49c   : > { %4049 = vst.msk [vmem:[#allocation3 + $0x100] sm:$0xff] %vm2015_vm10, %v3970_v37  ;;  %3989 = vrot.lane.b32.xlu1 %v7057_v47, %s4860_s25 }
 0x49d   : > { %3031 = vrot.lane.b32.xlu0 %v7471_v14, %s4855_s16 }
 0x49e   : > { %v3206_v26 = vpop.permute.xlu1 %3205 }
 0x49f   : > { %v3588_v59 = vpop.permute.xlu0 %3587  ;;  %3283 = vst.msk [vmem:[#allocation3 + $0x120] sm:$0xff] %vm1242_vm6, %v3206_v26  ;;  %v3711_v26 = vld [vmem:[#allocation2 + $0x227] sm:$0xff] }
 0x4a0   : > { %3666 = vst.msk [vmem:[#allocation3 + $0x110] sm:$0xff] %vm1628_vm8, %v3588_v59  ;;  %2841 = vrot.lane.b32.xlu1 %v3897_v40, %s4854_s15 }
 0x4a1   : > { %3223 = vrot.lane.b32.xlu0 %v6597_v39, %s4856_s17  ;;  %v7076_v39 = vld [vmem:[%s7376_s7] ss:$0 sm:$0xff] }
 0x4a2   : > { %v3398_v29 = vpop.permute.xlu1 %3397 }
 0x4a3   : > { %v3780_v44 = vpop.permute.xlu0 %3779  ;;  %v4161_v46 = vld [vmem:[#allocation3 + $0x100] sm:$0xff]  ;;  %3475 = vst.msk [vmem:[#allocation3 + $0x120] sm:$0xff] %vm1435_vm7, %v3398_v29 }
 0x4a4   : > { %3858 = vst.msk [vmem:[#allocation3 + $0x110] sm:$0xff] %vm1822_vm9, %v3780_v44  ;;  %v4373_v45 = vpop.f32.mrf.mxu1  ;;  %4452 = vmatmul.mubr.f32.gmra.mxu1 %v4161_v46  ;;  %3033 = vrot.lane.b32.xlu1 %v6599_v4, %s4855_s16  ;;  %v3903_v46 = vld [vmem:[#allocation2 + $0x228] sm:$0xff] }
 0x4a5   : > { %v4539_v2 = vmul.f32 %v7069_v62, %v4373_v45  ;;  %4803 = vmatprep.mubr.msk.f32.mxu1 %vm326_vm0, %v4164_v25  ;;  %3415 = vrot.lane.b32.xlu0 %v7041_v16, %s4857_s22  ;;  %v4172_v45 = vld [vmem:[#allocation3 + $0x158] sm:$0xff] }
 0x4a6   : > { %v4375_v52 = vpop.f32.mrf.mxu1  ;;  %v3016_v11 = vpop.permute.xlu1 %3015 }
 0x4a7   : > { %v4578_v60 = vadd.f32 %v7076_v39, %v4539_v2  ;;  %v3972_v17 = vpop.permute.xlu0 %3971  ;;  %3092 = vst.msk [vmem:[#allocation3 + $0x130] sm:$0xff] %vm1049_vm5, %v3016_v11 }
 0x4a8   : > { %4050 = vst.msk [vmem:[#allocation3 + $0x110] sm:$0xff] %vm2015_vm10, %v3972_v17  ;;  %3225 = vrot.lane.b32.xlu1 %v6621_v50, %s4856_s17 }
 0x4a9   : > { %v4610_v1 = vmax.f32 %v4578_v60, 0.0  ;;  %3607 = vrot.lane.b32.xlu0 %v6607_v32, %s4858_s23 }
 0x4aa   : > { %v3208_v4 = vpop.permute.xlu1 %3207 }
 0x4ab   : > { %4642 = vst.msk [vmem:[%s7089_s20] sm:$0xff] %vm326_vm0, %v4610_v1  ;;  %v3590_v7 = vpop.permute.xlu0 %3589 }
 0x4ac   : > { %3284 = vst.msk [vmem:[#allocation3 + $0x130] sm:$0xff] %vm1242_vm6, %v3208_v4  ;;  %3417 = vrot.lane.b32.xlu1 %v7057_v47, %s4857_s22  ;;  %v3904_v4 = vld [vmem:[#allocation2 + $0x230] sm:$0xff] }
 0x4ad   : > { %3667 = vst.msk [vmem:[#allocation3 + $0x120] sm:$0xff] %vm1628_vm8, %v3590_v7  ;;  %3799 = vrot.lane.b32.xlu0 %v6635_v34, %s4859_s24  ;;  %v3712_v7 = vld [vmem:[#allocation2 + $0x22f] sm:$0xff] }
 0x4ae   : > { %v3400_v43 = vpop.permute.xlu1 %3399 }
 0x4af   : > { %v3782_v54 = vpop.permute.xlu0 %3781  ;;  %v4163_v12 = vld [vmem:[#allocation3 + $0x110] sm:$0xff]  ;;  %3476 = vst.msk [vmem:[#allocation3 + $0x130] sm:$0xff] %vm1435_vm7, %v3400_v43 }
 0x4b0   : > { %3859 = vst.msk [vmem:[#allocation3 + $0x120] sm:$0xff] %vm1822_vm9, %v3782_v54  ;;  %v4378_v50 = vpop.f32.mrf.mxu1  ;;  %4457 = vmatmul.mubr.f32.gmra.mxu1 %v4163_v12  ;;  %3609 = vrot.lane.b32.xlu1 %v6637_v5, %s4858_s23 }
 0x4b1   : > { %v4540_v22 = vmul.f32 %v7069_v62, %v4378_v50  ;;  %4804 = vmatprep.mubr.msk.f32.mxu1 %vm326_vm0, %v4166_v31  ;;  %3991 = vrot.lane.b32.xlu0 %v7107_v20, %s4860_s25  ;;  %v4174_v50 = vld [vmem:[#allocation3 + $0x168] sm:$0xff] }
 0x4b2   : > { %v4380_v8 = vpop.f32.mrf.mxu1  ;;  %v3018_v30 = vpop.permute.xlu1 %3017 }
 0x4b3   : > { %v4579_v55 = vadd.f32 %v7076_v39, %v4540_v22  ;;  %v3974_v48 = vpop.permute.xlu0 %3973  ;;  %3093 = vst.msk [vmem:[#allocation3 + $0x140] sm:$0xff] %vm1049_vm5, %v3018_v30 }
 0x4b4   : > { %4051 = vst.msk [vmem:[#allocation3 + $0x120] sm:$0xff] %vm2015_vm10, %v3974_v48  ;;  %3801 = vrot.lane.b32.xlu1 %v3709_v61, %s4859_s24 }
 0x4b5   : > { %v4611_v58 = vmax.f32 %v4579_v55, 0.0  ;;  %2843 = vrot.lane.b32.xlu0 %v7041_v16, %s4854_s15 }
 0x4b6   : > { %v3210_v3 = vpop.permute.xlu1 %3209 }
 0x4b7   : > { %4643 = vst.msk [vmem:[%s7089_s20 + $0x8] sm:$0xff] %vm326_vm0, %v4611_v58  ;;  %v3592_v24 = vpop.permute.xlu0 %3591 }
 0x4b8   : > { %3285 = vst.msk [vmem:[#allocation3 + $0x140] sm:$0xff] %vm1242_vm6, %v3210_v3  ;;  %3993 = vrot.lane.b32.xlu1 %v3901_v41, %s4860_s25 }
 0x4b9   : > { %3668 = vst.msk [vmem:[#allocation3 + $0x130] sm:$0xff] %vm1628_vm8, %v3592_v24  ;;  %3035 = vrot.lane.b32.xlu0 %v6607_v32, %s4855_s16 }
 0x4ba   : > { %v3402_v21 = vpop.permute.xlu1 %3401 }
 0x4bb   : > { %v3784_v13 = vpop.permute.xlu0 %3783  ;;  %v4165_v42 = vld [vmem:[#allocation3 + $0x120] sm:$0xff]  ;;  %3477 = vst.msk [vmem:[#allocation3 + $0x140] sm:$0xff] %vm1435_vm7, %v3402_v21  ;;  %v4176_v21 = vld [vmem:[#allocation3 + $0x178] sm:$0xff] }
 0x4bc   : > { %3860 = vst.msk [vmem:[#allocation3 + $0x130] sm:$0xff] %vm1822_vm9, %v3784_v13  ;;  %v4383_v27 = vpop.f32.mrf.mxu1  ;;  %4462 = vmatmul.mubr.f32.gmra.mxu1 %v4165_v42  ;;  %2845 = vrot.lane.b32.xlu1 %v7057_v47, %s4854_s15 }
 0x4bd   : > { %v4541_v53 = vmul.f32 %v7069_v62, %v4383_v27  ;;  %4805 = vmatprep.mubr.msk.f32.mxu1 %vm326_vm0, %v4168_v15  ;;  %3227 = vrot.lane.b32.xlu0 %v6635_v34, %s4856_s17 }
 0x4be   : > { %v4385_v32 = vpop.f32.mrf.mxu1  ;;  %v3020_v40 = vpop.permute.xlu1 %3019 }
 0x4bf   : > { %v4580_v33 = vadd.f32 %v7076_v39, %v4541_v53  ;;  %v3976_v38 = vpop.permute.xlu0 %3975  ;;  %3094 = vst.msk [vmem:[#allocation3 + $0x150] sm:$0xff] %vm1049_vm5, %v3020_v40 }
 0x4c0   : > { %4052 = vst.msk [vmem:[#allocation3 + $0x130] sm:$0xff] %vm2015_vm10, %v3976_v38  ;;  %3037 = vrot.lane.b32.xlu1 %v6637_v5, %s4855_s16 }
 0x4c1   : > { %v4612_v6 = vmax.f32 %v4580_v33, 0.0  ;;  %3419 = vrot.lane.b32.xlu0 %v7107_v20, %s4857_s22 }
 0x4c2   : > { %v3212_v34 = vpop.permute.xlu1 %3211 }
 0x4c3   : > { %4644 = vst.msk [vmem:[%s7089_s20 + $0x10] sm:$0xff] %vm326_vm0, %v4612_v6  ;;  %v3594_v57 = vpop.permute.xlu0 %3593 }
 0x4c4   : > { %3286 = vst.msk [vmem:[#allocation3 + $0x150] sm:$0xff] %vm1242_vm6, %v3212_v34  ;;  %3229 = vrot.lane.b32.xlu1 %v3709_v61, %s4856_s17 }
 0x4c5   : > { %3669 = vst.msk [vmem:[#allocation3 + $0x140] sm:$0xff] %vm1628_vm8, %v3594_v57  ;;  %3611 = vrot.lane.b32.xlu0 %v6643_v19, %s4858_s23 }
 0x4c6   : > { %v3404_v28 = vpop.permute.xlu1 %3403 }
 0x4c7   : > { %v3786_v14 = vpop.permute.xlu0 %3785  ;;  %v4167_v36 = vld [vmem:[#allocation3 + $0x130] sm:$0xff]  ;;  %3478 = vst.msk [vmem:[#allocation3 + $0x150] sm:$0xff] %vm1435_vm7, %v3404_v28  ;;  %v4178_v28 = vld [vmem:[#allocation3 + $0x188] sm:$0xff] }
 0x4c8   : > { %3861 = vst.msk [vmem:[#allocation3 + $0x140] sm:$0xff] %vm1822_vm9, %v3786_v14  ;;  %v4388_v5 = vpop.f32.mrf.mxu1  ;;  %4467 = vmatmul.mubr.f32.gmra.mxu1 %v4167_v36  ;;  %3421 = vrot.lane.b32.xlu1 %v3901_v41, %s4857_s22 }
 0x4c9   : > { %v4542_v35 = vmul.f32 %v7069_v62, %v4388_v5  ;;  %4806 = vmatprep.mubr.msk.f32.mxu1 %vm326_vm0, %v4170_v18  ;;  %3803 = vrot.lane.b32.xlu0 %v3710_v9, %s4859_s24 }
 0x4ca   : > { %v4390_v16 = vpop.f32.mrf.mxu1  ;;  %v3022_v49 = vpop.permute.xlu1 %3021 }
 0x4cb   : > { %v4581_v10 = vadd.f32 %v7076_v39, %v4542_v35  ;;  %v3978_v0 = vpop.permute.xlu0 %3977  ;;  %3095 = vst.msk [vmem:[#allocation3 + $0x160] sm:$0xff] %vm1049_vm5, %v3022_v49 }
 0x4cc   : > { %4053 = vst.msk [vmem:[#allocation3 + $0x140] sm:$0xff] %vm2015_vm10, %v3978_v0  ;;  %3613 = vrot.lane.b32.xlu1 %v6792_v51, %s4858_s23 }
 0x4cd   : > { %v4613_v63 = vmax.f32 %v4581_v10, 0.0  ;;  %3995 = vrot.lane.b32.xlu0 %v3902_v56, %s4860_s25 }
 0x4ce   : > { %v3214_v37 = vpop.permute.xlu1 %3213 }
 0x4cf   : > { %4645 = vst.msk [vmem:[%s7089_s20 + $0x18] sm:$0xff] %vm326_vm0, %v4613_v63  ;;  %v3596_v47 = vpop.permute.xlu0 %3595 }
 0x4d0   : > { %3287 = vst.msk [vmem:[#allocation3 + $0x160] sm:$0xff] %vm1242_vm6, %v3214_v37  ;;  %3805 = vrot.lane.b32.xlu1 %v3711_v26, %s4859_s24  ;;  %v4180_v37 = vld [vmem:[#allocation3 + $0x198] sm:$0xff] }
 0x4d1   : > { %3670 = vst.msk [vmem:[#allocation3 + $0x150] sm:$0xff] %vm1628_vm8, %v3596_v47  ;;  %2847 = vrot.lane.b32.xlu0 %v7107_v20, %s4854_s15 }
 0x4d2   : > { %v3406_v59 = vpop.permute.xlu1 %3405 }
 0x4d3   : > { %v3788_v29 = vpop.permute.xlu0 %3787  ;;  %v4169_v44 = vld [vmem:[#allocation3 + $0x140] sm:$0xff]  ;;  %3479 = vst.msk [vmem:[#allocation3 + $0x160] sm:$0xff] %vm1435_vm7, %v3406_v59 }
 0x4d4   : > { %3862 = vst.msk [vmem:[#allocation3 + $0x150] sm:$0xff] %vm1822_vm9, %v3788_v29  ;;  %v4393_v51 = vpop.f32.mrf.mxu1  ;;  %4472 = vmatmul.mubr.f32.gmra.mxu1 %v4169_v44  ;;  %3997 = vrot.lane.b32.xlu1 %v3903_v46, %s4860_s25 }
 0x4d5   : > { %v4543_v25 = vmul.f32 %v7069_v62, %v4393_v51  ;;  %4807 = vmatprep.mubr.msk.f32.mxu1 %vm326_vm0, %v4172_v45  ;;  %3039 = vrot.lane.b32.xlu0 %v6643_v19, %s4855_s16 }
 0x4d6   : > { %v4395_v2 = vpop.f32.mrf.mxu1  ;;  %v3024_v60 = vpop.permute.xlu1 %3023 }
 0x4d7   : > { %v4582_v52 = vadd.f32 %v7076_v39, %v4543_v25  ;;  %v3980_v11 = vpop.permute.xlu0 %3979  ;;  %3096 = vst.msk [vmem:[#allocation3 + $0x170] sm:$0xff] %vm1049_vm5, %v3024_v60 }
 0x4d8   : > { %4054 = vst.msk [vmem:[#allocation3 + $0x150] sm:$0xff] %vm2015_vm10, %v3980_v11  ;;  %3615 = vrot.lane.b32.xlu1 %v6807_v23, %s4858_s23  ;;  %v4182_v11 = vld [vmem:[#allocation3 + $0x1a8] sm:$0xff] }
 0x4d9   : > { %v4614_v17 = vmax.f32 %v4582_v52, 0.0  ;;  %3231 = vrot.lane.b32.xlu0 %v3710_v9, %s4856_s17 }
 0x4da   : > { %v3216_v19 = vpop.permute.xlu1 %3215 }
 0x4db   : > { %4646 = vst.msk [vmem:[%s7089_s20 + $0x20] sm:$0xff] %vm326_vm0, %v4614_v17  ;;  %v3598_v1 = vpop.permute.xlu0 %3597 }
 0x4dc   : > { %3288 = vst.msk [vmem:[#allocation3 + $0x170] sm:$0xff] %vm1242_vm6, %v3216_v19  ;;  %3999 = vrot.lane.b32.xlu1 %v3904_v4, %s4860_s25 }
 0x4dd   : > { %3671 = vst.msk [vmem:[#allocation3 + $0x160] sm:$0xff] %vm1628_vm8, %v3598_v1  ;;  %3423 = vrot.lane.b32.xlu0 %v3902_v56, %s4857_s22 }
 0x4de   : > { %v3408_v43 = vpop.permute.xlu1 %3407 }
 0x4df   : > { %v3790_v54 = vpop.permute.xlu0 %3789  ;;  %v4171_v12 = vld [vmem:[#allocation3 + $0x150] sm:$0xff]  ;;  %3480 = vst.msk [vmem:[#allocation3 + $0x170] sm:$0xff] %vm1435_vm7, %v3408_v43 }
 0x4e0   : > { %3863 = vst.msk [vmem:[#allocation3 + $0x160] sm:$0xff] %vm1822_vm9, %v3790_v54  ;;  %v4398_v23 = vpop.f32.mrf.mxu1  ;;  %4477 = vmatmul.mubr.f32.gmra.mxu1 %v4171_v12 }
 0x4e1   : > { %v4544_v31 = vmul.f32 %v7069_v62, %v4398_v23  ;;  %4808 = vmatprep.mubr.msk.f32.mxu1 %vm326_vm0, %v4174_v50  ;;  %3807 = vrot.lane.b32.xlu0 %v3712_v7, %s4859_s24  ;;  %v4184_v50 = vld [vmem:[#allocation3 + $0x1b8] sm:$0xff] }
 0x4e2   : > { %v4400_v20 = vpop.f32.mrf.mxu1  ;;  %v3026_v8 = vpop.permute.xlu1 %3025 }
 0x4e3   : > { %v4583_v22 = vadd.f32 %v7076_v39, %v4544_v31  ;;  %v3982_v55 = vpop.permute.xlu0 %3981  ;;  %3097 = vst.msk [vmem:[#allocation3 + $0x180] sm:$0xff] %vm1049_vm5, %v3026_v8 }
 0x4e4   : > { %4055 = vst.msk [vmem:[#allocation3 + $0x160] sm:$0xff] %vm2015_vm10, %v3982_v55 }
 0x4e5   : > { %v4615_v30 = vmax.f32 %v4583_v22, 0.0 }
 0x4e6   : > { %v3218_v48 = vpop.permute.xlu1 %3217 }
 0x4e7   : > { %4647 = vst.msk [vmem:[%s7089_s20 + $0x28] sm:$0xff] %vm326_vm0, %v4615_v30  ;;  %v3600_v58 = vpop.permute.xlu0 %3599 }
 0x4e8   : > { %3289 = vst.msk [vmem:[#allocation3 + $0x180] sm:$0xff] %vm1242_vm6, %v3218_v48 }
 0x4e9   : > { %3672 = vst.msk [vmem:[#allocation3 + $0x170] sm:$0xff] %vm1628_vm8, %v3600_v58 }
 0x4ea   : > { %v3410_v61 = vpop.permute.xlu1 %3409 }
 0x4eb   : > { %v3792_v3 = vpop.permute.xlu0 %3791  ;;  %v4173_v24 = vld [vmem:[#allocation3 + $0x160] sm:$0xff]  ;;  %3481 = vst.msk [vmem:[#allocation3 + $0x180] sm:$0xff] %vm1435_vm7, %v3410_v61 }
 0x4ec   : > { %3864 = vst.msk [vmem:[#allocation3 + $0x170] sm:$0xff] %vm1822_vm9, %v3792_v3  ;;  %v4403_v41 = vpop.f32.mrf.mxu1  ;;  %4482 = vmatmul.mubr.f32.gmra.mxu1 %v4173_v24 }
 0x4ed   : > { %v4545_v13 = vmul.f32 %v7069_v62, %v4403_v41  ;;  %4809 = vmatprep.mubr.msk.f32.mxu1 %vm326_vm0, %v4176_v21 }
 0x4ee   : > { %v4405_v42 = vpop.f32.mrf.mxu1  ;;  %v3028_v15 = vpop.permute.xlu1 %3027 }
 0x4ef   : > { %v4584_v27 = vadd.f32 %v7076_v39, %v4545_v13  ;;  %v3984_v53 = vpop.permute.xlu0 %3983  ;;  %3098 = vst.msk [vmem:[#allocation3 + $0x190] sm:$0xff] %vm1049_vm5, %v3028_v15 }
 0x4f0   : > { %4056 = vst.msk [vmem:[#allocation3 + $0x170] sm:$0xff] %vm2015_vm10, %v3984_v53 }
 0x4f1   : > { %v4616_v32 = vmax.f32 %v4584_v27, 0.0 }
 0x4f2   : > { %v3220_v40 = vpop.permute.xlu1 %3219 }
 0x4f3   : > { %4648 = vst.msk [vmem:[%s7089_s20 + $0x30] sm:$0xff] %vm326_vm0, %v4616_v32  ;;  %v3602_v33 = vpop.permute.xlu0 %3601 }
 0x4f4   : > { %3673 = vst.msk [vmem:[#allocation3 + $0x180] sm:$0xff] %vm1628_vm8, %v3602_v33 }
 0x4f5   : > { %3290 = vst.msk [vmem:[#allocation3 + $0x190] sm:$0xff] %vm1242_vm6, %v3220_v40  ;;  %v4186_v40 = vld [vmem:[#allocation3 + $0x1c8] sm:$0xff] }
 0x4f6   : > { %v3412_v34 = vpop.permute.xlu1 %3411 }
 0x4f7   : > { %v3794_v38 = vpop.permute.xlu0 %3793  ;;  %v4175_v6 = vld [vmem:[#allocation3 + $0x170] sm:$0xff]  ;;  %3482 = vst.msk [vmem:[#allocation3 + $0x190] sm:$0xff] %vm1435_vm7, %v3412_v34 }
 0x4f8   : > { %3865 = vst.msk [vmem:[#allocation3 + $0x180] sm:$0xff] %vm1822_vm9, %v3794_v38  ;;  %v4408_v57 = vpop.f32.mrf.mxu1  ;;  %4487 = vmatmul.mubr.f32.gmra.mxu1 %v4175_v6 }
 0x4f9   : > { %v4546_v14 = vmul.f32 %v7069_v62, %v4408_v57  ;;  %4810 = vmatprep.mubr.msk.f32.mxu1 %vm326_vm0, %v4178_v28 }
 0x4fa   : > { %v4410_v36 = vpop.f32.mrf.mxu1  ;;  %v3030_v9 = vpop.permute.xlu1 %3029 }
 0x4fb   : > { %v4585_v5 = vadd.f32 %v7076_v39, %v4546_v14  ;;  %v3986_v18 = vpop.permute.xlu0 %3985  ;;  %3099 = vst.msk [vmem:[#allocation3 + $0x1a0] sm:$0xff] %vm1049_vm5, %v3030_v9 }
 0x4fc   : > { %4057 = vst.msk [vmem:[#allocation3 + $0x180] sm:$0xff] %vm2015_vm10, %v3986_v18  ;;  %v4188_v18 = vld [vmem:[#allocation3 + $0x1d8] sm:$0xff] }
 0x4fd   : > { %v4617_v35 = vmax.f32 %v4585_v5, 0.0 }
 0x4fe   : > { %v3222_v10 = vpop.permute.xlu1 %3221 }
 0x4ff   : > { %4649 = vst.msk [vmem:[%s7089_s20 + $0x38] sm:$0xff] %vm326_vm0, %v4617_v35  ;;  %v3604_v16 = vpop.permute.xlu0 %3603 }
 0x500   : > { %3674 = vst.msk [vmem:[#allocation3 + $0x190] sm:$0xff] %vm1628_vm8, %v3604_v16 }
 0x501   : > { %3291 = vst.msk [vmem:[#allocation3 + $0x1a0] sm:$0xff] %vm1242_vm6, %v3222_v10 }
 0x502   : > { %v3414_v56 = vpop.permute.xlu1 %3413 }
 0x503   : > { %v3796_v49 = vpop.permute.xlu0 %3795  ;;  %v4177_v0 = vld [vmem:[#allocation3 + $0x180] sm:$0xff]  ;;  %3483 = vst.msk [vmem:[#allocation3 + $0x1a0] sm:$0xff] %vm1435_vm7, %v3414_v56 }
 0x504   : > { %3866 = vst.msk [vmem:[#allocation3 + $0x190] sm:$0xff] %vm1822_vm9, %v3796_v49  ;;  %v4413_v63 = vpop.f32.mrf.mxu1  ;;  %4492 = vmatmul.mubr.f32.gmra.mxu1 %v4177_v0 }
 0x505   : > { %v4547_v47 = vmul.f32 %v7069_v62, %v4413_v63  ;;  %4811 = vmatprep.mubr.msk.f32.mxu1 %vm326_vm0, %v4180_v37 }
 0x506   : > { %v4415_v26 = vpop.f32.mrf.mxu1  ;;  %v3606_v44 = vpop.permute.xlu1 %3605 }
 0x507   : > { %v4586_v59 = vadd.f32 %v7076_v39, %v4547_v47  ;;  %v3988_v29 = vpop.permute.xlu0 %3987  ;;  %3675 = vst.msk [vmem:[#allocation3 + $0x1a0] sm:$0xff] %vm1628_vm8, %v3606_v44 }
 0x508   : > { %4058 = vst.msk [vmem:[#allocation3 + $0x190] sm:$0xff] %vm2015_vm10, %v3988_v29 }
 0x509   : > { %v4618_v46 = vmax.f32 %v4586_v59, 0.0 }
 0x50a   : > { %v3798_v45 = vpop.permute.xlu1 %3797 }
 0x50b   : > { %4650 = vst.msk [vmem:[%s7089_s20 + $0x40] sm:$0xff] %vm326_vm0, %v4618_v46  ;;  %v2840_v51 = vpop.permute.xlu0 %2839 }
 0x50c   : > { %2908 = vst.msk [vmem:[#allocation3 + $0x1b0] sm:$0xff] %vm856_vm4, %v2840_v51 }
 0x50d   : > { %3867 = vst.msk [vmem:[#allocation3 + $0x1a0] sm:$0xff] %vm1822_vm9, %v3798_v45  ;;  %v4190_v45 = vld [vmem:[#allocation3 + $0x1e8] sm:$0xff] }
 0x50e   : > { %v3990_v52 = vpop.permute.xlu1 %3989 }
 0x50f   : > { %v3032_v25 = vpop.permute.xlu0 %3031  ;;  %v4179_v2 = vld [vmem:[#allocation3 + $0x190] sm:$0xff]  ;;  %4059 = vst.msk [vmem:[#allocation3 + $0x1a0] sm:$0xff] %vm2015_vm10, %v3990_v52 }
 0x510   : > { %3100 = vst.msk [vmem:[#allocation3 + $0x1b0] sm:$0xff] %vm1049_vm5, %v3032_v25  ;;  %v4418_v60 = vpop.f32.mrf.mxu1  ;;  %4497 = vmatmul.mubr.f32.gmra.mxu1 %v4179_v2 }
 0x511   : > { %v4548_v17 = vmul.f32 %v7069_v62, %v4418_v60  ;;  %4812 = vmatprep.mubr.msk.f32.mxu1 %vm326_vm0, %v4182_v11 }
 0x512   : > { %v4420_v19 = vpop.f32.mrf.mxu1  ;;  %v2842_v7 = vpop.permute.xlu1 %2841 }
 0x513   : > { %v4587_v1 = vadd.f32 %v7076_v39, %v4548_v17  ;;  %v3224_v4 = vpop.permute.xlu0 %3223  ;;  %2909 = vst.msk [vmem:[#allocation3 + $0x1c0] sm:$0xff] %vm856_vm4, %v2842_v7 }
 0x514   : > { %3292 = vst.msk [vmem:[#allocation3 + $0x1b0] sm:$0xff] %vm1242_vm6, %v3224_v4 }
 0x515   : > { %v4619_v43 = vmax.f32 %v4587_v1, 0.0 }
 0x516   : > { %v3034_v12 = vpop.permute.xlu1 %3033  ;;  %v4181_v23 = vld [vmem:[#allocation3 + $0x1a0] sm:$0xff] }
 0x517   : > { %4651 = vst.msk [vmem:[%s7089_s20 + $0x48] sm:$0xff] %vm326_vm0, %v4619_v43  ;;  %v3416_v54 = vpop.permute.xlu0 %3415  ;;  %4502 = vmatmul.mubr.f32.gmra.mxu1 %v4181_v23  ;;  %v4192_v43 = vld [vmem:[#allocation3 + $0x1f8] sm:$0xff] }
 0x518   : > { %3484 = vst.msk [vmem:[#allocation3 + $0x1b0] sm:$0xff] %vm1435_vm7, %v3416_v54  ;;  %4813 = vmatprep.mubr.msk.f32.mxu1 %vm326_vm0, %v4184_v50 }
 0x519   : > { %3101 = vst.msk [vmem:[#allocation3 + $0x1c0] sm:$0xff] %vm1049_vm5, %v3034_v12 }
 0x51a   : > { %v3226_v20 = vpop.permute.xlu1 %3225 }
 0x51b   : > { %v3608_v31 = vpop.permute.xlu0 %3607  ;;  %3293 = vst.msk [vmem:[#allocation3 + $0x1c0] sm:$0xff] %vm1242_vm6, %v3226_v20 }
 0x51c   : > { %3676 = vst.msk [vmem:[#allocation3 + $0x1b0] sm:$0xff] %vm1628_vm8, %v3608_v31  ;;  %v4423_v22 = vpop.f32.mrf.mxu1 }
 0x51d   : > { %v4549_v8 = vmul.f32 %v7069_v62, %v4423_v22 }
 0x51e   : > { %v4425_v55 = vpop.f32.mrf.mxu1  ;;  %v3418_v58 = vpop.permute.xlu1 %3417 }
 0x51f   : > { %v4588_v30 = vadd.f32 %v7076_v39, %v4549_v8  ;;  %v3800_v48 = vpop.permute.xlu0 %3799  ;;  %3485 = vst.msk [vmem:[#allocation3 + $0x1c0] sm:$0xff] %vm1435_vm7, %v3418_v58 }
 0x520   : > { %3868 = vst.msk [vmem:[#allocation3 + $0x1b0] sm:$0xff] %vm1822_vm9, %v3800_v48 }
 0x521   : > { %v4620_v61 = vmax.f32 %v4588_v30, 0.0 }
 0x522   : > { %v3610_v24 = vpop.permute.xlu1 %3609 }
 0x523   : > { %4652 = vst.msk [vmem:[%s7089_s20 + $0x50] sm:$0xff] %vm326_vm0, %v4620_v61  ;;  %v3992_v3 = vpop.permute.xlu0 %3991 }
 0x524   : > { %4060 = vst.msk [vmem:[#allocation3 + $0x1b0] sm:$0xff] %vm2015_vm10, %v3992_v3 }
 0x525   : > { %3677 = vst.msk [vmem:[#allocation3 + $0x1c0] sm:$0xff] %vm1628_vm8, %v3610_v24 }
 0x526   : > { %v3802_v21 = vpop.permute.xlu1 %3801 }
 0x527   : > { %v2844_v41 = vpop.permute.xlu0 %2843  ;;  %3869 = vst.msk [vmem:[#allocation3 + $0x1c0] sm:$0xff] %vm1822_vm9, %v3802_v21 }
 0x528   : > { %2910 = vst.msk [vmem:[#allocation3 + $0x1d0] sm:$0xff] %vm856_vm4, %v2844_v41  ;;  %v4428_v13 = vpop.f32.mrf.mxu1 }
 0x529   : > { %v4550_v42 = vmul.f32 %v7069_v62, %v4428_v13 }
 0x52a   : > { %v4430_v27 = vpop.f32.mrf.mxu1  ;;  %v3994_v33 = vpop.permute.xlu1 %3993 }
 0x52b   : > { %v4589_v15 = vadd.f32 %v7076_v39, %v4550_v42  ;;  %v3036_v53 = vpop.permute.xlu0 %3035  ;;  %v4183_v32 = vld [vmem:[#allocation3 + $0x1b0] sm:$0xff]  ;;  %4061 = vst.msk [vmem:[#allocation3 + $0x1c0] sm:$0xff] %vm2015_vm10, %v3994_v33 }
 0x52c   : > { %3102 = vst.msk [vmem:[#allocation3 + $0x1d0] sm:$0xff] %vm1049_vm5, %v3036_v53  ;;  %4507 = vmatmul.mubr.f32.gmra.mxu1 %v4183_v32 }
 0x52d   : > { %v4621_v38 = vmax.f32 %v4589_v15, 0.0  ;;  %4814 = vmatprep.mubr.msk.f32.mxu1 %vm326_vm0, %v4186_v40 }
 0x52e   : > { %v2846_v34 = vpop.permute.xlu1 %2845 }
 0x52f   : > { %4653 = vst.msk [vmem:[%s7089_s20 + $0x58] sm:$0xff] %vm326_vm0, %v4621_v38  ;;  %v3228_v6 = vpop.permute.xlu0 %3227 }
 0x530   : > { %3294 = vst.msk [vmem:[#allocation3 + $0x1d0] sm:$0xff] %vm1242_vm6, %v3228_v6 }
 0x531   : > { %2911 = vst.msk [vmem:[#allocation3 + $0x1e0] sm:$0xff] %vm856_vm4, %v2846_v34 }
 0x532   : > { %v3038_v28 = vpop.permute.xlu1 %3037  ;;  %v4185_v36 = vld [vmem:[#allocation3 + $0x1c0] sm:$0xff] }
 0x533   : > { %v3420_v57 = vpop.permute.xlu0 %3419  ;;  %3103 = vst.msk [vmem:[#allocation3 + $0x1e0] sm:$0xff] %vm1049_vm5, %v3038_v28  ;;  %4512 = vmatmul.mubr.f32.gmra.mxu1 %v4185_v36 }
 0x534   : > { %3486 = vst.msk [vmem:[#allocation3 + $0x1d0] sm:$0xff] %vm1435_vm7, %v3420_v57  ;;  %v4433_v14 = vpop.f32.mrf.mxu1  ;;  %4815 = vmatprep.mubr.msk.f32.mxu1 %vm326_vm0, %v4188_v18 }
 0x535   : > { %v4551_v5 = vmul.f32 %v7069_v62, %v4433_v14 }
 0x536   : > { %v4435_v9 = vpop.f32.mrf.mxu1  ;;  %v3230_v10 = vpop.permute.xlu1 %3229 }
 0x537   : > { %v4590_v35 = vadd.f32 %v7076_v39, %v4551_v5  ;;  %v3612_v16 = vpop.permute.xlu0 %3611  ;;  %3295 = vst.msk [vmem:[#allocation3 + $0x1e0] sm:$0xff] %vm1242_vm6, %v3230_v10 }
 0x538   : > { %3678 = vst.msk [vmem:[#allocation3 + $0x1d0] sm:$0xff] %vm1628_vm8, %v3612_v16 }
 0x539   : > { %v4622_v49 = vmax.f32 %v4590_v35, 0.0 }
 0x53a   : > { %v3422_v56 = vpop.permute.xlu1 %3421 }
 0x53b   : > { %4654 = vst.msk [vmem:[%s7089_s20 + $0x60] sm:$0xff] %vm326_vm0, %v4622_v49  ;;  %v3804_v0 = vpop.permute.xlu0 %3803 }
 0x53c   : > { %3870 = vst.msk [vmem:[#allocation3 + $0x1d0] sm:$0xff] %vm1822_vm9, %v3804_v0 }
 0x53d   : > { %3487 = vst.msk [vmem:[#allocation3 + $0x1e0] sm:$0xff] %vm1435_vm7, %v3422_v56 }
 0x53e   : > { %v3614_v37 = vpop.permute.xlu1 %3613 }
 0x53f   : > { %v3996_v63 = vpop.permute.xlu0 %3995  ;;  %3679 = vst.msk [vmem:[#allocation3 + $0x1e0] sm:$0xff] %vm1628_vm8, %v3614_v37 }
 0x540   : > { %4062 = vst.msk [vmem:[#allocation3 + $0x1d0] sm:$0xff] %vm2015_vm10, %v3996_v63  ;;  %v4438_v47 = vpop.f32.mrf.mxu1 }
 0x541   : > { %v4552_v26 = vmul.f32 %v7069_v62, %v4438_v47 }
 0x542   : > { %v4440_v59 = vpop.f32.mrf.mxu1  ;;  %v3806_v46 = vpop.permute.xlu1 %3805 }
 0x543   : > { %v4591_v29 = vadd.f32 %v7076_v39, %v4552_v26  ;;  %v2848_v44 = vpop.permute.xlu0 %2847  ;;  %3871 = vst.msk [vmem:[#allocation3 + $0x1e0] sm:$0xff] %vm1822_vm9, %v3806_v46 }
 0x544   : > { %2912 = vst.msk [vmem:[#allocation3 + $0x1f0] sm:$0xff] %vm856_vm4, %v2848_v44 }
 0x545   : > { %v4623_v51 = vmax.f32 %v4591_v29, 0.0 }
 0x546   : > { %v3998_v52 = vpop.permute.xlu1 %3997 }
 0x547   : > { %4655 = vst.msk [vmem:[%s7089_s20 + $0x68] sm:$0xff] %vm326_vm0, %v4623_v51  ;;  %v3040_v25 = vpop.permute.xlu0 %3039  ;;  %v4187_v2 = vld [vmem:[#allocation3 + $0x1d0] sm:$0xff] }
 0x548   : > { %3104 = vst.msk [vmem:[#allocation3 + $0x1f0] sm:$0xff] %vm1049_vm5, %v3040_v25  ;;  %4517 = vmatmul.mubr.f32.gmra.mxu1 %v4187_v2 }
 0x549   : > { %4063 = vst.msk [vmem:[#allocation3 + $0x1e0] sm:$0xff] %vm2015_vm10, %v3998_v52  ;;  %4816 = vmatprep.mubr.msk.f32.mxu1 %vm326_vm0, %v4190_v45 }
 0x54a   : > { %v3616_v19 = vpop.permute.xlu1 %3615 }
 0x54b   : > { %v3232_v60 = vpop.permute.xlu0 %3231 }
 0x54c   : > { %3296 = vst.msk [vmem:[#allocation3 + $0x1f0] sm:$0xff] %vm1242_vm6, %v3232_v60  ;;  %v4443_v11 = vpop.f32.mrf.mxu1 }
 0x54d   : > { %v4553_v17 = vmul.f32 %v7069_v62, %v4443_v11 }
 0x54e   : > { %v4445_v1 = vpop.f32.mrf.mxu1  ;;  %v4000_v23 = vpop.permute.xlu1 %3999 }
 0x54f   : > { %v4592_v4 = vadd.f32 %v7076_v39, %v4553_v17  ;;  %v3424_v7 = vpop.permute.xlu0 %3423 }
 0x550   : > { %3488 = vst.msk [vmem:[#allocation3 + $0x1f0] sm:$0xff] %vm1435_vm7, %v3424_v7  ;;  %v4189_v54 = vld [vmem:[#allocation3 + $0x1e0] sm:$0xff] }
 0x551   : > { %v4624_v12 = vmax.f32 %v4592_v4, 0.0  ;;  %3680 = vst.msk [vmem:[#allocation3 + $0x1f0] sm:$0xff] %vm1628_vm8, %v3616_v19  ;;  %4522 = vmatmul.mubr.f32.gmra.mxu1 %v4189_v54 }
 0x552   : > { %4817 = vmatprep.mubr.msk.f32.mxu1 %vm326_vm0, %v4192_v43 }
 0x553   : > { %4656 = vst.msk [vmem:[%s7089_s20 + $0x70] sm:$0xff] %vm326_vm0, %v4624_v12  ;;  %v3808_v50 = vpop.permute.xlu0 %3807 }
 0x554   : > { %3872 = vst.msk [vmem:[#allocation3 + $0x1f0] sm:$0xff] %vm1822_vm9, %v3808_v50 }
 0x555   : > { %4064 = vst.msk [vmem:[#allocation3 + $0x1f0] sm:$0xff] %vm2015_vm10, %v4000_v23 }
 0x558   : > { %v4448_v31 = vpop.f32.mrf.mxu1 }
 0x559   : > { %v4554_v20 = vmul.f32 %v7069_v62, %v4448_v31 }
 0x55a   : > { %v4450_v22 = vpop.f32.mrf.mxu1 }
 0x55b   : > { %v4593_v8 = vadd.f32 %v7076_v39, %v4554_v20 }
 0x55c   : > { %v4191_v55 = vld [vmem:[#allocation3 + $0x1f0] sm:$0xff] }
 0x55d   : > { %v4625_v30 = vmax.f32 %v4593_v8, 0.0  ;;  %4527 = vmatmul.mubr.f32.gmra.mxu1 %v4191_v55 }
 0x55f   : > { %4657 = vst.msk [vmem:[%s7089_s20 + $0x78] sm:$0xff] %vm326_vm0, %v4625_v30 }
 0x564   : > { %v4453_v48 = vpop.f32.mrf.mxu1 }
 0x565   : > { %v4555_v58 = vmul.f32 %v7069_v62, %v4453_v48 }
 0x566   : > { %v4455_v61 = vpop.f32.mrf.mxu1 }
 0x567   : > { %v4594_v3 = vadd.f32 %v7076_v39, %v4555_v58 }
 0x569   : > { %v4626_v24 = vmax.f32 %v4594_v3, 0.0 }
 0x56b   : > { %4658 = vst.msk [vmem:[%s7089_s20 + $0x80] sm:$0xff] %vm326_vm0, %v4626_v24 }
 0x570   : > { %v4458_v41 = vpop.f32.mrf.mxu1 }
 0x571   : > { %v4556_v21 = vmul.f32 %v7069_v62, %v4458_v41 }
 0x572   : > { %v4460_v13 = vpop.f32.mrf.mxu1 }
 0x573   : > { %v4595_v42 = vadd.f32 %v7076_v39, %v4556_v21 }
 0x575   : > { %v4627_v27 = vmax.f32 %v4595_v42, 0.0 }
 0x577   : > { %4659 = vst.msk [vmem:[%s7089_s20 + $0x88] sm:$0xff] %vm326_vm0, %v4627_v27 }
 0x57c   : > { %v4463_v15 = vpop.f32.mrf.mxu1 }
 0x57d   : > { %v4557_v53 = vmul.f32 %v7069_v62, %v4463_v15 }
 0x57e   : > { %v4465_v32 = vpop.f32.mrf.mxu1 }
 0x57f   : > { %v4596_v33 = vadd.f32 %v7076_v39, %v4557_v53 }
 0x581   : > { %v4628_v40 = vmax.f32 %v4596_v33, 0.0 }
 0x583   : > { %4660 = vst.msk [vmem:[%s7089_s20 + $0x90] sm:$0xff] %vm326_vm0, %v4628_v40 }
 0x588   : > { %v4468_v38 = vpop.f32.mrf.mxu1 }
 0x589   : > { %v4558_v6 = vmul.f32 %v7069_v62, %v4468_v38 }
 0x58a   : > { %v4470_v34 = vpop.f32.mrf.mxu1 }
 0x58b   : > { %v4597_v57 = vadd.f32 %v7076_v39, %v4558_v6 }
 0x58d   : > { %v4629_v28 = vmax.f32 %v4597_v57, 0.0 }
 0x58f   : > { %4661 = vst.msk [vmem:[%s7089_s20 + $0x98] sm:$0xff] %vm326_vm0, %v4629_v28 }
 0x594   : > { %v4473_v14 = vpop.f32.mrf.mxu1 }
 0x595   : > { %v4559_v36 = vmul.f32 %v7069_v62, %v4473_v14 }
 0x596   : > { %v4475_v5 = vpop.f32.mrf.mxu1 }
 0x597   : > { %v4598_v18 = vadd.f32 %v7076_v39, %v4559_v36 }
 0x599   : > { %v4630_v9 = vmax.f32 %v4598_v18, 0.0 }
 0x59b   : > { %4662 = vst.msk [vmem:[%s7089_s20 + $0xa0] sm:$0xff] %vm326_vm0, %v4630_v9 }
 0x5a0   : > { %v4478_v35 = vpop.f32.mrf.mxu1 }
 0x5a1   : > { %v4560_v16 = vmul.f32 %v7069_v62, %v4478_v35 }
 0x5a2   : > { %v4480_v10 = vpop.f32.mrf.mxu1 }
 0x5a3   : > { %v4599_v49 = vadd.f32 %v7076_v39, %v4560_v16 }
 0x5a5   : > { %v4631_v0 = vmax.f32 %v4599_v49, 0.0 }
 0x5a7   : > { %4663 = vst.msk [vmem:[%s7089_s20 + $0xa8] sm:$0xff] %vm326_vm0, %v4631_v0 }
 0x5ac   : > { %v4483_v56 = vpop.f32.mrf.mxu1 }
 0x5ad   : > { %v4561_v63 = vmul.f32 %v7069_v62, %v4483_v56 }
 0x5ae   : > { %v4485_v37 = vpop.f32.mrf.mxu1 }
 0x5af   : > { %v4600_v47 = vadd.f32 %v7076_v39, %v4561_v63 }
 0x5b1   : > { %v4632_v26 = vmax.f32 %v4600_v47, 0.0 }
 0x5b3   : > { %4664 = vst.msk [vmem:[%s7089_s20 + $0xb0] sm:$0xff] %vm326_vm0, %v4632_v26 }
 0x5b8   : > { %v4488_v59 = vpop.f32.mrf.mxu1 }
 0x5b9   : > { %v4562_v29 = vmul.f32 %v7069_v62, %v4488_v59 }
 0x5ba   : > { %v4490_v44 = vpop.f32.mrf.mxu1 }
 0x5bb   : > { %v4601_v46 = vadd.f32 %v7076_v39, %v4562_v29 }
 0x5bd   : > { %v4633_v51 = vmax.f32 %v4601_v46, 0.0 }
 0x5bf   : > { %4665 = vst.msk [vmem:[%s7089_s20 + $0xb8] sm:$0xff] %vm326_vm0, %v4633_v51 }
 0x5c4   : > { %v4493_v45 = vpop.f32.mrf.mxu1 }
 0x5c5   : > { %v4563_v25 = vmul.f32 %v7069_v62, %v4493_v45 }
 0x5c6   : > { %v4495_v2 = vpop.f32.mrf.mxu1 }
 0x5c7   : > { %v4602_v52 = vadd.f32 %v7076_v39, %v4563_v25 }
 0x5c9   : > { %v4634_v60 = vmax.f32 %v4602_v52, 0.0 }
 0x5cb   : > { %4666 = vst.msk [vmem:[%s7089_s20 + $0xc0] sm:$0xff] %vm326_vm0, %v4634_v60 }
 0x5d0   : > { %v4498_v11 = vpop.f32.mrf.mxu1 }
 0x5d1   : > { %v4564_v17 = vmul.f32 %v7069_v62, %v4498_v11 }
 0x5d2   : > { %v4500_v19 = vpop.f32.mrf.mxu1 }
 0x5d3   : > { %v4603_v1 = vadd.f32 %v7076_v39, %v4564_v17 }
 0x5d5   : > { %v4635_v4 = vmax.f32 %v4603_v1, 0.0 }
 0x5d7   : > { %4667 = vst.msk [vmem:[%s7089_s20 + $0xc8] sm:$0xff] %vm326_vm0, %v4635_v4  ;;  %v4503_v7 = vpop.f32.mrf.mxu1 }
 0x5d8   : > { %v4565_v43 = vmul.f32 %v7069_v62, %v4503_v7 }
 0x5d9   : > { %v4505_v54 = vpop.f32.mrf.mxu1 }
 0x5da   : > { %v4604_v12 = vadd.f32 %v7076_v39, %v4565_v43 }
 0x5dc   : > { %v4636_v23 = vmax.f32 %v4604_v12, 0.0 }
 0x5de   : > { %4668 = vst.msk [vmem:[%s7089_s20 + $0xd0] sm:$0xff] %vm326_vm0, %v4636_v23 }
 0x5ec   : > { %v4508_v50 = vpop.f32.mrf.mxu1 }
 0x5ed   : > { %v4566_v31 = vmul.f32 %v7069_v62, %v4508_v50 }
 0x5ee   : > { %v4510_v20 = vpop.f32.mrf.mxu1 }
 0x5ef   : > { %v4605_v22 = vadd.f32 %v7076_v39, %v4566_v31 }
 0x5f1   : > { %v4637_v8 = vmax.f32 %v4605_v22, 0.0 }
 0x5f3   : > { %4669 = vst.msk [vmem:[%s7089_s20 + $0xd8] sm:$0xff] %vm326_vm0, %v4637_v8  ;;  %v4513_v55 = vpop.f32.mrf.mxu1 }
 0x5f4   : > { %v4567_v30 = vmul.f32 %v7069_v62, %v4513_v55 }
 0x5f5   : > { %v4515_v48 = vpop.f32.mrf.mxu1 }
 0x5f6   : > { %v4606_v58 = vadd.f32 %v7076_v39, %v4567_v30 }
 0x5f8   : > { %v4638_v61 = vmax.f32 %v4606_v58, 0.0 }
 0x5fa   : > { %4670 = vst.msk [vmem:[%s7089_s20 + $0xe0] sm:$0xff] %vm326_vm0, %v4638_v61 }
 0x608   : > { %v4518_v3 = vpop.f32.mrf.mxu1 }
 0x609   : > { %v4568_v24 = vmul.f32 %v7069_v62, %v4518_v3 }
 0x60a   : > { %v4520_v41 = vpop.f32.mrf.mxu1 }
 0x60b   : > { %v4607_v21 = vadd.f32 %v7076_v39, %v4568_v24 }
 0x60d   : > { %v4639_v13 = vmax.f32 %v4607_v21, 0.0 }
 0x60f   : > { %4671 = vst.msk [vmem:[%s7089_s20 + $0xe8] sm:$0xff] %vm326_vm0, %v4639_v13 }
 0x611   : > { %v4523_v42 = vpop.f32.mrf.mxu1 }
 0x612   : > { %v4569_v27 = vmul.f32 %v7069_v62, %v4523_v42 }
 0x613   : > { %v4525_v15 = vpop.f32.mrf.mxu1 }
 0x614   : > { %v4608_v53 = vadd.f32 %v7076_v39, %v4569_v27 }
 0x616   : > { %v4640_v32 = vmax.f32 %v4608_v53, 0.0 }
 0x618   : > { %4672 = vst.msk [vmem:[%s7089_s20 + $0xf0] sm:$0xff] %vm326_vm0, %v4640_v32 }
 0x61d   : > { %v4528_v33 = vpop.f32.mrf.mxu1 }
 0x61e   : > { %v4570_v40 = vmul.f32 %v7069_v62, %v4528_v33 }
 0x61f   : > { %v4530_v38 = vpop.f32.mrf.mxu1 }
 0x620   : > { %v4609_v6 = vadd.f32 %v7076_v39, %v4570_v40 }
 0x622   : > { %v4641_v34 = vmax.f32 %v4609_v6, 0.0 }
 0x624   : > { %4673 = vst.msk [vmem:[%s7089_s20 + $0xf8] sm:$0xff] %vm326_vm0, %v4641_v34 }
 0x625 PF: > { %s18_s27 = sadd.s32 1, %s4850_s27  }
 0x626   : > { %p15_p4 = scmp.ge.s32.totalorder %s18_s27, 4  }
 0x628   :  { %17 = sbr.rel (!%p15_p4) target bundleno = 1 (0x1), region = 88 }

</bundles_post_ra>
